<compile_context>
chip_gen: v7x
topology: tpu7x:2x2x1
jax: 0.10.0
libtpu: 0.0.40
codegen_flags: <defaults>
</compile_context>

<pallas_src>
import functools

import jax
import jax.numpy as jnp
from jax.experimental import pallas as pl
from jax.experimental.pallas import tpu as pltpu

# ---------------- small, deterministic ViT config (synthetic weights) --------
IMG = 32                     # img_size (quadratic), as required by EncoderVit
PATCH = 16                   # patch_size = 16 (as in EncoderVit)
C_IN = 3                     # RGB channels
EMBED = 128                  # size_patch_embedding (768 in ViT-B; scaled down, lane-dense)
DEPTH = 2                    # transformer blocks (12 in ViT-B; scaled down)
HEADS = 4
HEAD_DIM = EMBED // HEADS
MLP_HIDDEN = 4 * EMBED
NUM_PATCHES = (IMG // PATCH) ** 2        # calc_num_embedded_patches()
SEQ = NUM_PATCHES + 1                    # +1 cls token
SEQ_PAD = ((SEQ + 7) // 8) * 8           # pad tokens to sublane multiple (8)
LN_EPS = 1e-6

assert EMBED % HEADS == 0


def _vmem_spec():
    return pl.BlockSpec(memory_space=pltpu.MemorySpace.VMEM)


# ----------------------------- in-kernel helpers ------------------------------
def _layer_norm(x, g, b):
    mu = jnp.mean(x, axis=-1, keepdims=True)
    xc = x - mu
    var = jnp.mean(xc * xc, axis=-1, keepdims=True)
    return xc * jax.lax.rsqrt(var + LN_EPS) * g + b


def _gelu(x):
    # TODO(synk): timm's nn.GELU is exact erf-GELU; tanh approximation used here.
    c = jnp.float32(0.7978845608028654)  # sqrt(2/pi)
    return 0.5 * x * (1.0 + jnp.tanh(c * (x + 0.044715 * x * x * x)))


# ------------------------------- fused kernel --------------------------------
def _encoder_kernel(patches_ref, pw_ref, pb_ref, base_ref, mask_ref,
                    ln1_g_ref, ln1_b_ref, qkv_w_ref, qkv_b_ref,
                    proj_w_ref, proj_b_ref, ln2_g_ref, ln2_b_ref,
                    fc1_w_ref, fc1_b_ref, fc2_w_ref, fc2_b_ref,
                    lnf_g_ref, lnf_b_ref,
                    out_ref, h_ref, *, batch):
    f32 = jnp.float32

    # ---- patch embedding: Conv2d(C, D, kernel=P, stride=P) == per-patch matmul
    tok = jnp.dot(patches_ref[...], pw_ref[...], preferred_element_type=f32)
    tok = tok + pb_ref[...]                                   # [B*NUM_PATCHES, EMBED]

    # ---- assemble padded token matrix [batch*SEQ_PAD, EMBED] in VMEM scratch
    # base[0] = cls + pos[0], base[1:SEQ] = pos[1:SEQ], rest zeros.
    h_ref[...] = jnp.zeros_like(h_ref)
    for bi in range(batch):
        r = bi * SEQ_PAD
        h_ref[pl.ds(r, 1), :] = base_ref[pl.ds(0, 1), :]
        h_ref[pl.ds(r + 1, NUM_PATCHES), :] = (
            tok[bi * NUM_PATCHES:(bi + 1) * NUM_PATCHES, :]
            + base_ref[pl.ds(1, NUM_PATCHES), :])
    h = h_ref[...]

    # block-diagonal additive mask (batch isolation + key padding), precomputed
    mask_add = mask_ref[...]                                  # [rows, rows]
    scale = jnp.float32(1.0 / (HEAD_DIM ** 0.5))

    for l in range(DEPTH):
        # --- attention sub-block (pre-norm), all fused in VMEM ---
        y = _layer_norm(h, ln1_g_ref[l], ln1_b_ref[l])
        qkv = jnp.dot(y, qkv_w_ref[l], preferred_element_type=f32) + qkv_b_ref[l]

        attn = None
        for hh in range(HEADS):
            c = hh * HEAD_DIM
            qh = qkv[:, c:c + HEAD_DIM] * scale
            kh = qkv[:, EMBED + c:EMBED + c + HEAD_DIM]
            vh = qkv[:, 2 * EMBED + c:2 * EMBED + c + HEAD_DIM]
            # q @ k.T over ALL tokens of the batch slab (no transpose materialized)
            s = jax.lax.dot_general(qh, kh, (((1,), (1,)), ((), ())),
                                    preferred_element_type=f32)
            s = s + mask_add
            m = jnp.max(s, axis=-1, keepdims=True)
            p = jnp.exp(s - m)
            denom = jnp.sum(p, axis=-1, keepdims=True)
            p = p * pl.reciprocal(denom, approx=True)
            o_h = jnp.dot(p, vh, preferred_element_type=f32)          # [rows, HD]
            # fuse the head re-merge with the output projection
            contrib = jnp.dot(o_h, proj_w_ref[l, c:c + HEAD_DIM, :],
                              preferred_element_type=f32)              # [rows, EMBED]
            attn = contrib if attn is None else attn + contrib
        h = h + attn + proj_b_ref[l]                                   # residual (fused)

        # --- MLP sub-block (pre-norm), fused ---
        y = _layer_norm(h, ln2_g_ref[l], ln2_b_ref[l])
        y = jnp.dot(y, fc1_w_ref[l], preferred_element_type=f32) + fc1_b_ref[l]
        y = _gelu(y)
        y = jnp.dot(y, fc2_w_ref[l], preferred_element_type=f32) + fc2_b_ref[l]
        h = h + y                                                      # residual (fused)

    # final LayerNorm (self.vit.norm)
    h = _layer_norm(h, lnf_g_ref[...], lnf_b_ref[...])
    out_ref[...] = h.astype(out_ref.dtype)


# --------------------------- parameter init ----------------------------------
def init_params(key):
    def normal(k, shape, std=0.02):
        return std * jax.random.normal(k, shape, dtype=jnp.float32)

    keys = jax.random.split(key, 8 + DEPTH)
    params = {
        # nn.Conv2d(C_IN, EMBED, kernel=PATCH, stride=PATCH) weight layout [D, C, P, P]
        "patch_w": normal(keys[0], (EMBED, C_IN, PATCH, PATCH)),
        "patch_b": jnp.zeros((EMBED,), jnp.float32),
        "cls_token": normal(keys[1], (1, 1, EMBED)),
        "pos_embed": normal(keys[2], (1, SEQ, EMBED)),
        "norm_g": jnp.ones((EMBED,), jnp.float32),
        "norm_b": jnp.zeros((EMBED,), jnp.float32),
        "blocks": [],
    }
    for i in range(DEPTH):
        bk = jax.random.split(keys[8 + i], 4)
        params["blocks"].append({
            "ln1_g": jnp.ones((EMBED,), jnp.float32),
            "ln1_b": jnp.zeros((EMBED,), jnp.float32),
            "qkv_w": normal(bk[0], (EMBED, 3 * EMBED)),
            "qkv_b": jnp.zeros((3 * EMBED,), jnp.float32),
            "proj_w": normal(bk[1], (EMBED, EMBED)),
            "proj_b": jnp.zeros((EMBED,), jnp.float32),
            "ln2_g": jnp.ones((EMBED,), jnp.float32),
            "ln2_b": jnp.zeros((EMBED,), jnp.float32),
            "fc1_w": normal(bk[2], (EMBED, MLP_HIDDEN)),
            "fc1_b": jnp.zeros((MLP_HIDDEN,), jnp.float32),
            "fc2_w": normal(bk[3], (MLP_HIDDEN, EMBED)),
            "fc2_b": jnp.zeros((EMBED,), jnp.float32),
        })
    return params


# ------------------------------ forward pass ---------------------------------
def encoder_vit_forward(params, x):
    """Mirrors EncoderVit.forward (== timm ViT forward_features + split).

    Returns (patch_embedding [B, num_patches, D], latent_space [B, D])."""
    b = x.shape[0]
    gh = IMG // PATCH
    rows = b * SEQ_PAD

    # patch extraction (pure layout work, stays in JAX)
    patches = x.reshape(b, C_IN, gh, PATCH, gh, PATCH)
    patches = patches.transpose(0, 2, 4, 1, 3, 5)              # [B, gh, gw, C, P, P]
    patches = patches.reshape(b * NUM_PATCHES, C_IN * PATCH * PATCH)
    w_patch = params["patch_w"].reshape(EMBED, -1).T           # [C*P*P, EMBED]

    # fold cls token + positional embedding into one padded [SEQ_PAD, EMBED] table
    base = jnp.zeros((SEQ_PAD, EMBED), jnp.float32)
    base = base.at[0].set(params["cls_token"][0, 0] + params["pos_embed"][0, 0])
    base = base.at[1:SEQ].set(params["pos_embed"][0, 1:SEQ])

    # block-diagonal additive attention mask: attend only within the same image
    # and only to non-padded key positions (constant, folded by XLA).
    ridx = jnp.arange(rows)
    same_img = (ridx[:, None] // SEQ_PAD) == (ridx[None, :] // SEQ_PAD)
    key_valid = (ridx[None, :] % SEQ_PAD) < SEQ
    mask_add = jnp.where(same_img & key_valid, 0.0, -1e30).astype(jnp.float32)
    mask_add = jnp.broadcast_to(mask_add, (rows, rows))

    blocks = params["blocks"]

    def stack_mat(name):
        return jnp.stack([blk[name] for blk in blocks])          # [DEPTH, in, out]

    def stack_vec(name):
        return jnp.stack([blk[name] for blk in blocks])[:, None, :]  # [DEPTH, 1, n]

    args = (
        patches, w_patch, params["patch_b"].reshape(1, EMBED), base, mask_add,
        stack_vec("ln1_g"), stack_vec("ln1_b"),
        stack_mat("qkv_w"), stack_vec("qkv_b"),
        stack_mat("proj_w"), stack_vec("proj_b"),
        stack_vec("ln2_g"), stack_vec("ln2_b"),
        stack_mat("fc1_w"), stack_vec("fc1_b"),
        stack_mat("fc2_w"), stack_vec("fc2_b"),
        params["norm_g"].reshape(1, EMBED), params["norm_b"].reshape(1, EMBED),
    )

    out = pl.pallas_call(
        functools.partial(_encoder_kernel, batch=b),
        out_shape=jax.ShapeDtypeStruct((rows, EMBED), jnp.float32),
        in_specs=[_vmem_spec()] * len(args),
        out_specs=_vmem_spec(),
        scratch_shapes=[pltpu.VMEM((rows, EMBED), jnp.float32)],
    )(*args)

    out = out.reshape(b, SEQ_PAD, EMBED)
    patch_embedding = out[:, 1:SEQ, :]       # drop cls + padding rows
    latent_space = out[:, 0, :]              # cls token
    return patch_embedding, latent_space


if __name__ == "__main__":
    key = jax.random.PRNGKey(0)
    pkey, xkey = jax.random.split(key)
    params = init_params(pkey)
    x = jax.random.normal(xkey, (2, C_IN, IMG, IMG), dtype=jnp.float32)

    patch_emb, cls_tok = jax.jit(encoder_vit_forward)(params, x)
    jax.block_until_ready((patch_emb, cls_tok))

    assert patch_emb.shape == (2, NUM_PATCHES, EMBED)
    assert cls_tok.shape == (2, EMBED)
    assert patch_emb.dtype == jnp.float32 and cls_tok.dtype == jnp.float32
    assert bool(jnp.all(jnp.isfinite(patch_emb))) and bool(jnp.all(jnp.isfinite(cls_tok)))
    print("KERNEL_OK")
</pallas_src>

<mosaic_0001>
module attributes {stable_mosaic.version = 11 : i64} {
  func.func @_encoder_kernel(%arg0: memref<8x768xf32, #tpu.memory_space<vmem>>, %arg1: memref<768x128xf32, #tpu.memory_space<vmem>>, %arg2: memref<1x128xf32, #tpu.memory_space<vmem>>, %arg3: memref<8x128xf32, #tpu.memory_space<vmem>>, %arg4: memref<16x16xf32, #tpu.memory_space<vmem>>, %arg5: memref<2x1x128xf32, #tpu.memory_space<vmem>>, %arg6: memref<2x1x128xf32, #tpu.memory_space<vmem>>, %arg7: memref<2x128x384xf32, #tpu.memory_space<vmem>>, %arg8: memref<2x1x384xf32, #tpu.memory_space<vmem>>, %arg9: memref<2x128x128xf32, #tpu.memory_space<vmem>>, %arg10: memref<2x1x128xf32, #tpu.memory_space<vmem>>, %arg11: memref<2x1x128xf32, #tpu.memory_space<vmem>>, %arg12: memref<2x1x128xf32, #tpu.memory_space<vmem>>, %arg13: memref<2x128x512xf32, #tpu.memory_space<vmem>>, %arg14: memref<2x1x512xf32, #tpu.memory_space<vmem>>, %arg15: memref<2x512x128xf32, #tpu.memory_space<vmem>>, %arg16: memref<2x1x128xf32, #tpu.memory_space<vmem>>, %arg17: memref<1x128xf32, #tpu.memory_space<vmem>>, %arg18: memref<1x128xf32, #tpu.memory_space<vmem>>, %arg19: memref<16x128xf32, #tpu.memory_space<vmem>>, %arg20: memref<16x128xf32, #tpu.memory_space<vmem>>) attributes {dimension_semantics = [], scalar_prefetch = 0 : i64, scratch_operands = 1 : i64, tpu.core_type = #tpu.core_type<tc>} {
    %c0 = arith.constant 0 : index
    %c0_0 = arith.constant 0 : index
    %0 = vector.load %arg0[%c0, %c0_0] : memref<8x768xf32, #tpu.memory_space<vmem>>, vector<8x768xf32>
    %c0_1 = arith.constant 0 : index
    %c0_2 = arith.constant 0 : index
    %1 = vector.load %arg1[%c0_1, %c0_2] : memref<768x128xf32, #tpu.memory_space<vmem>>, vector<768x128xf32>
    %cst = arith.constant dense<0.000000e+00> : vector<8x128xf32>
    %2 = tpu.matmul %0, %1, %cst {dimension_numbers = #tpu.dot_dimension_numbers<[1], [0], [0], [1], [0, 0, 1, 1], [], []>} : vector<8x768xf32>, vector<768x128xf32>, vector<8x128xf32> -> vector<8x128xf32>
    %c0_3 = arith.constant 0 : index
    %c0_4 = arith.constant 0 : index
    %3 = vector.load %arg2[%c0_3, %c0_4] : memref<1x128xf32, #tpu.memory_space<vmem>>, vector<1x128xf32>
    %4 = vector.broadcast %3 : vector<1x128xf32> to vector<8x128xf32>
    %5 = arith.addf %2, %4 : vector<8x128xf32>
    %cst_5 = arith.constant 0.000000e+00 : f32
    %6 = vector.broadcast %cst_5 : f32 to vector<16x128xf32>
    %c0_6 = arith.constant 0 : index
    %c0_7 = arith.constant 0 : index
    %7 = vector.load %arg20[%c0_6, %c0_7] : memref<16x128xf32, #tpu.memory_space<vmem>>, vector<16x128xf32>
    tpu.vector_store %arg20[%c0_6, %c0_7], %6 {strides = array<i32>} : memref<16x128xf32, #tpu.memory_space<vmem>>, vector<16x128xf32>,
    %c0_8 = arith.constant 0 : index
    %c0_9 = arith.constant 0 : index
    %8 = vector.load %arg3[%c0_8, %c0_9] : memref<8x128xf32, #tpu.memory_space<vmem>>, vector<1x128xf32>
    %c0_10 = arith.constant 0 : index
    %c0_11 = arith.constant 0 : index
    %9 = vector.load %arg20[%c0_10, %c0_11] : memref<16x128xf32, #tpu.memory_space<vmem>>, vector<1x128xf32>
    tpu.vector_store %arg20[%c0_10, %c0_11], %8 {strides = array<i32>} : memref<16x128xf32, #tpu.memory_space<vmem>>, vector<1x128xf32>,
    %10 = vector.extract_strided_slice %5 {offsets = [0, 0], sizes = [4, 128], strides = [1, 1]} : vector<8x128xf32> to vector<4x128xf32>
    %c1 = arith.constant 1 : index
    %c0_12 = arith.constant 0 : index
    %11 = vector.load %arg3[%c1, %c0_12] : memref<8x128xf32, #tpu.memory_space<vmem>>, vector<4x128xf32>
    %12 = arith.addf %10, %11 : vector<4x128xf32>
    %c1_13 = arith.constant 1 : index
    %c0_14 = arith.constant 0 : index
    %13 = vector.load %arg20[%c1_13, %c0_14] : memref<16x128xf32, #tpu.memory_space<vmem>>, vector<4x128xf32>
    tpu.vector_store %arg20[%c1_13, %c0_14], %12 {strides = array<i32>} : memref<16x128xf32, #tpu.memory_space<vmem>>, vector<4x128xf32>,
    %c0_15 = arith.constant 0 : index
    %c0_16 = arith.constant 0 : index
    %14 = vector.load %arg3[%c0_15, %c0_16] : memref<8x128xf32, #tpu.memory_space<vmem>>, vector<1x128xf32>
    %c8 = arith.constant 8 : index
    %c0_17 = arith.constant 0 : index
    %15 = vector.load %arg20[%c8, %c0_17] : memref<16x128xf32, #tpu.memory_space<vmem>>, vector<1x128xf32>
    tpu.vector_store %arg20[%c8, %c0_17], %14 {strides = array<i32>} : memref<16x128xf32, #tpu.memory_space<vmem>>, vector<1x128xf32>,
    %16 = vector.extract_strided_slice %5 {offsets = [4, 0], sizes = [4, 128], strides = [1, 1]} : vector<8x128xf32> to vector<4x128xf32>
    %c1_18 = arith.constant 1 : index
    %c0_19 = arith.constant 0 : index
    %17 = vector.load %arg3[%c1_18, %c0_19] : memref<8x128xf32, #tpu.memory_space<vmem>>, vector<4x128xf32>
    %18 = arith.addf %16, %17 : vector<4x128xf32>
    %c9 = arith.constant 9 : index
    %c0_20 = arith.constant 0 : index
    %19 = vector.load %arg20[%c9, %c0_20] : memref<16x128xf32, #tpu.memory_space<vmem>>, vector<4x128xf32>
    tpu.vector_store %arg20[%c9, %c0_20], %18 {strides = array<i32>} : memref<16x128xf32, #tpu.memory_space<vmem>>, vector<4x128xf32>,
    %c0_21 = arith.constant 0 : index
    %c0_22 = arith.constant 0 : index
    %20 = vector.load %arg20[%c0_21, %c0_22] : memref<16x128xf32, #tpu.memory_space<vmem>>, vector<16x128xf32>
    %c0_23 = arith.constant 0 : index
    %c0_24 = arith.constant 0 : index
    %21 = vector.load %arg4[%c0_23, %c0_24] : memref<16x16xf32, #tpu.memory_space<vmem>>, vector<16x16xf32>
    %c0_25 = arith.constant 0 : index
    %c0_26 = arith.constant 0 : index
    %c0_27 = arith.constant 0 : index
    %22 = vector.load %arg5[%c0_25, %c0_26, %c0_27] : memref<2x1x128xf32, #tpu.memory_space<vmem>>, vector<1x1x128xf32>
    %23 = vector.shape_cast %22 : vector<1x1x128xf32> to vector<1x128xf32>
    %c0_28 = arith.constant 0 : index
    %c0_29 = arith.constant 0 : index
    %c0_30 = arith.constant 0 : index
    %24 = vector.load %arg6[%c0_28, %c0_29, %c0_30] : memref<2x1x128xf32, #tpu.memory_space<vmem>>, vector<1x1x128xf32>
    %25 = vector.shape_cast %24 : vector<1x1x128xf32> to vector<1x128xf32>
    %cst_31 = arith.constant dense<0.000000e+00> : vector<16xf32>
    %26 = vector.multi_reduction <add>, %20, %cst_31 [1] : vector<16x128xf32> to vector<16xf32>
    %27 = vector.shape_cast %26 : vector<16xf32> to vector<16x1xf32>
    %cst_32 = arith.constant 1.280000e+02 : f32
    %28 = vector.broadcast %cst_32 : f32 to vector<16x1xf32>
    %29 = arith.divf %27, %28 : vector<16x1xf32>
    %30 = vector.broadcast %29 : vector<16x1xf32> to vector<16x128xf32>
    %31 = arith.subf %20, %30 : vector<16x128xf32>
    %32 = arith.mulf %31, %31 : vector<16x128xf32>
    %cst_33 = arith.constant dense<0.000000e+00> : vector<16xf32>
    %33 = vector.multi_reduction <add>, %32, %cst_33 [1] : vector<16x128xf32> to vector<16xf32>
    %34 = vector.shape_cast %33 : vector<16xf32> to vector<16x1xf32>
    %cst_34 = arith.constant 1.280000e+02 : f32
    %35 = vector.broadcast %cst_34 : f32 to vector<16x1xf32>
    %36 = arith.divf %34, %35 : vector<16x1xf32>
    %cst_35 = arith.constant 9.99999997E-7 : f32
    %37 = vector.broadcast %cst_35 : f32 to vector<16x1xf32>
    %38 = arith.addf %36, %37 : vector<16x1xf32>
    %39 = math.rsqrt %38 : vector<16x1xf32>
    %40 = vector.broadcast %39 : vector<16x1xf32> to vector<16x128xf32>
    %41 = arith.mulf %31, %40 : vector<16x128xf32>
    %42 = vector.broadcast %23 : vector<1x128xf32> to vector<16x128xf32>
    %43 = arith.mulf %41, %42 : vector<16x128xf32>
    %44 = vector.broadcast %25 : vector<1x128xf32> to vector<16x128xf32>
    %45 = arith.addf %43, %44 : vector<16x128xf32>
    %c0_36 = arith.constant 0 : index
    %c0_37 = arith.constant 0 : index
    %c0_38 = arith.constant 0 : index
    %46 = vector.load %arg7[%c0_36, %c0_37, %c0_38] : memref<2x128x384xf32, #tpu.memory_space<vmem>>, vector<1x128x384xf32>
    %47 = vector.shape_cast %46 : vector<1x128x384xf32> to vector<128x384xf32>
    %cst_39 = arith.constant dense<0.000000e+00> : vector<16x384xf32>
    %48 = tpu.matmul %45, %47, %cst_39 {dimension_numbers = #tpu.dot_dimension_numbers<[1], [0], [0], [1], [0, 0, 1, 1], [], []>} : vector<16x128xf32>, vector<128x384xf32>, vector<16x384xf32> -> vector<16x384xf32>
    %c0_40 = arith.constant 0 : index
    %c0_41 = arith.constant 0 : index
    %c0_42 = arith.constant 0 : index
    %49 = vector.load %arg8[%c0_40, %c0_41, %c0_42] : memref<2x1x384xf32, #tpu.memory_space<vmem>>, vector<1x1x384xf32>
    %50 = vector.shape_cast %49 : vector<1x1x384xf32> to vector<1x384xf32>
    %51 = vector.broadcast %50 : vector<1x384xf32> to vector<16x384xf32>
    %52 = arith.addf %48, %51 : vector<16x384xf32>
    %53 = vector.extract_strided_slice %52 {offsets = [0, 0], sizes = [16, 32], strides = [1, 1]} : vector<16x384xf32> to vector<16x32xf32>
    %cst_43 = arith.constant 0.176776692 : f32
    %54 = vector.broadcast %cst_43 : f32 to vector<16x32xf32>
    %55 = arith.mulf %53, %54 : vector<16x32xf32>
    %56 = vector.extract_strided_slice %52 {offsets = [0, 128], sizes = [16, 32], strides = [1, 1]} : vector<16x384xf32> to vector<16x32xf32>
    %57 = vector.extract_strided_slice %52 {offsets = [0, 256], sizes = [16, 32], strides = [1, 1]} : vector<16x384xf32> to vector<16x32xf32>
    %cst_44 = arith.constant dense<0.000000e+00> : vector<16x16xf32>
    %58 = tpu.matmul %55, %56, %cst_44 {dimension_numbers = #tpu.dot_dimension_numbers<[1], [1], [0], [0], [0, 0, 1, 0], [], []>} : vector<16x32xf32>, vector<16x32xf32>, vector<16x16xf32> -> vector<16x16xf32>
    %59 = arith.addf %58, %21 : vector<16x16xf32>
    %cst_45 = arith.constant dense<0xFF800000> : vector<16xf32>
    %60 = vector.multi_reduction <maximumf>, %59, %cst_45 [1] : vector<16x16xf32> to vector<16xf32>
    %61 = vector.shape_cast %60 : vector<16xf32> to vector<16x1xf32>
    %62 = vector.broadcast %61 : vector<16x1xf32> to vector<16x16xf32>
    %63 = arith.subf %59, %62 : vector<16x16xf32>
    %64 = math.exp %63 : vector<16x16xf32>
    %cst_46 = arith.constant dense<0.000000e+00> : vector<16xf32>
    %65 = vector.multi_reduction <add>, %64, %cst_46 [1] : vector<16x16xf32> to vector<16xf32>
    %66 = vector.shape_cast %65 : vector<16xf32> to vector<16x1xf32>
    %67 = tpu.reciprocal %66 {approx = true} : vector<16x1xf32> -> vector<16x1xf32>
    %68 = vector.broadcast %67 : vector<16x1xf32> to vector<16x16xf32>
    %69 = arith.mulf %64, %68 : vector<16x16xf32>
    %cst_47 = arith.constant dense<0.000000e+00> : vector<16x32xf32>
    %70 = tpu.matmul %69, %57, %cst_47 {dimension_numbers = #tpu.dot_dimension_numbers<[1], [0], [0], [1], [0, 0, 1, 1], [], []>} : vector<16x16xf32>, vector<16x32xf32>, vector<16x32xf32> -> vector<16x32xf32>
    %c0_48 = arith.constant 0 : index
    %c0_49 = arith.constant 0 : index
    %c0_50 = arith.constant 0 : index
    %71 = vector.load %arg9[%c0_48, %c0_49, %c0_50] : memref<2x128x128xf32, #tpu.memory_space<vmem>>, vector<1x32x128xf32>
    %72 = vector.shape_cast %71 : vector<1x32x128xf32> to vector<32x128xf32>
    %cst_51 = arith.constant dense<0.000000e+00> : vector<16x128xf32>
    %73 = tpu.matmul %70, %72, %cst_51 {dimension_numbers = #tpu.dot_dimension_numbers<[1], [0], [0], [1], [0, 0, 1, 1], [], []>} : vector<16x32xf32>, vector<32x128xf32>, vector<16x128xf32> -> vector<16x128xf32>
    %74 = vector.extract_strided_slice %52 {offsets = [0, 32], sizes = [16, 32], strides = [1, 1]} : vector<16x384xf32> to vector<16x32xf32>
    %cst_52 = arith.constant 0.176776692 : f32
    %75 = vector.broadcast %cst_52 : f32 to vector<16x32xf32>
    %76 = arith.mulf %74, %75 : vector<16x32xf32>
    %77 = vector.extract_strided_slice %52 {offsets = [0, 160], sizes = [16, 32], strides = [1, 1]} : vector<16x384xf32> to vector<16x32xf32>
    %78 = vector.extract_strided_slice %52 {offsets = [0, 288], sizes = [16, 32], strides = [1, 1]} : vector<16x384xf32> to vector<16x32xf32>
    %cst_53 = arith.constant dense<0.000000e+00> : vector<16x16xf32>
    %79 = tpu.matmul %76, %77, %cst_53 {dimension_numbers = #tpu.dot_dimension_numbers<[1], [1], [0], [0], [0, 0, 1, 0], [], []>} : vector<16x32xf32>, vector<16x32xf32>, vector<16x16xf32> -> vector<16x16xf32>
    %80 = arith.addf %79, %21 : vector<16x16xf32>
    %cst_54 = arith.constant dense<0xFF800000> : vector<16xf32>
    %81 = vector.multi_reduction <maximumf>, %80, %cst_54 [1] : vector<16x16xf32> to vector<16xf32>
    %82 = vector.shape_cast %81 : vector<16xf32> to vector<16x1xf32>
    %83 = vector.broadcast %82 : vector<16x1xf32> to vector<16x16xf32>
    %84 = arith.subf %80, %83 : vector<16x16xf32>
    %85 = math.exp %84 : vector<16x16xf32>
    %cst_55 = arith.constant dense<0.000000e+00> : vector<16xf32>
    %86 = vector.multi_reduction <add>, %85, %cst_55 [1] : vector<16x16xf32> to vector<16xf32>
    %87 = vector.shape_cast %86 : vector<16xf32> to vector<16x1xf32>
    %88 = tpu.reciprocal %87 {approx = true} : vector<16x1xf32> -> vector<16x1xf32>
    %89 = vector.broadcast %88 : vector<16x1xf32> to vector<16x16xf32>
    %90 = arith.mulf %85, %89 : vector<16x16xf32>
    %cst_56 = arith.constant dense<0.000000e+00> : vector<16x32xf32>
    %91 = tpu.matmul %90, %78, %cst_56 {dimension_numbers = #tpu.dot_dimension_numbers<[1], [0], [0], [1], [0, 0, 1, 1], [], []>} : vector<16x16xf32>, vector<16x32xf32>, vector<16x32xf32> -> vector<16x32xf32>
    %c0_57 = arith.constant 0 : index
    %c32 = arith.constant 32 : index
    %c0_58 = arith.constant 0 : index
    %92 = vector.load %arg9[%c0_57, %c32, %c0_58] : memref<2x128x128xf32, #tpu.memory_space<vmem>>, vector<1x32x128xf32>
    %93 = vector.shape_cast %92 : vector<1x32x128xf32> to vector<32x128xf32>
    %cst_59 = arith.constant dense<0.000000e+00> : vector<16x128xf32>
    %94 = tpu.matmul %91, %93, %cst_59 {dimension_numbers = #tpu.dot_dimension_numbers<[1], [0], [0], [1], [0, 0, 1, 1], [], []>} : vector<16x32xf32>, vector<32x128xf32>, vector<16x128xf32> -> vector<16x128xf32>
    %95 = arith.addf %73, %94 : vector<16x128xf32>
    %96 = vector.extract_strided_slice %52 {offsets = [0, 64], sizes = [16, 32], strides = [1, 1]} : vector<16x384xf32> to vector<16x32xf32>
    %cst_60 = arith.constant 0.176776692 : f32
    %97 = vector.broadcast %cst_60 : f32 to vector<16x32xf32>
    %98 = arith.mulf %96, %97 : vector<16x32xf32>
    %99 = vector.extract_strided_slice %52 {offsets = [0, 192], sizes = [16, 32], strides = [1, 1]} : vector<16x384xf32> to vector<16x32xf32>
    %100 = vector.extract_strided_slice %52 {offsets = [0, 320], sizes = [16, 32], strides = [1, 1]} : vector<16x384xf32> to vector<16x32xf32>
    %cst_61 = arith.constant dense<0.000000e+00> : vector<16x16xf32>
    %101 = tpu.matmul %98, %99, %cst_61 {dimension_numbers = #tpu.dot_dimension_numbers<[1], [1], [0], [0], [0, 0, 1, 0], [], []>} : vector<16x32xf32>, vector<16x32xf32>, vector<16x16xf32> -> vector<16x16xf32>
    %102 = arith.addf %101, %21 : vector<16x16xf32>
    %cst_62 = arith.constant dense<0xFF800000> : vector<16xf32>
    %103 = vector.multi_reduction <maximumf>, %102, %cst_62 [1] : vector<16x16xf32> to vector<16xf32>
    %104 = vector.shape_cast %103 : vector<16xf32> to vector<16x1xf32>
    %105 = vector.broadcast %104 : vector<16x1xf32> to vector<16x16xf32>
    %106 = arith.subf %102, %105 : vector<16x16xf32>
    %107 = math.exp %106 : vector<16x16xf32>
    %cst_63 = arith.constant dense<0.000000e+00> : vector<16xf32>
    %108 = vector.multi_reduction <add>, %107, %cst_63 [1] : vector<16x16xf32> to vector<16xf32>
    %109 = vector.shape_cast %108 : vector<16xf32> to vector<16x1xf32>
    %110 = tpu.reciprocal %109 {approx = true} : vector<16x1xf32> -> vector<16x1xf32>
    %111 = vector.broadcast %110 : vector<16x1xf32> to vector<16x16xf32>
    %112 = arith.mulf %107, %111 : vector<16x16xf32>
    %cst_64 = arith.constant dense<0.000000e+00> : vector<16x32xf32>
    %113 = tpu.matmul %112, %100, %cst_64 {dimension_numbers = #tpu.dot_dimension_numbers<[1], [0], [0], [1], [0, 0, 1, 1], [], []>} : vector<16x16xf32>, vector<16x32xf32>, vector<16x32xf32> -> vector<16x32xf32>
    %c0_65 = arith.constant 0 : index
    %c64 = arith.constant 64 : index
    %c0_66 = arith.constant 0 : index
    %114 = vector.load %arg9[%c0_65, %c64, %c0_66] : memref<2x128x128xf32, #tpu.memory_space<vmem>>, vector<1x32x128xf32>
    %115 = vector.shape_cast %114 : vector<1x32x128xf32> to vector<32x128xf32>
    %cst_67 = arith.constant dense<0.000000e+00> : vector<16x128xf32>
    %116 = tpu.matmul %113, %115, %cst_67 {dimension_numbers = #tpu.dot_dimension_numbers<[1], [0], [0], [1], [0, 0, 1, 1], [], []>} : vector<16x32xf32>, vector<32x128xf32>, vector<16x128xf32> -> vector<16x128xf32>
    %117 = arith.addf %95, %116 : vector<16x128xf32>
    %118 = vector.extract_strided_slice %52 {offsets = [0, 96], sizes = [16, 32], strides = [1, 1]} : vector<16x384xf32> to vector<16x32xf32>
    %cst_68 = arith.constant 0.176776692 : f32
    %119 = vector.broadcast %cst_68 : f32 to vector<16x32xf32>
    %120 = arith.mulf %118, %119 : vector<16x32xf32>
    %121 = vector.extract_strided_slice %52 {offsets = [0, 224], sizes = [16, 32], strides = [1, 1]} : vector<16x384xf32> to vector<16x32xf32>
    %122 = vector.extract_strided_slice %52 {offsets = [0, 352], sizes = [16, 32], strides = [1, 1]} : vector<16x384xf32> to vector<16x32xf32>
    %cst_69 = arith.constant dense<0.000000e+00> : vector<16x16xf32>
    %123 = tpu.matmul %120, %121, %cst_69 {dimension_numbers = #tpu.dot_dimension_numbers<[1], [1], [0], [0], [0, 0, 1, 0], [], []>} : vector<16x32xf32>, vector<16x32xf32>, vector<16x16xf32> -> vector<16x16xf32>
    %124 = arith.addf %123, %21 : vector<16x16xf32>
    %cst_70 = arith.constant dense<0xFF800000> : vector<16xf32>
    %125 = vector.multi_reduction <maximumf>, %124, %cst_70 [1] : vector<16x16xf32> to vector<16xf32>
    %126 = vector.shape_cast %125 : vector<16xf32> to vector<16x1xf32>
    %127 = vector.broadcast %126 : vector<16x1xf32> to vector<16x16xf32>
    %128 = arith.subf %124, %127 : vector<16x16xf32>
    %129 = math.exp %128 : vector<16x16xf32>
    %cst_71 = arith.constant dense<0.000000e+00> : vector<16xf32>
    %130 = vector.multi_reduction <add>, %129, %cst_71 [1] : vector<16x16xf32> to vector<16xf32>
    %131 = vector.shape_cast %130 : vector<16xf32> to vector<16x1xf32>
    %132 = tpu.reciprocal %131 {approx = true} : vector<16x1xf32> -> vector<16x1xf32>
    %133 = vector.broadcast %132 : vector<16x1xf32> to vector<16x16xf32>
    %134 = arith.mulf %129, %133 : vector<16x16xf32>
    %cst_72 = arith.constant dense<0.000000e+00> : vector<16x32xf32>
    %135 = tpu.matmul %134, %122, %cst_72 {dimension_numbers = #tpu.dot_dimension_numbers<[1], [0], [0], [1], [0, 0, 1, 1], [], []>} : vector<16x16xf32>, vector<16x32xf32>, vector<16x32xf32> -> vector<16x32xf32>
    %c0_73 = arith.constant 0 : index
    %c96 = arith.constant 96 : index
    %c0_74 = arith.constant 0 : index
    %136 = vector.load %arg9[%c0_73, %c96, %c0_74] : memref<2x128x128xf32, #tpu.memory_space<vmem>>, vector<1x32x128xf32>
    %137 = vector.shape_cast %136 : vector<1x32x128xf32> to vector<32x128xf32>
    %cst_75 = arith.constant dense<0.000000e+00> : vector<16x128xf32>
    %138 = tpu.matmul %135, %137, %cst_75 {dimension_numbers = #tpu.dot_dimension_numbers<[1], [0], [0], [1], [0, 0, 1, 1], [], []>} : vector<16x32xf32>, vector<32x128xf32>, vector<16x128xf32> -> vector<16x128xf32>
    %139 = arith.addf %117, %138 : vector<16x128xf32>
    %140 = arith.addf %20, %139 : vector<16x128xf32>
    %c0_76 = arith.constant 0 : index
    %c0_77 = arith.constant 0 : index
    %c0_78 = arith.constant 0 : index
    %141 = vector.load %arg10[%c0_76, %c0_77, %c0_78] : memref<2x1x128xf32, #tpu.memory_space<vmem>>, vector<1x1x128xf32>
    %142 = vector.shape_cast %141 : vector<1x1x128xf32> to vector<1x128xf32>
    %143 = vector.broadcast %142 : vector<1x128xf32> to vector<16x128xf32>
    %144 = arith.addf %140, %143 : vector<16x128xf32>
    %c0_79 = arith.constant 0 : index
    %c0_80 = arith.constant 0 : index
    %c0_81 = arith.constant 0 : index
    %145 = vector.load %arg11[%c0_79, %c0_80, %c0_81] : memref<2x1x128xf32, #tpu.memory_space<vmem>>, vector<1x1x128xf32>
    %146 = vector.shape_cast %145 : vector<1x1x128xf32> to vector<1x128xf32>
    %c0_82 = arith.constant 0 : index
    %c0_83 = arith.constant 0 : index
    %c0_84 = arith.constant 0 : index
    %147 = vector.load %arg12[%c0_82, %c0_83, %c0_84] : memref<2x1x128xf32, #tpu.memory_space<vmem>>, vector<1x1x128xf32>
    %148 = vector.shape_cast %147 : vector<1x1x128xf32> to vector<1x128xf32>
    %cst_85 = arith.constant dense<0.000000e+00> : vector<16xf32>
    %149 = vector.multi_reduction <add>, %144, %cst_85 [1] : vector<16x128xf32> to vector<16xf32>
    %150 = vector.shape_cast %149 : vector<16xf32> to vector<16x1xf32>
    %cst_86 = arith.constant 1.280000e+02 : f32
    %151 = vector.broadcast %cst_86 : f32 to vector<16x1xf32>
    %152 = arith.divf %150, %151 : vector<16x1xf32>
    %153 = vector.broadcast %152 : vector<16x1xf32> to vector<16x128xf32>
    %154 = arith.subf %144, %153 : vector<16x128xf32>
    %155 = arith.mulf %154, %154 : vector<16x128xf32>
    %cst_87 = arith.constant dense<0.000000e+00> : vector<16xf32>
    %156 = vector.multi_reduction <add>, %155, %cst_87 [1] : vector<16x128xf32> to vector<16xf32>
    %157 = vector.shape_cast %156 : vector<16xf32> to vector<16x1xf32>
    %cst_88 = arith.constant 1.280000e+02 : f32
    %158 = vector.broadcast %cst_88 : f32 to vector<16x1xf32>
    %159 = arith.divf %157, %158 : vector<16x1xf32>
    %cst_89 = arith.constant 9.99999997E-7 : f32
    %160 = vector.broadcast %cst_89 : f32 to vector<16x1xf32>
    %161 = arith.addf %159, %160 : vector<16x1xf32>
    %162 = math.rsqrt %161 : vector<16x1xf32>
    %163 = vector.broadcast %162 : vector<16x1xf32> to vector<16x128xf32>
    %164 = arith.mulf %154, %163 : vector<16x128xf32>
    %165 = vector.broadcast %146 : vector<1x128xf32> to vector<16x128xf32>
    %166 = arith.mulf %164, %165 : vector<16x128xf32>
    %167 = vector.broadcast %148 : vector<1x128xf32> to vector<16x128xf32>
    %168 = arith.addf %166, %167 : vector<16x128xf32>
    %c0_90 = arith.constant 0 : index
    %c0_91 = arith.constant 0 : index
    %c0_92 = arith.constant 0 : index
    %169 = vector.load %arg13[%c0_90, %c0_91, %c0_92] : memref<2x128x512xf32, #tpu.memory_space<vmem>>, vector<1x128x512xf32>
    %170 = vector.shape_cast %169 : vector<1x128x512xf32> to vector<128x512xf32>
    %cst_93 = arith.constant dense<0.000000e+00> : vector<16x512xf32>
    %171 = tpu.matmul %168, %170, %cst_93 {dimension_numbers = #tpu.dot_dimension_numbers<[1], [0], [0], [1], [0, 0, 1, 1], [], []>} : vector<16x128xf32>, vector<128x512xf32>, vector<16x512xf32> -> vector<16x512xf32>
    %c0_94 = arith.constant 0 : index
    %c0_95 = arith.constant 0 : index
    %c0_96 = arith.constant 0 : index
    %172 = vector.load %arg14[%c0_94, %c0_95, %c0_96] : memref<2x1x512xf32, #tpu.memory_space<vmem>>, vector<1x1x512xf32>
    %173 = vector.shape_cast %172 : vector<1x1x512xf32> to vector<1x512xf32>
    %174 = vector.broadcast %173 : vector<1x512xf32> to vector<16x512xf32>
    %175 = arith.addf %171, %174 : vector<16x512xf32>
    %cst_97 = arith.constant 5.000000e-01 : f32
    %176 = vector.broadcast %cst_97 : f32 to vector<16x512xf32>
    %177 = arith.mulf %176, %175 : vector<16x512xf32>
    %cst_98 = arith.constant 4.471500e-02 : f32
    %178 = vector.broadcast %cst_98 : f32 to vector<16x512xf32>
    %179 = arith.mulf %178, %175 : vector<16x512xf32>
    %180 = arith.mulf %179, %175 : vector<16x512xf32>
    %181 = arith.mulf %180, %175 : vector<16x512xf32>
    %182 = arith.addf %175, %181 : vector<16x512xf32>
    %cst_99 = arith.constant 0.797884583 : f32
    %183 = vector.broadcast %cst_99 : f32 to vector<16x512xf32>
    %184 = arith.mulf %183, %182 : vector<16x512xf32>
    %185 = math.tanh %184 : vector<16x512xf32>
    %cst_100 = arith.constant 1.000000e+00 : f32
    %186 = vector.broadcast %cst_100 : f32 to vector<16x512xf32>
    %187 = arith.addf %186, %185 : vector<16x512xf32>
    %188 = arith.mulf %177, %187 : vector<16x512xf32>
    %c0_101 = arith.constant 0 : index
    %c0_102 = arith.constant 0 : index
    %c0_103 = arith.constant 0 : index
    %189 = vector.load %arg15[%c0_101, %c0_102, %c0_103] : memref<2x512x128xf32, #tpu.memory_space<vmem>>, vector<1x512x128xf32>
    %190 = vector.shape_cast %189 : vector<1x512x128xf32> to vector<512x128xf32>
    %cst_104 = arith.constant dense<0.000000e+00> : vector<16x128xf32>
    %191 = tpu.matmul %188, %190, %cst_104 {dimension_numbers = #tpu.dot_dimension_numbers<[1], [0], [0], [1], [0, 0, 1, 1], [], []>} : vector<16x512xf32>, vector<512x128xf32>, vector<16x128xf32> -> vector<16x128xf32>
    %c0_105 = arith.constant 0 : index
    %c0_106 = arith.constant 0 : index
    %c0_107 = arith.constant 0 : index
    %192 = vector.load %arg16[%c0_105, %c0_106, %c0_107] : memref<2x1x128xf32, #tpu.memory_space<vmem>>, vector<1x1x128xf32>
    %193 = vector.shape_cast %192 : vector<1x1x128xf32> to vector<1x128xf32>
    %194 = vector.broadcast %193 : vector<1x128xf32> to vector<16x128xf32>
    %195 = arith.addf %191, %194 : vector<16x128xf32>
    %196 = arith.addf %144, %195 : vector<16x128xf32>
    %c1_108 = arith.constant 1 : index
    %c0_109 = arith.constant 0 : index
    %c0_110 = arith.constant 0 : index
    %197 = vector.load %arg5[%c1_108, %c0_109, %c0_110] : memref<2x1x128xf32, #tpu.memory_space<vmem>>, vector<1x1x128xf32>
    %198 = vector.shape_cast %197 : vector<1x1x128xf32> to vector<1x128xf32>
    %c1_111 = arith.constant 1 : index
    %c0_112 = arith.constant 0 : index
    %c0_113 = arith.constant 0 : index
    %199 = vector.load %arg6[%c1_111, %c0_112, %c0_113] : memref<2x1x128xf32, #tpu.memory_space<vmem>>, vector<1x1x128xf32>
    %200 = vector.shape_cast %199 : vector<1x1x128xf32> to vector<1x128xf32>
    %cst_114 = arith.constant dense<0.000000e+00> : vector<16xf32>
    %201 = vector.multi_reduction <add>, %196, %cst_114 [1] : vector<16x128xf32> to vector<16xf32>
    %202 = vector.shape_cast %201 : vector<16xf32> to vector<16x1xf32>
    %cst_115 = arith.constant 1.280000e+02 : f32
    %203 = vector.broadcast %cst_115 : f32 to vector<16x1xf32>
    %204 = arith.divf %202, %203 : vector<16x1xf32>
    %205 = vector.broadcast %204 : vector<16x1xf32> to vector<16x128xf32>
    %206 = arith.subf %196, %205 : vector<16x128xf32>
    %207 = arith.mulf %206, %206 : vector<16x128xf32>
    %cst_116 = arith.constant dense<0.000000e+00> : vector<16xf32>
    %208 = vector.multi_reduction <add>, %207, %cst_116 [1] : vector<16x128xf32> to vector<16xf32>
    %209 = vector.shape_cast %208 : vector<16xf32> to vector<16x1xf32>
    %cst_117 = arith.constant 1.280000e+02 : f32
    %210 = vector.broadcast %cst_117 : f32 to vector<16x1xf32>
    %211 = arith.divf %209, %210 : vector<16x1xf32>
    %cst_118 = arith.constant 9.99999997E-7 : f32
    %212 = vector.broadcast %cst_118 : f32 to vector<16x1xf32>
    %213 = arith.addf %211, %212 : vector<16x1xf32>
    %214 = math.rsqrt %213 : vector<16x1xf32>
    %215 = vector.broadcast %214 : vector<16x1xf32> to vector<16x128xf32>
    %216 = arith.mulf %206, %215 : vector<16x128xf32>
    %217 = vector.broadcast %198 : vector<1x128xf32> to vector<16x128xf32>
    %218 = arith.mulf %216, %217 : vector<16x128xf32>
    %219 = vector.broadcast %200 : vector<1x128xf32> to vector<16x128xf32>
    %220 = arith.addf %218, %219 : vector<16x128xf32>
    %c1_119 = arith.constant 1 : index
    %c0_120 = arith.constant 0 : index
    %c0_121 = arith.constant 0 : index
    %221 = vector.load %arg7[%c1_119, %c0_120, %c0_121] : memref<2x128x384xf32, #tpu.memory_space<vmem>>, vector<1x128x384xf32>
    %222 = vector.shape_cast %221 : vector<1x128x384xf32> to vector<128x384xf32>
    %cst_122 = arith.constant dense<0.000000e+00> : vector<16x384xf32>
    %223 = tpu.matmul %220, %222, %cst_122 {dimension_numbers = #tpu.dot_dimension_numbers<[1], [0], [0], [1], [0, 0, 1, 1], [], []>} : vector<16x128xf32>, vector<128x384xf32>, vector<16x384xf32> -> vector<16x384xf32>
    %c1_123 = arith.constant 1 : index
    %c0_124 = arith.constant 0 : index
    %c0_125 = arith.constant 0 : index
    %224 = vector.load %arg8[%c1_123, %c0_124, %c0_125] : memref<2x1x384xf32, #tpu.memory_space<vmem>>, vector<1x1x384xf32>
    %225 = vector.shape_cast %224 : vector<1x1x384xf32> to vector<1x384xf32>
    %226 = vector.broadcast %225 : vector<1x384xf32> to vector<16x384xf32>
    %227 = arith.addf %223, %226 : vector<16x384xf32>
    %228 = vector.extract_strided_slice %227 {offsets = [0, 0], sizes = [16, 32], strides = [1, 1]} : vector<16x384xf32> to vector<16x32xf32>
    %cst_126 = arith.constant 0.176776692 : f32
    %229 = vector.broadcast %cst_126 : f32 to vector<16x32xf32>
    %230 = arith.mulf %228, %229 : vector<16x32xf32>
    %231 = vector.extract_strided_slice %227 {offsets = [0, 128], sizes = [16, 32], strides = [1, 1]} : vector<16x384xf32> to vector<16x32xf32>
    %232 = vector.extract_strided_slice %227 {offsets = [0, 256], sizes = [16, 32], strides = [1, 1]} : vector<16x384xf32> to vector<16x32xf32>
    %cst_127 = arith.constant dense<0.000000e+00> : vector<16x16xf32>
    %233 = tpu.matmul %230, %231, %cst_127 {dimension_numbers = #tpu.dot_dimension_numbers<[1], [1], [0], [0], [0, 0, 1, 0], [], []>} : vector<16x32xf32>, vector<16x32xf32>, vector<16x16xf32> -> vector<16x16xf32>
    %234 = arith.addf %233, %21 : vector<16x16xf32>
    %cst_128 = arith.constant dense<0xFF800000> : vector<16xf32>
    %235 = vector.multi_reduction <maximumf>, %234, %cst_128 [1] : vector<16x16xf32> to vector<16xf32>
    %236 = vector.shape_cast %235 : vector<16xf32> to vector<16x1xf32>
    %237 = vector.broadcast %236 : vector<16x1xf32> to vector<16x16xf32>
    %238 = arith.subf %234, %237 : vector<16x16xf32>
    %239 = math.exp %238 : vector<16x16xf32>
    %cst_129 = arith.constant dense<0.000000e+00> : vector<16xf32>
    %240 = vector.multi_reduction <add>, %239, %cst_129 [1] : vector<16x16xf32> to vector<16xf32>
    %241 = vector.shape_cast %240 : vector<16xf32> to vector<16x1xf32>
    %242 = tpu.reciprocal %241 {approx = true} : vector<16x1xf32> -> vector<16x1xf32>
    %243 = vector.broadcast %242 : vector<16x1xf32> to vector<16x16xf32>
    %244 = arith.mulf %239, %243 : vector<16x16xf32>
    %cst_130 = arith.constant dense<0.000000e+00> : vector<16x32xf32>
    %245 = tpu.matmul %244, %232, %cst_130 {dimension_numbers = #tpu.dot_dimension_numbers<[1], [0], [0], [1], [0, 0, 1, 1], [], []>} : vector<16x16xf32>, vector<16x32xf32>, vector<16x32xf32> -> vector<16x32xf32>
    %c1_131 = arith.constant 1 : index
    %c0_132 = arith.constant 0 : index
    %c0_133 = arith.constant 0 : index
    %246 = vector.load %arg9[%c1_131, %c0_132, %c0_133] : memref<2x128x128xf32, #tpu.memory_space<vmem>>, vector<1x32x128xf32>
    %247 = vector.shape_cast %246 : vector<1x32x128xf32> to vector<32x128xf32>
    %cst_134 = arith.constant dense<0.000000e+00> : vector<16x128xf32>
    %248 = tpu.matmul %245, %247, %cst_134 {dimension_numbers = #tpu.dot_dimension_numbers<[1], [0], [0], [1], [0, 0, 1, 1], [], []>} : vector<16x32xf32>, vector<32x128xf32>, vector<16x128xf32> -> vector<16x128xf32>
    %249 = vector.extract_strided_slice %227 {offsets = [0, 32], sizes = [16, 32], strides = [1, 1]} : vector<16x384xf32> to vector<16x32xf32>
    %cst_135 = arith.constant 0.176776692 : f32
    %250 = vector.broadcast %cst_135 : f32 to vector<16x32xf32>
    %251 = arith.mulf %249, %250 : vector<16x32xf32>
    %252 = vector.extract_strided_slice %227 {offsets = [0, 160], sizes = [16, 32], strides = [1, 1]} : vector<16x384xf32> to vector<16x32xf32>
    %253 = vector.extract_strided_slice %227 {offsets = [0, 288], sizes = [16, 32], strides = [1, 1]} : vector<16x384xf32> to vector<16x32xf32>
    %cst_136 = arith.constant dense<0.000000e+00> : vector<16x16xf32>
    %254 = tpu.matmul %251, %252, %cst_136 {dimension_numbers = #tpu.dot_dimension_numbers<[1], [1], [0], [0], [0, 0, 1, 0], [], []>} : vector<16x32xf32>, vector<16x32xf32>, vector<16x16xf32> -> vector<16x16xf32>
    %255 = arith.addf %254, %21 : vector<16x16xf32>
    %cst_137 = arith.constant dense<0xFF800000> : vector<16xf32>
    %256 = vector.multi_reduction <maximumf>, %255, %cst_137 [1] : vector<16x16xf32> to vector<16xf32>
    %257 = vector.shape_cast %256 : vector<16xf32> to vector<16x1xf32>
    %258 = vector.broadcast %257 : vector<16x1xf32> to vector<16x16xf32>
    %259 = arith.subf %255, %258 : vector<16x16xf32>
    %260 = math.exp %259 : vector<16x16xf32>
    %cst_138 = arith.constant dense<0.000000e+00> : vector<16xf32>
    %261 = vector.multi_reduction <add>, %260, %cst_138 [1] : vector<16x16xf32> to vector<16xf32>
    %262 = vector.shape_cast %261 : vector<16xf32> to vector<16x1xf32>
    %263 = tpu.reciprocal %262 {approx = true} : vector<16x1xf32> -> vector<16x1xf32>
    %264 = vector.broadcast %263 : vector<16x1xf32> to vector<16x16xf32>
    %265 = arith.mulf %260, %264 : vector<16x16xf32>
    %cst_139 = arith.constant dense<0.000000e+00> : vector<16x32xf32>
    %266 = tpu.matmul %265, %253, %cst_139 {dimension_numbers = #tpu.dot_dimension_numbers<[1], [0], [0], [1], [0, 0, 1, 1], [], []>} : vector<16x16xf32>, vector<16x32xf32>, vector<16x32xf32> -> vector<16x32xf32>
    %c1_140 = arith.constant 1 : index
    %c32_141 = arith.constant 32 : index
    %c0_142 = arith.constant 0 : index
    %267 = vector.load %arg9[%c1_140, %c32_141, %c0_142] : memref<2x128x128xf32, #tpu.memory_space<vmem>>, vector<1x32x128xf32>
    %268 = vector.shape_cast %267 : vector<1x32x128xf32> to vector<32x128xf32>
    %cst_143 = arith.constant dense<0.000000e+00> : vector<16x128xf32>
    %269 = tpu.matmul %266, %268, %cst_143 {dimension_numbers = #tpu.dot_dimension_numbers<[1], [0], [0], [1], [0, 0, 1, 1], [], []>} : vector<16x32xf32>, vector<32x128xf32>, vector<16x128xf32> -> vector<16x128xf32>
    %270 = arith.addf %248, %269 : vector<16x128xf32>
    %271 = vector.extract_strided_slice %227 {offsets = [0, 64], sizes = [16, 32], strides = [1, 1]} : vector<16x384xf32> to vector<16x32xf32>
    %cst_144 = arith.constant 0.176776692 : f32
    %272 = vector.broadcast %cst_144 : f32 to vector<16x32xf32>
    %273 = arith.mulf %271, %272 : vector<16x32xf32>
    %274 = vector.extract_strided_slice %227 {offsets = [0, 192], sizes = [16, 32], strides = [1, 1]} : vector<16x384xf32> to vector<16x32xf32>
    %275 = vector.extract_strided_slice %227 {offsets = [0, 320], sizes = [16, 32], strides = [1, 1]} : vector<16x384xf32> to vector<16x32xf32>
    %cst_145 = arith.constant dense<0.000000e+00> : vector<16x16xf32>
    %276 = tpu.matmul %273, %274, %cst_145 {dimension_numbers = #tpu.dot_dimension_numbers<[1], [1], [0], [0], [0, 0, 1, 0], [], []>} : vector<16x32xf32>, vector<16x32xf32>, vector<16x16xf32> -> vector<16x16xf32>
    %277 = arith.addf %276, %21 : vector<16x16xf32>
    %cst_146 = arith.constant dense<0xFF800000> : vector<16xf32>
    %278 = vector.multi_reduction <maximumf>, %277, %cst_146 [1] : vector<16x16xf32> to vector<16xf32>
    %279 = vector.shape_cast %278 : vector<16xf32> to vector<16x1xf32>
    %280 = vector.broadcast %279 : vector<16x1xf32> to vector<16x16xf32>
    %281 = arith.subf %277, %280 : vector<16x16xf32>
    %282 = math.exp %281 : vector<16x16xf32>
    %cst_147 = arith.constant dense<0.000000e+00> : vector<16xf32>
    %283 = vector.multi_reduction <add>, %282, %cst_147 [1] : vector<16x16xf32> to vector<16xf32>
    %284 = vector.shape_cast %283 : vector<16xf32> to vector<16x1xf32>
    %285 = tpu.reciprocal %284 {approx = true} : vector<16x1xf32> -> vector<16x1xf32>
    %286 = vector.broadcast %285 : vector<16x1xf32> to vector<16x16xf32>
    %287 = arith.mulf %282, %286 : vector<16x16xf32>
    %cst_148 = arith.constant dense<0.000000e+00> : vector<16x32xf32>
    %288 = tpu.matmul %287, %275, %cst_148 {dimension_numbers = #tpu.dot_dimension_numbers<[1], [0], [0], [1], [0, 0, 1, 1], [], []>} : vector<16x16xf32>, vector<16x32xf32>, vector<16x32xf32> -> vector<16x32xf32>
    %c1_149 = arith.constant 1 : index
    %c64_150 = arith.constant 64 : index
    %c0_151 = arith.constant 0 : index
    %289 = vector.load %arg9[%c1_149, %c64_150, %c0_151] : memref<2x128x128xf32, #tpu.memory_space<vmem>>, vector<1x32x128xf32>
    %290 = vector.shape_cast %289 : vector<1x32x128xf32> to vector<32x128xf32>
    %cst_152 = arith.constant dense<0.000000e+00> : vector<16x128xf32>
    %291 = tpu.matmul %288, %290, %cst_152 {dimension_numbers = #tpu.dot_dimension_numbers<[1], [0], [0], [1], [0, 0, 1, 1], [], []>} : vector<16x32xf32>, vector<32x128xf32>, vector<16x128xf32> -> vector<16x128xf32>
    %292 = arith.addf %270, %291 : vector<16x128xf32>
    %293 = vector.extract_strided_slice %227 {offsets = [0, 96], sizes = [16, 32], strides = [1, 1]} : vector<16x384xf32> to vector<16x32xf32>
    %cst_153 = arith.constant 0.176776692 : f32
    %294 = vector.broadcast %cst_153 : f32 to vector<16x32xf32>
    %295 = arith.mulf %293, %294 : vector<16x32xf32>
    %296 = vector.extract_strided_slice %227 {offsets = [0, 224], sizes = [16, 32], strides = [1, 1]} : vector<16x384xf32> to vector<16x32xf32>
    %297 = vector.extract_strided_slice %227 {offsets = [0, 352], sizes = [16, 32], strides = [1, 1]} : vector<16x384xf32> to vector<16x32xf32>
    %cst_154 = arith.constant dense<0.000000e+00> : vector<16x16xf32>
    %298 = tpu.matmul %295, %296, %cst_154 {dimension_numbers = #tpu.dot_dimension_numbers<[1], [1], [0], [0], [0, 0, 1, 0], [], []>} : vector<16x32xf32>, vector<16x32xf32>, vector<16x16xf32> -> vector<16x16xf32>
    %299 = arith.addf %298, %21 : vector<16x16xf32>
    %cst_155 = arith.constant dense<0xFF800000> : vector<16xf32>
    %300 = vector.multi_reduction <maximumf>, %299, %cst_155 [1] : vector<16x16xf32> to vector<16xf32>
    %301 = vector.shape_cast %300 : vector<16xf32> to vector<16x1xf32>
    %302 = vector.broadcast %301 : vector<16x1xf32> to vector<16x16xf32>
    %303 = arith.subf %299, %302 : vector<16x16xf32>
    %304 = math.exp %303 : vector<16x16xf32>
    %cst_156 = arith.constant dense<0.000000e+00> : vector<16xf32>
    %305 = vector.multi_reduction <add>, %304, %cst_156 [1] : vector<16x16xf32> to vector<16xf32>
    %306 = vector.shape_cast %305 : vector<16xf32> to vector<16x1xf32>
    %307 = tpu.reciprocal %306 {approx = true} : vector<16x1xf32> -> vector<16x1xf32>
    %308 = vector.broadcast %307 : vector<16x1xf32> to vector<16x16xf32>
    %309 = arith.mulf %304, %308 : vector<16x16xf32>
    %cst_157 = arith.constant dense<0.000000e+00> : vector<16x32xf32>
    %310 = tpu.matmul %309, %297, %cst_157 {dimension_numbers = #tpu.dot_dimension_numbers<[1], [0], [0], [1], [0, 0, 1, 1], [], []>} : vector<16x16xf32>, vector<16x32xf32>, vector<16x32xf32> -> vector<16x32xf32>
    %c1_158 = arith.constant 1 : index
    %c96_159 = arith.constant 96 : index
    %c0_160 = arith.constant 0 : index
    %311 = vector.load %arg9[%c1_158, %c96_159, %c0_160] : memref<2x128x128xf32, #tpu.memory_space<vmem>>, vector<1x32x128xf32>
    %312 = vector.shape_cast %311 : vector<1x32x128xf32> to vector<32x128xf32>
    %cst_161 = arith.constant dense<0.000000e+00> : vector<16x128xf32>
    %313 = tpu.matmul %310, %312, %cst_161 {dimension_numbers = #tpu.dot_dimension_numbers<[1], [0], [0], [1], [0, 0, 1, 1], [], []>} : vector<16x32xf32>, vector<32x128xf32>, vector<16x128xf32> -> vector<16x128xf32>
    %314 = arith.addf %292, %313 : vector<16x128xf32>
    %315 = arith.addf %196, %314 : vector<16x128xf32>
    %c1_162 = arith.constant 1 : index
    %c0_163 = arith.constant 0 : index
    %c0_164 = arith.constant 0 : index
    %316 = vector.load %arg10[%c1_162, %c0_163, %c0_164] : memref<2x1x128xf32, #tpu.memory_space<vmem>>, vector<1x1x128xf32>
    %317 = vector.shape_cast %316 : vector<1x1x128xf32> to vector<1x128xf32>
    %318 = vector.broadcast %317 : vector<1x128xf32> to vector<16x128xf32>
    %319 = arith.addf %315, %318 : vector<16x128xf32>
    %c1_165 = arith.constant 1 : index
    %c0_166 = arith.constant 0 : index
    %c0_167 = arith.constant 0 : index
    %320 = vector.load %arg11[%c1_165, %c0_166, %c0_167] : memref<2x1x128xf32, #tpu.memory_space<vmem>>, vector<1x1x128xf32>
    %321 = vector.shape_cast %320 : vector<1x1x128xf32> to vector<1x128xf32>
    %c1_168 = arith.constant 1 : index
    %c0_169 = arith.constant 0 : index
    %c0_170 = arith.constant 0 : index
    %322 = vector.load %arg12[%c1_168, %c0_169, %c0_170] : memref<2x1x128xf32, #tpu.memory_space<vmem>>, vector<1x1x128xf32>
    %323 = vector.shape_cast %322 : vector<1x1x128xf32> to vector<1x128xf32>
    %cst_171 = arith.constant dense<0.000000e+00> : vector<16xf32>
    %324 = vector.multi_reduction <add>, %319, %cst_171 [1] : vector<16x128xf32> to vector<16xf32>
    %325 = vector.shape_cast %324 : vector<16xf32> to vector<16x1xf32>
    %cst_172 = arith.constant 1.280000e+02 : f32
    %326 = vector.broadcast %cst_172 : f32 to vector<16x1xf32>
    %327 = arith.divf %325, %326 : vector<16x1xf32>
    %328 = vector.broadcast %327 : vector<16x1xf32> to vector<16x128xf32>
    %329 = arith.subf %319, %328 : vector<16x128xf32>
    %330 = arith.mulf %329, %329 : vector<16x128xf32>
    %cst_173 = arith.constant dense<0.000000e+00> : vector<16xf32>
    %331 = vector.multi_reduction <add>, %330, %cst_173 [1] : vector<16x128xf32> to vector<16xf32>
    %332 = vector.shape_cast %331 : vector<16xf32> to vector<16x1xf32>
    %cst_174 = arith.constant 1.280000e+02 : f32
    %333 = vector.broadcast %cst_174 : f32 to vector<16x1xf32>
    %334 = arith.divf %332, %333 : vector<16x1xf32>
    %cst_175 = arith.constant 9.99999997E-7 : f32
    %335 = vector.broadcast %cst_175 : f32 to vector<16x1xf32>
    %336 = arith.addf %334, %335 : vector<16x1xf32>
    %337 = math.rsqrt %336 : vector<16x1xf32>
    %338 = vector.broadcast %337 : vector<16x1xf32> to vector<16x128xf32>
    %339 = arith.mulf %329, %338 : vector<16x128xf32>
    %340 = vector.broadcast %321 : vector<1x128xf32> to vector<16x128xf32>
    %341 = arith.mulf %339, %340 : vector<16x128xf32>
    %342 = vector.broadcast %323 : vector<1x128xf32> to vector<16x128xf32>
    %343 = arith.addf %341, %342 : vector<16x128xf32>
    %c1_176 = arith.constant 1 : index
    %c0_177 = arith.constant 0 : index
    %c0_178 = arith.constant 0 : index
    %344 = vector.load %arg13[%c1_176, %c0_177, %c0_178] : memref<2x128x512xf32, #tpu.memory_space<vmem>>, vector<1x128x512xf32>
    %345 = vector.shape_cast %344 : vector<1x128x512xf32> to vector<128x512xf32>
    %cst_179 = arith.constant dense<0.000000e+00> : vector<16x512xf32>
    %346 = tpu.matmul %343, %345, %cst_179 {dimension_numbers = #tpu.dot_dimension_numbers<[1], [0], [0], [1], [0, 0, 1, 1], [], []>} : vector<16x128xf32>, vector<128x512xf32>, vector<16x512xf32> -> vector<16x512xf32>
    %c1_180 = arith.constant 1 : index
    %c0_181 = arith.constant 0 : index
    %c0_182 = arith.constant 0 : index
    %347 = vector.load %arg14[%c1_180, %c0_181, %c0_182] : memref<2x1x512xf32, #tpu.memory_space<vmem>>, vector<1x1x512xf32>
    %348 = vector.shape_cast %347 : vector<1x1x512xf32> to vector<1x512xf32>
    %349 = vector.broadcast %348 : vector<1x512xf32> to vector<16x512xf32>
    %350 = arith.addf %346, %349 : vector<16x512xf32>
    %cst_183 = arith.constant 5.000000e-01 : f32
    %351 = vector.broadcast %cst_183 : f32 to vector<16x512xf32>
    %352 = arith.mulf %351, %350 : vector<16x512xf32>
    %cst_184 = arith.constant 4.471500e-02 : f32
    %353 = vector.broadcast %cst_184 : f32 to vector<16x512xf32>
    %354 = arith.mulf %353, %350 : vector<16x512xf32>
    %355 = arith.mulf %354, %350 : vector<16x512xf32>
    %356 = arith.mulf %355, %350 : vector<16x512xf32>
    %357 = arith.addf %350, %356 : vector<16x512xf32>
    %cst_185 = arith.constant 0.797884583 : f32
    %358 = vector.broadcast %cst_185 : f32 to vector<16x512xf32>
    %359 = arith.mulf %358, %357 : vector<16x512xf32>
    %360 = math.tanh %359 : vector<16x512xf32>
    %cst_186 = arith.constant 1.000000e+00 : f32
    %361 = vector.broadcast %cst_186 : f32 to vector<16x512xf32>
    %362 = arith.addf %361, %360 : vector<16x512xf32>
    %363 = arith.mulf %352, %362 : vector<16x512xf32>
    %c1_187 = arith.constant 1 : index
    %c0_188 = arith.constant 0 : index
    %c0_189 = arith.constant 0 : index
    %364 = vector.load %arg15[%c1_187, %c0_188, %c0_189] : memref<2x512x128xf32, #tpu.memory_space<vmem>>, vector<1x512x128xf32>
    %365 = vector.shape_cast %364 : vector<1x512x128xf32> to vector<512x128xf32>
    %cst_190 = arith.constant dense<0.000000e+00> : vector<16x128xf32>
    %366 = tpu.matmul %363, %365, %cst_190 {dimension_numbers = #tpu.dot_dimension_numbers<[1], [0], [0], [1], [0, 0, 1, 1], [], []>} : vector<16x512xf32>, vector<512x128xf32>, vector<16x128xf32> -> vector<16x128xf32>
    %c1_191 = arith.constant 1 : index
    %c0_192 = arith.constant 0 : index
    %c0_193 = arith.constant 0 : index
    %367 = vector.load %arg16[%c1_191, %c0_192, %c0_193] : memref<2x1x128xf32, #tpu.memory_space<vmem>>, vector<1x1x128xf32>
    %368 = vector.shape_cast %367 : vector<1x1x128xf32> to vector<1x128xf32>
    %369 = vector.broadcast %368 : vector<1x128xf32> to vector<16x128xf32>
    %370 = arith.addf %366, %369 : vector<16x128xf32>
    %371 = arith.addf %319, %370 : vector<16x128xf32>
    %c0_194 = arith.constant 0 : index
    %c0_195 = arith.constant 0 : index
    %372 = vector.load %arg17[%c0_194, %c0_195] : memref<1x128xf32, #tpu.memory_space<vmem>>, vector<1x128xf32>
    %c0_196 = arith.constant 0 : index
    %c0_197 = arith.constant 0 : index
    %373 = vector.load %arg18[%c0_196, %c0_197] : memref<1x128xf32, #tpu.memory_space<vmem>>, vector<1x128xf32>
    %cst_198 = arith.constant dense<0.000000e+00> : vector<16xf32>
    %374 = vector.multi_reduction <add>, %371, %cst_198 [1] : vector<16x128xf32> to vector<16xf32>
    %375 = vector.shape_cast %374 : vector<16xf32> to vector<16x1xf32>
    %cst_199 = arith.constant 1.280000e+02 : f32
    %376 = vector.broadcast %cst_199 : f32 to vector<16x1xf32>
    %377 = arith.divf %375, %376 : vector<16x1xf32>
    %378 = vector.broadcast %377 : vector<16x1xf32> to vector<16x128xf32>
    %379 = arith.subf %371, %378 : vector<16x128xf32>
    %380 = arith.mulf %379, %379 : vector<16x128xf32>
    %cst_200 = arith.constant dense<0.000000e+00> : vector<16xf32>
    %381 = vector.multi_reduction <add>, %380, %cst_200 [1] : vector<16x128xf32> to vector<16xf32>
    %382 = vector.shape_cast %381 : vector<16xf32> to vector<16x1xf32>
    %cst_201 = arith.constant 1.280000e+02 : f32
    %383 = vector.broadcast %cst_201 : f32 to vector<16x1xf32>
    %384 = arith.divf %382, %383 : vector<16x1xf32>
    %cst_202 = arith.constant 9.99999997E-7 : f32
    %385 = vector.broadcast %cst_202 : f32 to vector<16x1xf32>
    %386 = arith.addf %384, %385 : vector<16x1xf32>
    %387 = math.rsqrt %386 : vector<16x1xf32>
    %388 = vector.broadcast %387 : vector<16x1xf32> to vector<16x128xf32>
    %389 = arith.mulf %379, %388 : vector<16x128xf32>
    %390 = vector.broadcast %372 : vector<1x128xf32> to vector<16x128xf32>
    %391 = arith.mulf %389, %390 : vector<16x128xf32>
    %392 = vector.broadcast %373 : vector<1x128xf32> to vector<16x128xf32>
    %393 = arith.addf %391, %392 : vector<16x128xf32>
    %c0_203 = arith.constant 0 : index
    %c0_204 = arith.constant 0 : index
    %394 = vector.load %arg19[%c0_203, %c0_204] : memref<16x128xf32, #tpu.memory_space<vmem>>, vector<16x128xf32>
    tpu.vector_store %arg19[%c0_203, %c0_204], %393 {strides = array<i32>} : memref<16x128xf32, #tpu.memory_space<vmem>>, vector<16x128xf32>,
    return
  }
}

</mosaic_0001>

<bundles_post_ra>
// kernel: encoder_vit_forward.1
= control target key start
LH: loop header
LB: loop body
LE: loop exit
PB: predicated region body
PF: predicated region fallthrough
CT: control target
= control target key end

     0   :  { %vm660_vm0 = vcmask 261120   ;;  %vm748_vm2 = vcmask 130048   ;;  %s6197_s30 = smov 64   ;;  %s6198_s21 = smov 32   ;;  %s8249_s1 = inlined_call_operand.vmem [shape: f32[768,128], index: 1, kind: input, shape index: {}]   ;;  %s8250_s0 = inlined_call_operand.vmem [shape: f32[8,768], index: 0, kind: input, shape index: {}]   ;;  %s8251_s3 = inlined_call_operand.vmem [shape: f32[8,128], index: 3, kind: input, shape index: {}]   ;;  %s8252_s2 = inlined_call_operand.vmem [shape: f32[1,128], index: 2, kind: input, shape index: {}]   ;;  %s8253_s7 = inlined_call_operand.vmem [shape: f32[2,128,384], index: 7, kind: input, shape index: {}]   ;;  %s8254_s5 = inlined_call_operand.vmem [shape: f32[2,1,128], index: 5, kind: input, shape index: {}]   ;;  %s8255_s6 = inlined_call_operand.vmem [shape: f32[2,1,128], index: 6, kind: input, shape index: {}]   ;;  %s8256_s8 = inlined_call_operand.vmem [shape: f32[2,1,384], index: 8, kind: input, shape index: {}]   ;;  %s8257_s4 = inlined_call_operand.vmem [shape: f32[16,16], index: 4, kind: input, shape index: {}]   ;;  %s8258_s9 = inlined_call_operand.vmem [shape: f32[2,128,128], index: 9, kind: input, shape index: {}]   ;;  %s8259_s10 = inlined_call_operand.vmem [shape: f32[2,1,128], index: 10, kind: input, shape index: {}]   ;;  %s8260_s13 = inlined_call_operand.vmem [shape: f32[2,128,512], index: 13, kind: input, shape index: {}]   ;;  %s8261_s15 = inlined_call_operand.vmem [shape: f32[2,512,128], index: 15, kind: input, shape index: {}]   ;;  %s8262_s11 = inlined_call_operand.vmem [shape: f32[2,1,128], index: 11, kind: input, shape index: {}]   ;;  %s8263_s12 = inlined_call_operand.vmem [shape: f32[2,1,128], index: 12, kind: input, shape index: {}]   ;;  %s8264_s14 = inlined_call_operand.vmem [shape: f32[2,1,512], index: 14, kind: input, shape index: {}]   ;;  %s8265_s16 = inlined_call_operand.vmem [shape: f32[2,1,128], index: 16, kind: input, shape index: {}]   ;;  %s8266_s17 = inlined_call_operand.vmem [shape: f32[1,128], index: 17, kind: input, shape index: {}]   ;;  %s8267_s18 = inlined_call_operand.vmem [shape: f32[1,128], index: 18, kind: input, shape index: {}]   ;;  %s8268_s19 = inlined_call_operand.vmem [shape: f32[16,128], index: 19, kind: output, shape index: {}]  }
   0x1   :  { %8272 = sst [smem:[#allocation3_spill]] %s8249_s1  ;;  %vm6815_vm1 = vmpackc.low %vm660_vm0, %vm660_vm0  ;;  %s6196_s1 = smov 96  }
   0x2   :  { %8273 = sst [smem:[#allocation4_spill]] %s8250_s0  ;;  %s8276_s20 = sld [smem:[#allocation3_spill]] }
   0x3   :  { %8274 = sst [smem:[#allocation5_spill]] %s8251_s3  ;;  %s8277_s26 = sld [smem:[#allocation4_spill]] }
   0x4   :  { %8275 = sst [smem:[#allocation6_spill]] %s8252_s2  ;;  %s8278_s22 = sld [smem:[#allocation5_spill]] }
   0x5   :  { %s8279_s24 = sld [smem:[#allocation6_spill]] }
   0x8   :  { %v84_v0 = vld [vmem:[%s8276_s20 + $0x80] sm:$0xff]  ;;  %v85_v1 = vld [vmem:[%s8276_s20 + $0x88] sm:$0xff]  ;;  %v86_v11 = vld [vmem:[%s8276_s20 + $0x90] sm:$0xff] }
   0x9   :  { %v68_v2 = vld [vmem:[%s8276_s20] sm:$0xff]  ;;  %v5377_v3 = vpack.c.bf16 %v85_v1, %v84_v0  ;;  %v69_v4 = vld [vmem:[%s8276_s20 + $0x8] sm:$0xff]  ;;  %v87_v13 = vld [vmem:[%s8276_s20 + $0x98] sm:$0xff] }
   0xa   :  { %v116_v5 = vld [vmem:[%s8276_s20 + $0x180] sm:$0xff]  ;;  %v117_v6 = vld [vmem:[%s8276_s20 + $0x188] sm:$0xff]  ;;  %v5379_v7 = vpack.c.bf16 %v69_v4, %v68_v2  ;;  %v70_v14 = vld [vmem:[%s8276_s20 + $0x10] sm:$0xff]  ;;  %v5381_v16 = vpack.c.bf16 %v87_v13, %v86_v11 }
   0xb   :  { %v5409_v8 = vpack.c.bf16 %v117_v6, %v116_v5  ;;  %v100_v9 = vld [vmem:[%s8276_s20 + $0x100] sm:$0xff]  ;;  %v101_v10 = vld [vmem:[%s8276_s20 + $0x108] sm:$0xff]  ;;  %5378 = vmatprep.subr.bf16.mxu0 %v5377_v3  ;;  %v71_v15 = vld [vmem:[%s8276_s20 + $0x18] sm:$0xff] }
   0xc   :  { %v5411_v12 = vpack.c.bf16 %v101_v10, %v100_v9  ;;  %5380 = vmatpush3.bf16.msra.mxu0 %v5379_v7  ;;  %v5383_v17 = vpack.c.bf16 %v71_v15, %v70_v14  ;;  %v118_v18 = vld [vmem:[%s8276_s20 + $0x190] sm:$0xff]  ;;  %v119_v19 = vld [vmem:[%s8276_s20 + $0x198] sm:$0xff]  ;;  %v88_v23 = vld [vmem:[%s8276_s20 + $0xa0] sm:$0xff] }
   0xd   :  { %5410 = vmatprep.subr.bf16.mxu1 %v5409_v8  ;;  %v102_v20 = vld [vmem:[%s8276_s20 + $0x110] sm:$0xff]  ;;  %v5413_v21 = vpack.c.bf16 %v119_v19, %v118_v18  ;;  %v103_v22 = vld [vmem:[%s8276_s20 + $0x118] sm:$0xff]  ;;  %v89_v24 = vld [vmem:[%s8276_s20 + $0xa8] sm:$0xff]  ;;  %5382 = vmatprep.subr.bf16.mxu0 %v5381_v16 }
   0xe   :  { %5412 = vmatpush3.bf16.msra.mxu1 %v5411_v12  ;;  %v5415_v25 = vpack.c.bf16 %v103_v22, %v102_v20  ;;  %v5385_v26 = vpack.c.bf16 %v89_v24, %v88_v23  ;;  %v72_v27 = vld [vmem:[%s8276_s20 + $0x20] sm:$0xff]  ;;  %v73_v28 = vld [vmem:[%s8276_s20 + $0x28] sm:$0xff]  ;;  %v90_v35 = vld [vmem:[%s8276_s20 + $0xb0] sm:$0xff] }
   0xf   :  { %v120_v29 = vld [vmem:[%s8276_s20 + $0x1a0] sm:$0xff]  ;;  %5414 = vmatprep.subr.bf16.mxu1 %v5413_v21  ;;  %v121_v30 = vld [vmem:[%s8276_s20 + $0x1a8] sm:$0xff]  ;;  %v5387_v33 = vpack.c.bf16 %v73_v28, %v72_v27  ;;  %v91_v36 = vld [vmem:[%s8276_s20 + $0xb8] sm:$0xff] }
  0x10   :  { %v104_v31 = vld [vmem:[%s8276_s20 + $0x120] sm:$0xff]  ;;  %v105_v32 = vld [vmem:[%s8276_s20 + $0x128] sm:$0xff]  ;;  %5384 = vmatpush3.bf16.msra.mxu0 %v5383_v17  ;;  %v5417_v34 = vpack.c.bf16 %v121_v30, %v120_v29  ;;  %v74_v37 = vld [vmem:[%s8276_s20 + $0x30] sm:$0xff]  ;;  %v5389_v39 = vpack.c.bf16 %v91_v36, %v90_v35 }
  0x11   :  { %5386 = vmatprep.subr.bf16.mxu0 %v5385_v26  ;;  %v5419_v38 = vpack.c.bf16 %v105_v32, %v104_v31  ;;  %v75_v40 = vld [vmem:[%s8276_s20 + $0x38] sm:$0xff]  ;;  %v122_v41 = vld [vmem:[%s8276_s20 + $0x1b0] sm:$0xff]  ;;  %v92_v46 = vld [vmem:[%s8276_s20 + $0xc0] sm:$0xff] }
  0x12   :  { %5416 = vmatpush3.bf16.msra.mxu1 %v5415_v25  ;;  %v123_v42 = vld [vmem:[%s8276_s20 + $0x1b8] sm:$0xff]  ;;  %v106_v44 = vld [vmem:[%s8276_s20 + $0x130] sm:$0xff]  ;;  %v93_v47 = vld [vmem:[%s8276_s20 + $0xc8] sm:$0xff]  ;;  %v5391_v48 = vpack.c.bf16 %v75_v40, %v74_v37 }
  0x13   :  { %5418 = vmatprep.subr.bf16.mxu1 %v5417_v34  ;;  %v5421_v43 = vpack.c.bf16 %v123_v42, %v122_v41  ;;  %v107_v45 = vld [vmem:[%s8276_s20 + $0x138] sm:$0xff]  ;;  %v124_v49 = vld [vmem:[%s8276_s20 + $0x1c0] sm:$0xff]  ;;  %v125_v50 = vld [vmem:[%s8276_s20 + $0x1c8] sm:$0xff]  ;;  %v5393_v52 = vpack.c.bf16 %v93_v47, %v92_v46 }
  0x14   :  { %5388 = vmatpush3.bf16.msra.mxu0 %v5387_v33  ;;  %v5423_v51 = vpack.c.bf16 %v107_v45, %v106_v44  ;;  %v76_v53 = vld [vmem:[%s8276_s20 + $0x40] sm:$0xff]  ;;  %v77_v54 = vld [vmem:[%s8276_s20 + $0x48] sm:$0xff]  ;;  %v5425_v56 = vpack.c.bf16 %v125_v50, %v124_v49  ;;  %v94_v58 = vld [vmem:[%s8276_s20 + $0xd0] sm:$0xff] }
  0x15   :  { %5390 = vmatprep.subr.bf16.mxu0 %v5389_v39  ;;  %v108_v55 = vld [vmem:[%s8276_s20 + $0x140] sm:$0xff]  ;;  %v109_v57 = vld [vmem:[%s8276_s20 + $0x148] sm:$0xff]  ;;  %v95_v59 = vld [vmem:[%s8276_s20 + $0xd8] sm:$0xff]  ;;  %v5395_v62 = vpack.c.bf16 %v77_v54, %v76_v53 }
  0x16   :  { %5420 = vmatpush3.bf16.msra.mxu1 %v5419_v38  ;;  %v126_v60 = vld [vmem:[%s8276_s20 + $0x1d0] sm:$0xff]  ;;  %v127_v61 = vld [vmem:[%s8276_s20 + $0x1d8] sm:$0xff]  ;;  %v5427_v63 = vpack.c.bf16 %v109_v57, %v108_v55  ;;  %v5397_v0 = vpack.c.bf16 %v95_v59, %v94_v58  ;;  %v96_v6 = vld [vmem:[%s8276_s20 + $0xe0] sm:$0xff] }
  0x17   :  { %5422 = vmatprep.subr.bf16.mxu1 %v5421_v43  ;;  %v78_v1 = vld [vmem:[%s8276_s20 + $0x50] sm:$0xff]  ;;  %v79_v2 = vld [vmem:[%s8276_s20 + $0x58] sm:$0xff]  ;;  %v5429_v4 = vpack.c.bf16 %v127_v61, %v126_v60  ;;  %v97_v7 = vld [vmem:[%s8276_s20 + $0xe8] sm:$0xff] }
  0x18   :  { %5392 = vmatpush3.bf16.msra.mxu0 %v5391_v48  ;;  %v110_v3 = vld [vmem:[%s8276_s20 + $0x150] sm:$0xff]  ;;  %v111_v5 = vld [vmem:[%s8276_s20 + $0x158] sm:$0xff]  ;;  %v128_v8 = vld [vmem:[%s8276_s20 + $0x1e0] sm:$0xff]  ;;  %v5399_v10 = vpack.c.bf16 %v79_v2, %v78_v1  ;;  %v5401_v14 = vpack.c.bf16 %v97_v7, %v96_v6 }
  0x19   :  { %5394 = vmatprep.subr.bf16.mxu0 %v5393_v52  ;;  %v129_v9 = vld [vmem:[%s8276_s20 + $0x1e8] sm:$0xff]  ;;  %v80_v11 = vld [vmem:[%s8276_s20 + $0x60] sm:$0xff]  ;;  %v5431_v13 = vpack.c.bf16 %v111_v5, %v110_v3  ;;  %v98_v19 = vld [vmem:[%s8276_s20 + $0xf0] sm:$0xff] }
  0x1a   :  { %5424 = vmatpush3.bf16.msra.mxu1 %v5423_v51  ;;  %v63_v12 = vld [vmem:[%s8277_s26 + $0x8] sm:$0xff]  ;;  %v112_v16 = vld [vmem:[%s8276_s20 + $0x160] sm:$0xff]  ;;  %v5433_v18 = vpack.c.bf16 %v129_v9, %v128_v8  ;;  %v99_v20 = vld [vmem:[%s8276_s20 + $0xf8] sm:$0xff] }
  0x1b   :  { %5426 = vmatprep.subr.bf16.mxu1 %v5425_v56  ;;  %v81_v15 = vld [vmem:[%s8276_s20 + $0x68] sm:$0xff]  ;;  %235 = vmatprep.mubr.f32.mxu0 %v63_v12  ;;  %v65_v21 = vld [vmem:[%s8277_s26 + $0x18] sm:$0xff]  ;;  %v130_v22 = vld [vmem:[%s8276_s20 + $0x1f0] sm:$0xff]  ;;  %v5405_v26 = vpack.c.bf16 %v99_v20, %v98_v19 }
  0x1c   :  { %5396 = vmatpush3.bf16.msra.mxu0 %v5395_v62  ;;  %v113_v17 = vld [vmem:[%s8276_s20 + $0x168] sm:$0xff]  ;;  %v131_v23 = vld [vmem:[%s8276_s20 + $0x1f8] sm:$0xff]  ;;  %305 = vmatprep.mubr.f32.mxu1 %v65_v21  ;;  %v5403_v24 = vpack.c.bf16 %v81_v15, %v80_v11  ;;  %v82_v27 = vld [vmem:[%s8276_s20 + $0x70] sm:$0xff] }
  0x1d   :  { %5398 = vmatprep.subr.bf16.mxu0 %v5397_v0  ;;  %v5435_v25 = vpack.c.bf16 %v113_v17, %v112_v16  ;;  %v83_v28 = vld [vmem:[%s8276_s20 + $0x78] sm:$0xff]  ;;  %v114_v29 = vld [vmem:[%s8276_s20 + $0x170] sm:$0xff]  ;;  %v5437_v30 = vpack.c.bf16 %v131_v23, %v130_v22  ;;  %v148_v32 = vld [vmem:[%s8276_s20 + $0x280] sm:$0xff]  ;;  %v6195_v23 = vmov 0.0  }
  0x1e   :  { %5428 = vmatpush3.bf16.msra.mxu1 %v5427_v63  ;;  %v115_v31 = vld [vmem:[%s8276_s20 + $0x178] sm:$0xff]  ;;  %v149_v33 = vld [vmem:[%s8276_s20 + $0x288] sm:$0xff]  ;;  %v5407_v34 = vpack.c.bf16 %v83_v28, %v82_v27  ;;  %v132_v37 = vld [vmem:[%s8276_s20 + $0x200] sm:$0xff]  ;;  %381 = vst [vmem:[#allocation2] sm:$0xff] %v6195_v23 }
  0x1f   :  { %5430 = vmatprep.subr.bf16.mxu1 %v5429_v4  ;;  %v5439_v35 = vpack.c.bf16 %v115_v31, %v114_v29  ;;  %v5441_v36 = vpack.c.bf16 %v149_v33, %v148_v32  ;;  %v133_v38 = vld [vmem:[%s8276_s20 + $0x208] sm:$0xff]  ;;  %v150_v39 = vld [vmem:[%s8276_s20 + $0x290] sm:$0xff]  ;;  %v151_v40 = vld [vmem:[%s8276_s20 + $0x298] sm:$0xff]  ;;  %382 = vst [vmem:[#allocation2 + $0x8] sm:$0xff] %v6195_v23 }
  0x20   :  { %5400 = vmatpush3.bf16.msra.mxu0 %v5399_v10  ;;  %v62_v41 = vld [vmem:[%s8277_s26] sm:$0xff]  ;;  %v5443_v42 = vpack.c.bf16 %v133_v38, %v132_v37  ;;  %v64_v43 = vld [vmem:[%s8277_s26 + $0x10] sm:$0xff]  ;;  %v5445_v44 = vpack.c.bf16 %v151_v40, %v150_v39  ;;  %v135_v46 = vld [vmem:[%s8276_s20 + $0x218] sm:$0xff] }
  0x21   :  { %5402 = vmatprep.subr.bf16.mxu0 %v5401_v14  ;;  %v134_v45 = vld [vmem:[%s8276_s20 + $0x210] sm:$0xff]  ;;  %v152_v47 = vld [vmem:[%s8276_s20 + $0x2a0] sm:$0xff]  ;;  %v153_v48 = vld [vmem:[%s8276_s20 + $0x2a8] sm:$0xff] }
  0x22   :  { %5432 = vmatpush3.bf16.msra.mxu1 %v5431_v13  ;;  %v67_v49 = vld [vmem:[%s8277_s26 + $0x28] sm:$0xff]  ;;  %v5447_v50 = vpack.c.bf16 %v135_v46, %v134_v45  ;;  %v5449_v51 = vpack.c.bf16 %v153_v48, %v152_v47  ;;  %v136_v52 = vld [vmem:[%s8276_s20 + $0x220] sm:$0xff]  ;;  %v154_v54 = vld [vmem:[%s8276_s20 + $0x2b0] sm:$0xff] }
  0x23   :  { %5434 = vmatprep.subr.bf16.mxu1 %v5433_v18  ;;  %v137_v53 = vld [vmem:[%s8276_s20 + $0x228] sm:$0xff]  ;;  %v155_v55 = vld [vmem:[%s8276_s20 + $0x2b8] sm:$0xff]  ;;  %v138_v58 = vld [vmem:[%s8276_s20 + $0x230] sm:$0xff] }
  0x24   :  { %5404 = vmatpush3.bf16.msra.mxu0 %v5403_v24  ;;  %v5451_v56 = vpack.c.bf16 %v137_v53, %v136_v52  ;;  %v5453_v57 = vpack.c.bf16 %v155_v55, %v154_v54  ;;  %v139_v59 = vld [vmem:[%s8276_s20 + $0x238] sm:$0xff]  ;;  %v156_v60 = vld [vmem:[%s8276_s20 + $0x2c0] sm:$0xff]  ;;  %v157_v61 = vld [vmem:[%s8276_s20 + $0x2c8] sm:$0xff] }
  0x25   :  { %5406 = vmatprep.subr.bf16.mxu0 %v5405_v26  ;;  %v5455_v62 = vpack.c.bf16 %v139_v59, %v138_v58  ;;  %v5457_v63 = vpack.c.bf16 %v157_v61, %v156_v60  ;;  %v140_v0 = vld [vmem:[%s8276_s20 + $0x240] sm:$0xff]  ;;  %v141_v1 = vld [vmem:[%s8276_s20 + $0x248] sm:$0xff]  ;;  %v158_v2 = vld [vmem:[%s8276_s20 + $0x2d0] sm:$0xff] }
  0x26   :  { %5436 = vmatpush3.bf16.msra.mxu1 %v5435_v25  ;;  %v159_v3 = vld [vmem:[%s8276_s20 + $0x2d8] sm:$0xff]  ;;  %v5459_v4 = vpack.c.bf16 %v141_v1, %v140_v0  ;;  %v142_v6 = vld [vmem:[%s8276_s20 + $0x250] sm:$0xff]  ;;  %v160_v8 = vld [vmem:[%s8276_s20 + $0x2e0] sm:$0xff] }
  0x27   :  { %5438 = vmatprep.subr.bf16.mxu1 %v5437_v30  ;;  %v5461_v5 = vpack.c.bf16 %v159_v3, %v158_v2  ;;  %v143_v7 = vld [vmem:[%s8276_s20 + $0x258] sm:$0xff]  ;;  %v161_v9 = vld [vmem:[%s8276_s20 + $0x2e8] sm:$0xff]  ;;  %v144_v12 = vld [vmem:[%s8276_s20 + $0x260] sm:$0xff] }
  0x28   :  { %5408 = vmatpush3.bf16.msra.mxu0 %v5407_v34  ;;  %v5463_v10 = vpack.c.bf16 %v143_v7, %v142_v6  ;;  %v5465_v11 = vpack.c.bf16 %v161_v9, %v160_v8  ;;  %v145_v13 = vld [vmem:[%s8276_s20 + $0x268] sm:$0xff]  ;;  %v162_v14 = vld [vmem:[%s8276_s20 + $0x2f0] sm:$0xff]  ;;  %v163_v15 = vld [vmem:[%s8276_s20 + $0x2f8] sm:$0xff] }
  0x29   :  { %5442 = vmatprep.subr.bf16.mxu0 %v5441_v36  ;;  %v5467_v16 = vpack.c.bf16 %v145_v13, %v144_v12  ;;  %v5469_v17 = vpack.c.bf16 %v163_v15, %v162_v14  ;;  %v146_v18 = vld [vmem:[%s8276_s20 + $0x270] sm:$0xff]  ;;  %v147_v19 = vld [vmem:[%s8276_s20 + $0x278] sm:$0xff]  ;;  %v66_v21 = vld [vmem:[%s8277_s26 + $0x20] sm:$0xff] }
  0x2a   :  { %5440 = vmatpush3.bf16.msra.mxu1 %v5439_v35  ;;  %v5471_v20 = vpack.c.bf16 %v147_v19, %v146_v18  ;;  %v383_v22 = vld [vmem:[%s8278_s22] sm:$0x1]  ;;  %v390_v34 = vld [vmem:[%s8278_s22 + $0x1] sm:$0xf]  ;;  %v442_v45 = vld [vmem:[%s8253_s7 + $0x8] sm:$0xff] }
  0x2b   :  { %236 = vmatmul.mubr.f32.vlgmr.msra.gmra.mrb[0].mxu0 %v62_v41  ;;  %384 = vst [vmem:[#allocation2] sm:$0x1] %v383_v22  ;;  %v388_v24 = vld [vmem:[%s8278_s22] sm:$0x1]  ;;  %v392_v38 = vrot.slane %v390_v34, 4  ;;  %v443_v54 = vld [vmem:[%s8253_s7 + $0x10] sm:$0xff] }
  0x2c   :  { %5444 = vmatpush3.bf16.msra.mxu0 %v5443_v42  ;;  %375 = vmatprep.mubr.f32.mxu0 %v67_v49  ;;  %389 = vst [vmem:[#allocation2 + $0x8] sm:$0x1] %v388_v24  ;;  %v4423_v26 = vld [vmem:[%s8279_s24] ss:$0 sm:$0xff]  ;;  %v385_v39 = vld [vmem:[%s8278_s22 + $0x1] sm:$0xf] }
  0x2d   :  { %306 = vmatmul.mubr.f32.vlgmr.msra.gmra.mrb[0].mxu1 %v64_v43  ;;  %5446 = vmatprep.subr.bf16.mxu0 %v5445_v44  ;;  %v445_v46 = vld [vmem:[%s8253_s7 + $0x20] sm:$0xff]  ;;  %v444_v49 = vld [vmem:[%s8253_s7 + $0x18] sm:$0xff]  ;;  %v446_v55 = vld [vmem:[%s8253_s7 + $0x28] sm:$0xff] }
  0x2e   :  { %570 = vmatprep.mubr.f32.mxu1 %v6195_v23  ;;  %v441_v47 = vld [vmem:[%s8253_s7] sm:$0xff]  ;;  %v5473_v48 = vpack.c.bf16 %v445_v46, %v442_v45  ;;  %v450_v58 = vld [vmem:[%s8253_s7 + $0x48] sm:$0xff]  ;;  %v456_v3 = vld [vmem:[%s8253_s7 + $0x78] sm:$0xff] }
  0x2f   :  { %v5475_v52 = vpack.c.bf16 %v444_v49, %v441_v47  ;;  %v454_v59 = vld [vmem:[%s8253_s7 + $0x68] sm:$0xff]  ;;  %v457_v60 = vld [vmem:[%s8253_s7 + $0x80] sm:$0xff]  ;;  %v460_v13 = vld [vmem:[%s8253_s7 + $0x98] sm:$0xff] }
  0x30   :  { %5448 = vmatpush3.bf16.msra.mxu0 %v5447_v50  ;;  %v448_v50 = vld [vmem:[%s8253_s7 + $0x38] sm:$0xff]  ;;  %5474 = vmatprep.subr.bf16.mxu1 %v5473_v48  ;;  %v5481_v0 = vpack.c.bf16 %v457_v60, %v454_v59  ;;  %v453_v2 = vld [vmem:[%s8253_s7 + $0x60] sm:$0xff]  ;;  %v463_v14 = vld [vmem:[%s8253_s7 + $0xb0] sm:$0xff] }
  0x31   :  { %5450 = vmatprep.subr.bf16.mxu0 %v5449_v51  ;;  %v451_v51 = vld [vmem:[%s8253_s7 + $0x50] sm:$0xff]  ;;  %5476 = vmatpush1.bf16.msra.mxu1 %v5475_v52  ;;  %v462_v19 = vld [vmem:[%s8253_s7 + $0xa8] sm:$0xff]  ;;  %v469_v24 = vld [vmem:[%s8253_s7 + $0xe0] sm:$0xff] }
  0x32   :  { %v5477_v53 = vpack.c.bf16 %v451_v51, %v448_v50  ;;  %v455_v15 = vld [vmem:[%s8253_s7 + $0x70] sm:$0xff]  ;;  %v466_v22 = vld [vmem:[%s8253_s7 + $0xc8] sm:$0xff]  ;;  %v473_v45 = vld [vmem:[%s8253_s7 + $0x100] sm:$0xff] }
  0x33   :  { %v459_v18 = vld [vmem:[%s8253_s7 + $0x90] sm:$0xff]  ;;  %v476_v47 = vld [vmem:[%s8253_s7 + $0x118] sm:$0xff]  ;;  %v477_v48 = vld [vmem:[%s8253_s7 + $0x120] sm:$0xff] }
  0x34   :  { %5452 = vmatpush3.bf16.msra.mxu0 %v5451_v56  ;;  %v447_v56 = vld [vmem:[%s8253_s7 + $0x30] sm:$0xff]  ;;  %5478 = vmatprep.subr.bf16.mxu1 %v5477_v53  ;;  %v480_v49 = vld [vmem:[%s8253_s7 + $0x138] sm:$0xff]  ;;  %v5525_v50 = vpack.c.bf16 %v476_v47, %v473_v45  ;;  %v6834_v47 = vld [vmem:[%s8257_s4 + $0x8] sm:$0xff] }
  0x35   :  { %5454 = vmatprep.subr.bf16.mxu0 %v5453_v57  ;;  %v5505_v57 = vpack.c.bf16 %v446_v55, %v443_v54  ;;  %v5479_v61 = vpack.c.bf16 %v450_v58, %v447_v56  ;;  %v467_v34 = vld [vmem:[%s8253_s7 + $0xd0] sm:$0xff]  ;;  %v5499_v51 = vpack.c.bf16 %v480_v49, %v477_v48  ;;  %v484_v52 = vld [vmem:[%s8253_s7 + $0x158] sm:$0xff]  ;;  %v482_v56 = vld [vmem:[%s8253_s7 + $0x148] sm:$0xff] }
  0x36   :  { %v487_v53 = vld [vmem:[%s8253_s7 + $0x170] sm:$0xff]  ;;  %v486_v58 = vld [vmem:[%s8253_s7 + $0x168] sm:$0xff]  ;;  %v6839_v48 = vld [vmem:[%s8257_s4] sm:$0xff] }
  0x37   :  { %5480 = vmatpush1.bf16.msra.mxu1 %v5479_v61  ;;  %v479_v54 = vld [vmem:[%s8253_s7 + $0x130] sm:$0xff]  ;;  %v5501_v55 = vpack.c.bf16 %v487_v53, %v484_v52  ;;  %v485_v61 = vld [vmem:[%s8253_s7 + $0x160] sm:$0xff] }
  0x38   :  { %5456 = vmatpush3.bf16.msra.mxu0 %v5455_v62  ;;  %v449_v62 = vld [vmem:[%s8253_s7 + $0x40] sm:$0xff]  ;;  %5482 = vmatprep.subr.bf16.mxu1 %v5481_v0  ;;  %v5529_v59 = vpack.c.bf16 %v482_v56, %v479_v54 }
  0x39   :  { %5458 = vmatprep.subr.bf16.mxu0 %v5457_v63  ;;  %v452_v63 = vld [vmem:[%s8253_s7 + $0x58] sm:$0xff] }
  0x3a   :  { %v5509_v1 = vpack.c.bf16 %v452_v63, %v449_v62  ;;  %v488_v62 = vld [vmem:[%s8253_s7 + $0x178] sm:$0xff] }
  0x3b   :  { %v5533_v63 = vpack.c.bf16 %v488_v62, %v485_v61 }
  0x3c   :  { %5460 = vmatpush3.bf16.msra.mxu0 %v5459_v4  ;;  %v5483_v4 = vpack.c.bf16 %v456_v3, %v453_v2 }
  0x3d   :  { %5462 = vmatprep.subr.bf16.mxu0 %v5461_v5 }
  0x3e   :  { %5484 = vmatpush1.bf16.msra.mxu1 %v5483_v4 }
  0x40   :  { %5464 = vmatpush3.bf16.msra.mxu0 %v5463_v10 }
  0x41   :  { %5466 = vmatprep.subr.bf16.mxu0 %v5465_v11 }
  0x44   :  { %5468 = vmatpush3.bf16.msra.mxu0 %v5467_v16  ;;  %v5485_v16 = vpack.c.bf16 %v463_v14, %v460_v13 }
  0x45   :  { %5470 = vmatprep.subr.bf16.mxu0 %v5469_v17  ;;  %v458_v17 = vld [vmem:[%s8253_s7 + $0x88] sm:$0xff] }
  0x46   :  { %5486 = vmatprep.subr.bf16.mxu1 %v5485_v16 }
  0x48   :  { %5472 = vmatpush3.bf16.msra.mxu0 %v5471_v20  ;;  %v5513_v20 = vpack.c.bf16 %v458_v17, %v455_v15 }
  0x49   :  { %5506 = vmatprep.subr.bf16.mxu0 %v5505_v57 }
  0x4b   :  { %376 = vmatmul.mubr.f32.vlgmr.msra.gmra.mrb[2].mxu0 %v66_v21  ;;  %v5487_v21 = vpack.c.bf16 %v462_v19, %v459_v18  ;;  %v491_v18 = vlaneseq }
  0x4c   :  { %5508 = vmatpush3.bf16.msra.mxu0 %v5505_v57  ;;  %v483_v57 = vld [vmem:[%s8253_s7 + $0x150] sm:$0xff] }
  0x4d   :  { %5510 = vmatprep.subr.bf16.mxu0 %v5509_v1  ;;  %5488 = vmatpush1.bf16.msra.mxu1 %v5487_v21  ;;  %v5503_v60 = vpack.c.bf16 %v486_v58, %v483_v57  ;;  %v6792_v19 = vshrl.u32 %v491_v18, 7 }
  0x4f   :  { %v6802_v21 = vsub.s32 2, %v6792_v19 }
  0x50   :  { %5512 = vmatpush3.bf16.msra.mxu0 %v5509_v1 }
  0x51   :  { %5514 = vmatprep.subr.bf16.mxu0 %v5513_v20 }
  0x54   :  { %5516 = vmatpush3.bf16.msra.mxu0 %v5513_v20  ;;  %v489_v20 = vld [vmem:[%s8256_s8] sm:$0x7] }
  0xfe   :  { %v4734_v25 = vpop.f32.mrb[0].mxu0 }
  0xff   :  { %v4735_v27 = vpop.f32.mrb[1].mxu0 }
 0x100   :  { %v4769_v28 = vpop.f32.mrb[0].mxu1  ;;  %v4736_v29 = vadd.f32 %v4735_v27, %v4734_v25  ;;  %v461_v25 = vld [vmem:[%s8253_s7 + $0xa0] sm:$0xff]  ;;  %v464_v27 = vld [vmem:[%s8253_s7 + $0xb8] sm:$0xff] }
 0x101   :  { %v4770_v30 = vpop.f32.mrb[1].mxu1 }
 0x102   :  { %v4771_v31 = vadd.f32 %v4770_v30, %v4769_v28  ;;  %v238_v32 = vadd.f32 %v4736_v29, %v4423_v26  ;;  %v5489_v26 = vpack.c.bf16 %v469_v24, %v466_v22  ;;  %v465_v28 = vld [vmem:[%s8253_s7 + $0xc0] sm:$0xff]  ;;  %v468_v29 = vld [vmem:[%s8253_s7 + $0xd8] sm:$0xff]  ;;  %v5517_v30 = vpack.c.bf16 %v464_v27, %v461_v25 }
 0x103   :  { %v6805_v22 = vsub.s32 1, %v6792_v19  ;;  %v502_v27 = vrot.slane %v489_v20, %v6802_v21 }
 0x104   :  { %v308_v33 = vadd.f32 %v4771_v31, %v238_v32  ;;  %v5491_v31 = vpack.c.bf16 %v468_v29, %v465_v28  ;;  %5490 = vmatprep.subr.bf16.mxu1 %v5489_v26  ;;  %5518 = vmatprep.subr.bf16.mxu0 %v5517_v30  ;;  %v472_v32 = vld [vmem:[%s8253_s7 + $0xf8] sm:$0xff] }
 0x105   :  { %5520 = vmatpush3.bf16.msra.mxu0 %v5517_v30  ;;  %v498_v28 = vrot.slane %v489_v20, %v6805_v22 }
 0x106   :  { %5492 = vmatpush1.bf16.msra.mxu1 %v5491_v31 }
 0x11e   :  { %v4804_v35 = vpop.f32.mrb[2].mxu0 }
 0x11f   :  { %v4805_v36 = vpop.f32.mrb[3].mxu0 }
 0x120   :  { %v4806_v37 = vadd.f32 %v4805_v36, %v4804_v35  ;;  %v470_v36 = vld [vmem:[%s8253_s7 + $0xe8] sm:$0xff] }
 0x122   :  { %v378_v40 = vadd.f32 %v4806_v37, %v308_v33  ;;  %v475_v33 = vld [vmem:[%s8253_s7 + $0x110] sm:$0xff] }
 0x123   :  { %v5493_v35 = vpack.c.bf16 %v475_v33, %v472_v32  ;;  %v471_v37 = vld [vmem:[%s8253_s7 + $0xf0] sm:$0xff] }
 0x124   :  { %v386_v41 = vadd.f32 %v385_v39, %v378_v40  ;;  %v394_v42 = vadd.f32 %v392_v38, %v378_v40  ;;  %v474_v38 = vld [vmem:[%s8253_s7 + $0x108] sm:$0xff]  ;;  %v5521_v39 = vpack.c.bf16 %v470_v36, %v467_v34 }
 0x125   :  { %v5495_v40 = vpack.c.bf16 %v474_v38, %v471_v37  ;;  %5494 = vmatprep.subr.bf16.mxu1 %v5493_v35 }
 0x126   :  { %387 = vst [vmem:[#allocation2 + $0x1] sm:$0xf] %v386_v41  ;;  %395 = vst [vmem:[#allocation2 + $0x5] sm:$0xf0] %v394_v42  ;;  %v478_v41 = vld [vmem:[%s8253_s7 + $0x128] sm:$0xff]  ;;  %v481_v42 = vld [vmem:[%s8253_s7 + $0x140] sm:$0xff]  ;;  %5522 = vmatprep.subr.bf16.mxu0 %v5521_v39 }
 0x127   :  { %v5497_v46 = vpack.c.bf16 %v481_v42, %v478_v41  ;;  %5496 = vmatpush1.bf16.msra.mxu1 %v5495_v40  ;;  %5524 = vmatpush3.bf16.msra.mxu0 %v5521_v39 }
 0x128   :  { %5526 = vmatprep.subr.bf16.mxu0 %v5525_v50 }
 0x129   :  { %5498 = vmatprep.subr.bf16.mxu1 %v5497_v46 }
 0x12b   :  { %5500 = vmatpush1.bf16.msra.mxu1 %v5499_v51  ;;  %5528 = vmatpush3.bf16.msra.mxu0 %v5525_v50 }
 0x12c   :  { %5502 = vmatprep.subr.bf16.mxu1 %v5501_v55  ;;  %5530 = vmatprep.subr.bf16.mxu0 %v5529_v59 }
 0x12d   :  { %v6623_v43 = vld [vmem:[#allocation2] sm:$0xff]  ;;  %v6626_v44 = vld [vmem:[#allocation2 + $0x8] sm:$0xff] }
 0x12e   :  { %402 = vadd.xlane.f32.xlu0 %v6623_v43 }
 0x12f   :  { %5504 = vmatpush1.bf16.msra.mxu1 %v5503_v60  ;;  %5532 = vmatpush3.bf16.msra.mxu0 %v5529_v59 }
 0x130   :  { %5534 = vmatprep.subr.bf16.mxu0 %v5533_v63 }
 0x132   :  { %404 = vadd.xlane.f32.xlu0 %v6626_v44 }
 0x133   :  { %5536 = vmatpush3.bf16.msra.mxu0 %v5533_v63 }
 0x1bb   :  { %v403_v5 = vpop.xlane.xlu0 %402 }
 0x1bc   :  { %v407_v6 = vmul.f32 0.0078125, %v403_v5 }
 0x1be   :  { %v6678_v7 = vsub.f32 %v6623_v43, %v407_v6 }
 0x1bf   :  { %v405_v8 = vpop.xlane.xlu0 %404 }
 0x1c0   :  { %v408_v9 = vmul.f32 0.0078125, %v405_v8  ;;  %v411_v10 = vmul.f32 %v6678_v7, %v6678_v7  ;;  %v4424_v8 = vld [vmem:[%s8254_s5] ss:$0 sm:$0xff] }
 0x1c2   :  { %v6683_v11 = vsub.f32 %v6626_v44, %v408_v9  ;;  %413 = vadd.xlane.f32.xlu1 %v411_v10  ;;  %v4425_v10 = vld [vmem:[%s8255_s6] ss:$0 sm:$0xff] }
 0x1c4   :  { %v412_v12 = vmul.f32 %v6683_v11, %v6683_v11 }
 0x1c6   :  { %415 = vadd.xlane.f32.xlu1 %v412_v12 }
 0x24f   :  { %v414_v0 = vpop.xlane.xlu1 %413 }
 0x250   :  { %v417_v1 = vmul.f32 0.0078125, %v414_v0 }
 0x252   :  { %v419_v2 = vadd.f32 1e-06, %v417_v1 }
 0x253   :  { %v416_v3 = vpop.xlane.xlu1 %415 }
 0x254   :  { %6077 = vrsqrt.f32 %v419_v2  ;;  %v418_v4 = vmul.f32 0.0078125, %v416_v3 }
 0x256   :  { %v420_v5 = vadd.f32 1e-06, %v418_v4 }
 0x258   :  { %6079 = vrsqrt.f32 %v420_v5 }
 0x25e   :  { %v6078_v6 = vpop.eup %6077 }
 0x25f   :  { %v423_v9 = vmul.f32 %v6078_v6, %v6678_v7  ;;  %v6795_v7 = vsub.s32 0, %v6792_v19 }
 0x261   :  { %v431_v12 = vmul.f32 %v4424_v8, %v423_v9 }
 0x262   :  { %v6080_v13 = vpop.eup %6079 }
 0x263   :  { %v439_v14 = vadd.f32 %v4425_v10, %v431_v12  ;;  %v424_v15 = vmul.f32 %v6080_v13, %v6683_v11  ;;  %v494_v11 = vrot.slane %v489_v20, %v6795_v7 }
 0x265   :  { %571 = vmatmul.mubr.f32.vlgmr.msra.gmra.mrb[2].mxu1 %v439_v14  ;;  %5139 = vmatprep.mubr.f32.mxu0 %v439_v14  ;;  %v432_v16 = vmul.f32 %v4424_v8, %v424_v15 }
 0x266   :  { %576 = vmatprep.mubr.f32.mxu1 %v6195_v23 }
 0x267   :  { %v440_v17 = vadd.f32 %v4425_v10, %v432_v16 }
 0x269   :  { %577 = vmatmul.mubr.f32.gmra.mrb[4].mxu1 %v440_v17  ;;  %5140 = vmatmul.mubr.f32.vlgmr.msra.gmra.mrb[4].mxu0 %v440_v17 }
 0x338   :  { %v572_v24 = vpop.f32.mrb[2].mxu1 }
 0x339   :  { %v573_v25 = vadd.f32 %v572_v24, %v494_v11  ;;  %v574_v26 = vpop.f32.mrb[3].mxu1 }
 0x33a   :  { %v575_v35 = vadd.f32 %v574_v26, %v498_v28 }
 0x33b   :  { %v6809_v29 = vmul.f32 0.17677669, %v573_v25 }
 0x33c   :  { %v578_v30 = vpop.f32.mrb[4].mxu1  ;;  %v5141_v31 = vpop.f32.mrb[4].mxu0 }
 0x33d   :  { %v655_v32 = vadd.f32 %v5141_v31, %v502_v27  ;;  %v580_v33 = vpop.f32.mrb[5].mxu1  ;;  %v649_v34 = vpop.f32.mrb[5].mxu0  ;;  %5146 = vmatprep.mubr.msk.f32.mxu1 %vm660_vm0, %v6809_v29  ;;  %v579_v45 = vadd.f32 %v578_v30, %v494_v11 }
 0x33e   :  { %v581_v36 = vadd.f32 %v580_v33, %v498_v28  ;;  %v650_v37 = vadd.f32 %v649_v34, %v502_v27 }
 0x33f   :  { %v6827_v46 = vmul.f32 0.17677669, %v579_v45 }
 0x340   :  { %v5537_v39 = vpack.c.bf16 %v581_v36, %v575_v35  ;;  %v5543_v40 = vpack.c.bf16 %v655_v32, %v650_v37  ;;  %v6819_v41 = vpack.i.bf16 %v581_v36, %v575_v35  ;;  %v6821_v42 = vpack.i.bf16 %v655_v32, %v650_v37 }
 0x342   :  { %5539 = vmatprep.subr.msk.bf16.mxu1 %vm6815_vm1, %v5537_v39 }
 0x343   :  { %5542 = vmatpush3.bf16.xpose.msk.msra.mxu1 %vm6815_vm1, %v5537_v39 }
 0x344   :  { %5544 = vmatprep.subr.bf16.mxu1 %v5543_v40 }
 0x34a   :  { %5147 = vmatmul.mubr.msk.f32.vlgmr.msra.gmra.mrb[6].mxu1 %vm660_vm0, %v6827_v46 }
 0x34b   :  { %5546 = vmatpush3.bf16.msra.mxu1 %v5543_v40 }
 0x41d   :  { %v5148_v49 = vpop.f32.mrb[6].mxu1 }
 0x41e   :  { %v745_v50 = vadd.f32 %v5148_v49, %v6834_v47  ;;  %v739_v51 = vpop.f32.mrb[7].mxu1 }
 0x41f   :  { %v740_v52 = vadd.f32 %v739_v51, %v6839_v48 }
 0x420   :  { %v752_v53 = vsel %vm748_vm2, %v745_v50, -inf }
 0x421   :  { %753 = vmax.xlane.f32.xlu1 %v752_v53  ;;  %v749_v54 = vsel %vm748_vm2, %v740_v52, -inf }
 0x422   :  { %750 = vmax.xlane.f32.xlu0 %v749_v54 }
 0x4ae   :  { %v754_v55 = vpop.xlane.xlu1 %753 }
 0x4af   :  { %v756_v56 = vsub.f32 %v745_v50, %v754_v55  ;;  %v751_v57 = vpop.xlane.xlu0 %750 }
 0x4b0   :  { %v755_v58 = vsub.f32 %v740_v52, %v751_v57 }
 0x4b1   :  { %v759_v59 = vmul.f32 1.442695, %v756_v56 }
 0x4b2   :  { %v757_v60 = vmul.f32 1.442695, %v755_v58 }
 0x4b3   :  { %6081 = vpow2.f32 %v759_v59 }
 0x4b4   :  { %6083 = vpow2.f32 %v757_v60 }
 0x4bd   :  { %v6082_v61 = vpop.eup %6081 }
 0x4be   :  { %v6084_v62 = vpop.eup %6083  ;;  %v764_v63 = vsel %vm748_vm2, %v6082_v61, 0.0 }
 0x4bf   :  { %765 = vadd.xlane.f32.xlu1 %v764_v63  ;;  %v761_v0 = vsel %vm748_vm2, %v6084_v62, 0.0 }
 0x4c0   :  { %762 = vadd.xlane.f32.xlu0 %v761_v0 }
 0x4d0   :  { %856 = vrot.lane.b32.xlu1 %v6809_v29, %s6196_s1 }
 0x4d4   :  { %858 = vrot.lane.b32.xlu1 %v6827_v46, %s6196_s1 }
 0x4d6   :  { %6018 = vrot.lane.b32.xlu0 %v6819_v41, %s6196_s1 }
 0x4d8   :  { %6023 = vrot.lane.b32.xlu1 %v6819_v41, %s6197_s30 }
 0x4da   :  { %1224 = vrot.lane.b32.xlu0 %v6809_v29, %s6197_s30 }
 0x4dc   :  { %1226 = vrot.lane.b32.xlu1 %v6827_v46, %s6197_s30 }
 0x54c   :  { %v766_v1 = vpop.xlane.xlu1 %765 }
 0x54d   :  { %6085 = vrcp.f32 %v766_v1  ;;  %v763_v2 = vpop.xlane.xlu0 %762 }
 0x54e   :  { %6087 = vrcp.f32 %v763_v2 }
 0x550   :  { %v857_v3 = vpop.permute.xlu1 %856 }
 0x551   :  { %v6019_v4 = vpop.permute.xlu0 %6018 }
 0x552   :  { %v6021_v5 = vunpack.i.h.bf16 %v6019_v4  ;;  %v6020_v6 = vunpack.i.l.bf16 %v6019_v4 }
 0x554   :  { %v5547_v8 = vpack.c.bf16 %v6021_v5, %v6020_v6  ;;  %v859_v9 = vpop.permute.xlu1 %858 }
 0x555   :  { %v1225_v10 = vpop.permute.xlu0 %1224 }
 0x556   :  { %5549 = vmatprep.subr.msk.bf16.mxu1 %vm6815_vm1, %v5547_v8  ;;  %5196 = vmatprep.mubr.msk.f32.mxu0 %vm660_vm0, %v1225_v10 }
 0x557   :  { %v6086_v12 = vpop.eup %6085 }
 0x558   :  { %v6088_v13 = vpop.eup %6087  ;;  %v6024_v14 = vpop.permute.xlu1 %6023  ;;  %v770_v18 = vmul.f32 %v6086_v12, %v6082_v61 }
 0x559   :  { %v6026_v15 = vunpack.i.h.bf16 %v6024_v14  ;;  %v6025_v16 = vunpack.i.l.bf16 %v6024_v14  ;;  %v769_v17 = vmul.f32 %v6088_v13, %v6084_v62 }
 0x55b   :  { %v5573_v20 = vpack.c.bf16 %v6026_v15, %v6025_v16  ;;  %5153 = vmatprep.mubr.msk.f32.mxu1 %vm748_vm2, %v769_v17 }
 0x55c   :  { %5154 = vmatmul.mubr.msk.f32.vlgmr.msra.gmra.mrb[8].mxu1 %vm748_vm2, %v770_v18  ;;  %v1227_v11 = vpop.permute.xlu1 %1226 }
 0x55d   :  { %5552 = vmatpush3.bf16.xpose.msk.msra.mxu1 %vm6815_vm1, %v5547_v8  ;;  %5160 = vmatprep.mubr.msk.f32.mxu1 %vm660_vm0, %v857_v3 }
 0x55e   :  { %5575 = vmatprep.subr.msk.bf16.mxu0 %vm6815_vm1, %v5573_v20 }
 0x55f   :  { %5578 = vmatpush3.bf16.xpose.msk.msra.mxu0 %vm6815_vm1, %v5573_v20 }
 0x564   :  { %5161 = vmatmul.mubr.msk.f32.vlgmr.msra.gmra.mrb[10].mxu1 %vm660_vm0, %v859_v9 }
 0x566   :  { %5197 = vmatmul.mubr.msk.f32.vlgmr.msra.gmra.mrb[6].mxu0 %vm660_vm0, %v1227_v11 }
 0x62f   :  { %v6873_v24 = vpop.f32.mrb[8].mxu1 }
 0x630   :  { %v6875_v25 = vpop.f32.mrb[9].mxu1 }
 0x637   :  { %v5162_v26 = vpop.f32.mrb[10].mxu1 }
 0x638   :  { %v944_v27 = vadd.f32 %v5162_v26, %v6834_v47  ;;  %v938_v28 = vpop.f32.mrb[11].mxu1 }
 0x639   :  { %v939_v30 = vadd.f32 %v938_v28, %v6839_v48  ;;  %v5198_v31 = vpop.f32.mrb[6].mxu0 }
 0x63a   :  { %v1306_v32 = vpop.f32.mrb[7].mxu0  ;;  %v950_v33 = vsel %vm748_vm2, %v944_v27, -inf  ;;  %v1312_v35 = vadd.f32 %v5198_v31, %v6834_v47  ;;  %v1060_v31 = vld [vmem:[%s8258_s9 + $0x30] sm:$0xff] }
 0x63b   :  { %951 = vmax.xlane.f32.xlu1 %v950_v33  ;;  %v947_v34 = vsel %vm748_vm2, %v939_v30, -inf  ;;  %v1307_v58 = vadd.f32 %v1306_v32, %v6839_v48  ;;  %v1061_v32 = vld [vmem:[%s8258_s9 + $0x38] sm:$0xff] }
 0x63c   :  { %948 = vmax.xlane.f32.xlu0 %v947_v34  ;;  %v1318_v36 = vsel %vm748_vm2, %v1312_v35, -inf  ;;  %v5561_v33 = vpack.c.bf16 %v1061_v32, %v1060_v31  ;;  %v852_v34 = vld [vmem:[%s8258_s9] sm:$0xff] }
 0x63d   :  { %v1315_v59 = vsel %vm748_vm2, %v1307_v58, -inf }
 0x64c   :  { %6033 = vrot.lane.b32.xlu1 %v6819_v41, %s6198_s21 }
 0x650   :  { %1511 = vrot.lane.b32.xlu1 %v6809_v29, %s6198_s21 }
 0x654   :  { %1513 = vrot.lane.b32.xlu1 %v6827_v46, %s6198_s21 }
 0x678   :  { %1319 = vmax.xlane.f32.xlu1 %v1318_v36 }
 0x6c8   :  { %v952_v37 = vpop.xlane.xlu1 %951 }
 0x6c9   :  { %v954_v39 = vsub.f32 %v944_v27, %v952_v37  ;;  %v949_v40 = vpop.xlane.xlu0 %948 }
 0x6ca   :  { %v953_v45 = vsub.f32 %v939_v30, %v949_v40  ;;  %v1059_v30 = vld [vmem:[%s8258_s9 + $0x28] sm:$0xff] }
 0x6cb   :  { %v957_v49 = vmul.f32 1.442695, %v954_v39 }
 0x6cc   :  { %v955_v50 = vmul.f32 1.442695, %v953_v45  ;;  %v6034_v51 = vpop.permute.xlu1 %6033 }
 0x6cd   :  { %6089 = vpow2.f32 %v957_v49  ;;  %v6036_v41 = vunpack.i.h.bf16 %v6034_v51  ;;  %v6035_v52 = vunpack.i.l.bf16 %v6034_v51 }
 0x6ce   :  { %6091 = vpow2.f32 %v955_v50 }
 0x6cf   :  { %v5591_v29 = vpack.c.bf16 %v6036_v41, %v6035_v52  ;;  %v854_v52 = vld [vmem:[%s8258_s9 + $0x10] sm:$0xff] }
 0x6d0   :  { %v1512_v53 = vpop.permute.xlu1 %1511 }
 0x6d1   :  { %5593 = vmatprep.subr.msk.bf16.mxu0 %vm6815_vm1, %v5591_v29  ;;  %5221 = vmatprep.mubr.msk.f32.mxu0 %vm660_vm0, %v1512_v53 }
 0x6d2   :  { %5596 = vmatpush3.bf16.xpose.msk.msra.mxu0 %vm6815_vm1, %v5591_v29  ;;  %v855_v29 = vld [vmem:[%s8258_s9 + $0x18] sm:$0xff] }
 0x6d4   :  { %v1514_v54 = vpop.permute.xlu1 %1513 }
 0x6d7   :  { %v6090_v46 = vpop.eup %6089 }
 0x6d8   :  { %v962_v55 = vsel %vm748_vm2, %v6090_v46, 0.0  ;;  %v6092_v56 = vpop.eup %6091 }
 0x6d9   :  { %5222 = vmatmul.mubr.msk.f32.vlgmr.msra.gmra.mrb[8].mxu0 %vm660_vm0, %v1514_v54  ;;  %963 = vadd.xlane.f32.xlu0 %v962_v55  ;;  %v959_v57 = vsel %vm748_vm2, %v6092_v56, 0.0 }
 0x6da   :  { %1999 = vmatprep.mubr.f32.mxu0 %v6195_v23 }
 0x6dd   :  { %960 = vadd.xlane.f32.xlu0 %v959_v57 }
 0x6f3   :  { %6028 = vrot.lane.b32.xlu0 %v6821_v42, %s6196_s1 }
 0x705   :  { %v1320_v6 = vpop.xlane.xlu1 %1319 }
 0x706   :  { %v1322_v8 = vsub.f32 %v1312_v35, %v1320_v6  ;;  %v853_v35 = vld [vmem:[%s8258_s9 + $0x8] sm:$0xff] }
 0x707   :  { %v5565_v36 = vpack.c.bf16 %v853_v35, %v852_v34 }
 0x708   :  { %v1325_v12 = vmul.f32 1.442695, %v1322_v8 }
 0x712   :  { %1316 = vmax.xlane.f32.xlu0 %v1315_v59 }
 0x766   :  { %v964_v60 = vpop.xlane.xlu0 %963 }
 0x767   :  { %6093 = vrcp.f32 %v964_v60 }
 0x76a   :  { %v961_v61 = vpop.xlane.xlu0 %960 }
 0x76b   :  { %6095 = vrcp.f32 %v961_v61 }
 0x76e   :  { %v6029_v62 = vpop.permute.xlu0 %6028 }
 0x76f   :  { %v6031_v63 = vunpack.i.h.bf16 %v6029_v62  ;;  %v6030_v0 = vunpack.i.l.bf16 %v6029_v62 }
 0x771   :  { %v5553_v1 = vpack.c.bf16 %v6031_v63, %v6030_v0  ;;  %v6094_v2 = vpop.eup %6093 }
 0x772   :  { %v968_v5 = vmul.f32 %v6094_v2, %v6090_v46  ;;  %v1424_v2 = vld [vmem:[%s8258_s9 + $0x40] sm:$0xff] }
 0x773   :  { %5554 = vmatprep.subr.bf16.mxu1 %v5553_v1 }
 0x774   :  { %5556 = vmatpush3.bf16.msra.mxu1 %v5553_v1 }
 0x775   :  { %v6096_v3 = vpop.eup %6095 }
 0x776   :  { %v967_v4 = vmul.f32 %v6096_v3, %v6092_v56  ;;  %v5569_v56 = vpack.c.bf16 %v855_v29, %v854_v52  ;;  %v1425_v3 = vld [vmem:[%s8258_s9 + $0x48] sm:$0xff]  ;;  %v1851_v29 = vld [vmem:[%s8260_s13 + $0x10] sm:$0xff] }
 0x778   :  { %5167 = vmatprep.mubr.msk.f32.mxu1 %vm748_vm2, %v967_v4  ;;  %v5583_v4 = vpack.c.bf16 %v1425_v3, %v1424_v2 }
 0x779   :  { %5168 = vmatmul.mubr.msk.f32.vlgmr.msra.gmra.mrb[12].mxu1 %vm748_vm2, %v968_v5  ;;  %v1427_v5 = vld [vmem:[%s8258_s9 + $0x58] sm:$0xff] }
 0x79f   :  { %v1317_v9 = vpop.xlane.xlu0 %1316 }
 0x7a0   :  { %v1321_v10 = vsub.f32 %v1307_v58, %v1317_v9 }
 0x7a2   :  { %v1323_v13 = vmul.f32 1.442695, %v1321_v10 }
 0x7a4   :  { %6097 = vpow2.f32 %v1323_v13 }
 0x7a5   :  { %6099 = vpow2.f32 %v1325_v12 }
 0x7ac   :  { %v5223_v14 = vpop.f32.mrb[8].mxu0 }
 0x7ad   :  { %v1593_v15 = vpop.f32.mrb[9].mxu0  ;;  %v1599_v11 = vadd.f32 %v5223_v14, %v6834_v47 }
 0x7ae   :  { %v6904_v16 = vpop.eup %6097  ;;  %v1594_v17 = vadd.f32 %v1593_v15, %v6839_v48  ;;  %v1058_v48 = vld [vmem:[%s8258_s9 + $0x20] sm:$0xff]  ;;  %v1712_v15 = vld [vmem:[%s8258_s9 + $0x68] sm:$0xff] }
 0x7af   :  { %v1327_v18 = vsel %vm748_vm2, %v6904_v16, 0.0  ;;  %v6909_v20 = vpop.eup %6099  ;;  %v1605_v28 = vsel %vm748_vm2, %v1599_v11, -inf  ;;  %v5557_v47 = vpack.c.bf16 %v1059_v30, %v1058_v48 }
 0x7b0   :  { %1328 = vadd.xlane.f32.xlu0 %v1327_v18  ;;  %v1602_v26 = vsel %vm748_vm2, %v1594_v17, -inf  ;;  %v1330_v27 = vsel %vm748_vm2, %v6909_v20, 0.0 }
 0x7b1   :  { %1603 = vmax.xlane.f32.xlu1 %v1602_v26  ;;  %5558 = vmatprep.subr.bf16.mxu1 %v5557_v47 }
 0x7b2   :  { %5560 = vmatpush3.bf16.msra.mxu1 %v5557_v47 }
 0x7b3   :  { %5562 = vmatprep.subr.bf16.mxu1 %v5561_v33 }
 0x7b4   :  { %1331 = vadd.xlane.f32.xlu0 %v1330_v27  ;;  %v1713_v27 = vld [vmem:[%s8258_s9 + $0x70] sm:$0xff] }
 0x7b5   :  { %1606 = vmax.xlane.f32.xlu1 %v1605_v28  ;;  %v1714_v28 = vld [vmem:[%s8258_s9 + $0x78] sm:$0xff] }
 0x7b6   :  { %5564 = vmatpush3.bf16.msra.mxu1 %v5561_v33  ;;  %v5605_v30 = vpack.c.bf16 %v1714_v28, %v1713_v27  ;;  %v4458_v33 = vld [vmem:[%s8259_s10] ss:$0 sm:$0xff]  ;;  %v1878_v27 = vld [vmem:[%s8260_s13 + $0xe8] sm:$0xff]  ;;  %v1876_v28 = vld [vmem:[%s8260_s13 + $0xd8] sm:$0xff] }
 0x7b7   :  { %5566 = vmatprep.subr.bf16.mxu1 %v5565_v36 }
 0x7ca   :  { %6038 = vrot.lane.b32.xlu0 %v6821_v42, %s6197_s30 }
 0x83d   :  { %v1329_v40 = vpop.xlane.xlu0 %1328 }
 0x83e   :  { %v1604_v37 = vpop.xlane.xlu1 %1603 }
 0x83f   :  { %v1608_v39 = vsub.f32 %v1594_v17, %v1604_v37 }
 0x841   :  { %v1610_v45 = vmul.f32 1.442695, %v1608_v39  ;;  %v1332_v41 = vpop.xlane.xlu0 %1331 }
 0x842   :  { %v1607_v49 = vpop.xlane.xlu1 %1606 }
 0x843   :  { %6101 = vpow2.f32 %v1610_v45  ;;  %v1609_v50 = vsub.f32 %v1599_v11, %v1607_v49  ;;  %v1854_v45 = vld [vmem:[%s8260_s13 + $0x28] sm:$0xff]  ;;  %v1856_v49 = vld [vmem:[%s8260_s13 + $0x38] sm:$0xff] }
 0x845   :  { %v1612_v51 = vmul.f32 1.442695, %v1609_v50  ;;  %v6039_v53 = vpop.permute.xlu0 %6038  ;;  %v1849_v50 = vld [vmem:[%s8260_s13] sm:$0xff] }
 0x846   :  { %v6041_v58 = vunpack.i.h.bf16 %v6039_v53  ;;  %v6040_v59 = vunpack.i.l.bf16 %v6039_v53  ;;  %v1855_v53 = vld [vmem:[%s8260_s13 + $0x30] sm:$0xff] }
 0x847   :  { %6103 = vpow2.f32 %v1612_v51  ;;  %v1853_v51 = vld [vmem:[%s8260_s13 + $0x20] sm:$0xff] }
 0x848   :  { %6105 = vrcp.f32 %v1329_v40  ;;  %v5579_v63 = vpack.c.bf16 %v6041_v58, %v6040_v59  ;;  %v1850_v40 = vld [vmem:[%s8260_s13 + $0x8] sm:$0xff]  ;;  %v5611_v52 = vpack.c.bf16 %v1853_v51, %v1849_v50  ;;  %v1881_v50 = vld [vmem:[%s8260_s13 + $0x100] sm:$0xff] }
 0x849   :  { %6107 = vrcp.f32 %v1332_v41  ;;  %v1885_v51 = vld [vmem:[%s8260_s13 + $0x120] sm:$0xff] }
 0x84c   :  { %v5169_v46 = vpop.f32.mrb[12].mxu1 }
 0x84d   :  { %v6102_v54 = vpop.eup %6101  ;;  %v1049_v55 = vpop.f32.mrb[13].mxu1 }
 0x84e   :  { %5178 = vmatprep.mubr.msk.f32.mxu1 %vm660_vm0, %v1049_v55  ;;  %v1614_v57 = vsel %vm748_vm2, %v6102_v54, 0.0  ;;  %v1862_v55 = vld [vmem:[%s8260_s13 + $0x68] sm:$0xff] }
 0x84f   :  { %1615 = vadd.xlane.f32.xlu1 %v1614_v57  ;;  %5179 = vmatmul.mubr.msk.f32.vlgmr.msra.gmra.mrb[14].mxu1 %vm660_vm0, %v5169_v46  ;;  %v1858_v46 = vld [vmem:[%s8260_s13 + $0x48] sm:$0xff]  ;;  %v1864_v57 = vld [vmem:[%s8260_s13 + $0x78] sm:$0xff] }
 0x850   :  { %5568 = vmatpush3.bf16.msra.mxu1 %v5565_v36  ;;  %5189 = vmatprep.mubr.msk.f32.mxu1 %vm660_vm0, %v6875_v25  ;;  %v5613_v58 = vpack.c.bf16 %v1862_v55, %v1858_v46  ;;  %v1894_v55 = vld [vmem:[%s8260_s13 + $0x168] sm:$0xff] }
 0x851   :  { %v6104_v60 = vpop.eup %6103  ;;  %5570 = vmatprep.subr.bf16.mxu1 %v5569_v56 }
 0x852   :  { %v1617_v61 = vsel %vm748_vm2, %v6104_v60, 0.0  ;;  %v6106_v62 = vpop.eup %6105 }
 0x853   :  { %1618 = vadd.xlane.f32.xlu1 %v1617_v61  ;;  %v6108_v0 = vpop.eup %6107  ;;  %v1335_v1 = vmul.f32 %v6106_v62, %v6904_v16  ;;  %v1861_v61 = vld [vmem:[%s8260_s13 + $0x60] sm:$0xff]  ;;  %v1859_v62 = vld [vmem:[%s8260_s13 + $0x50] sm:$0xff] }
 0x854   :  { %5572 = vmatpush3.bf16.msra.mxu1 %v5569_v56  ;;  %v1336_v25 = vmul.f32 %v6108_v0, %v6909_v20  ;;  %v1860_v56 = vld [vmem:[%s8260_s13 + $0x58] sm:$0xff]  ;;  %v1863_v0 = vld [vmem:[%s8260_s13 + $0x70] sm:$0xff] }
 0x855   :  { %5580 = vmatprep.subr.bf16.mxu1 %v5579_v63  ;;  %v5645_v59 = vpack.c.bf16 %v1864_v57, %v1860_v56  ;;  %v5647_v2 = vpack.c.bf16 %v1863_v0, %v1859_v62  ;;  %v1892_v56 = vld [vmem:[%s8260_s13 + $0x158] sm:$0xff]  ;;  %v1895_v0 = vld [vmem:[%s8260_s13 + $0x170] sm:$0xff] }
 0x857   :  { %5190 = vmatmul.mubr.msk.f32.vlgmr.msra.gmra.mrb[14].mxu1 %vm660_vm0, %v6873_v24  ;;  %v1426_v24 = vld [vmem:[%s8258_s9 + $0x50] sm:$0xff] }
 0x858   :  { %5582 = vmatpush3.bf16.msra.mxu1 %v5579_v63  ;;  %5203 = vmatprep.mubr.msk.f32.mxu1 %vm748_vm2, %v1335_v1  ;;  %v5587_v6 = vpack.c.bf16 %v1427_v5, %v1426_v24  ;;  %v1866_v1 = vld [vmem:[%s8260_s13 + $0x88] sm:$0xff]  ;;  %v1872_v24 = vld [vmem:[%s8260_s13 + $0xb8] sm:$0xff]  ;;  %v1865_v5 = vld [vmem:[%s8260_s13 + $0x80] sm:$0xff] }
 0x859   :  { %5584 = vmatprep.subr.bf16.mxu1 %v5583_v4 }
 0x85b   :  { %5204 = vmatmul.mubr.msk.f32.vlgmr.msra.gmra.mrb[16].mxu1 %vm748_vm2, %v1336_v25  ;;  %v1870_v25 = vld [vmem:[%s8260_s13 + $0xa8] sm:$0xff] }
 0x85c   :  { %5586 = vmatpush3.bf16.msra.mxu1 %v5583_v4  ;;  %v5617_v3 = vpack.c.bf16 %v1870_v25, %v1866_v1  ;;  %v1868_v4 = vld [vmem:[%s8260_s13 + $0x98] sm:$0xff]  ;;  %v1898_v1 = vld [vmem:[%s8260_s13 + $0x188] sm:$0xff] }
 0x85d   :  { %5588 = vmatprep.subr.bf16.mxu1 %v5587_v6 }
 0x860   :  { %5590 = vmatpush3.bf16.msra.mxu1 %v5587_v6  ;;  %v5649_v6 = vpack.c.bf16 %v1872_v24, %v1868_v4  ;;  %v1904_v4 = vld [vmem:[%s8260_s13 + $0x1b8] sm:$0xff] }
 0x864   :  { %6043 = vrot.lane.b32.xlu1 %v6821_v42, %s6198_s21  ;;  %v1711_v42 = vld [vmem:[%s8258_s9 + $0x60] sm:$0xff] }
 0x865   :  { %v5601_v20 = vpack.c.bf16 %v1712_v15, %v1711_v42 }
 0x8dc   :  { %v1616_v8 = vpop.xlane.xlu1 %1615 }
 0x8dd   :  { %6109 = vrcp.f32 %v1616_v8  ;;  %v1869_v8 = vld [vmem:[%s8260_s13 + $0xa0] sm:$0xff] }
 0x8e0   :  { %v1619_v9 = vpop.xlane.xlu1 %1618 }
 0x8e1   :  { %6111 = vrcp.f32 %v1619_v9  ;;  %v1867_v9 = vld [vmem:[%s8260_s13 + $0x90] sm:$0xff] }
 0x8e4   :  { %v6044_v10 = vpop.permute.xlu1 %6043 }
 0x8e5   :  { %v6046_v12 = vunpack.i.h.bf16 %v6044_v10  ;;  %v6045_v13 = vunpack.i.l.bf16 %v6044_v10  ;;  %v1871_v10 = vld [vmem:[%s8260_s13 + $0xb0] sm:$0xff] }
 0x8e7   :  { %v5597_v14 = vpack.c.bf16 %v6046_v12, %v6045_v13  ;;  %v6110_v16 = vpop.eup %6109  ;;  %v5619_v12 = vpack.c.bf16 %v1869_v8, %v1865_v5  ;;  %v5651_v13 = vpack.c.bf16 %v1871_v10, %v1867_v9  ;;  %v1901_v8 = vld [vmem:[%s8260_s13 + $0x1a0] sm:$0xff]  ;;  %v1899_v9 = vld [vmem:[%s8260_s13 + $0x190] sm:$0xff] }
 0x8e8   :  { %v1622_v26 = vmul.f32 %v6110_v16, %v6102_v54  ;;  %v5643_v54 = vpack.c.bf16 %v1855_v53, %v1851_v29  ;;  %v1883_v29 = vld [vmem:[%s8260_s13 + $0x110] sm:$0xff] }
 0x8e9   :  { %5598 = vmatprep.subr.bf16.mxu1 %v5597_v14  ;;  %v1887_v53 = vld [vmem:[%s8260_s13 + $0x130] sm:$0xff] }
 0x8ea   :  { %v5659_v46 = vpack.c.bf16 %v1887_v53, %v1883_v29  ;;  %v2161_v53 = vld [vmem:[%s8261_s15] sm:$0xff] }
 0x8eb   :  { %v6112_v11 = vpop.eup %6111 }
 0x8ec   :  { %v1623_v48 = vmul.f32 %v6112_v11, %v6104_v60  ;;  %v1857_v60 = vld [vmem:[%s8260_s13 + $0x40] sm:$0xff] }
 0x8ed   :  { %v5615_v63 = vpack.c.bf16 %v1861_v61, %v1857_v60  ;;  %v1893_v60 = vld [vmem:[%s8260_s13 + $0x160] sm:$0xff] }
 0x92e   :  { %v5205_v17 = vpop.f32.mrb[16].mxu1 }
 0x92f   :  { %v1415_v18 = vpop.f32.mrb[17].mxu1 }
 0x930   :  { %5214 = vmatprep.mubr.msk.f32.mxu1 %vm660_vm0, %v1415_v18 }
 0x931   :  { %5215 = vmatmul.mubr.msk.f32.vlgmr.msra.gmra.mrb[14].mxu1 %vm660_vm0, %v5205_v17 }
 0x932   :  { %5600 = vmatpush3.bf16.msra.mxu1 %v5597_v14  ;;  %5228 = vmatprep.mubr.msk.f32.mxu1 %vm748_vm2, %v1622_v26  ;;  %v1874_v26 = vld [vmem:[%s8260_s13 + $0xc8] sm:$0xff] }
 0x933   :  { %5602 = vmatprep.subr.bf16.mxu1 %v5601_v20 }
 0x935   :  { %5229 = vmatmul.mubr.msk.f32.vlgmr.msra.gmra.mrb[18].mxu1 %vm748_vm2, %v1623_v48  ;;  %v5621_v48 = vpack.c.bf16 %v1878_v27, %v1874_v26  ;;  %v1909_v27 = vld [vmem:[%s8260_s13 + $0x1e0] sm:$0xff] }
 0x936   :  { %5604 = vmatpush3.bf16.msra.mxu1 %v5601_v20 }
 0x937   :  { %5606 = vmatprep.subr.bf16.mxu1 %v5605_v30 }
 0x93a   :  { %5608 = vmatpush3.bf16.msra.mxu1 %v5605_v30  ;;  %v1880_v30 = vld [vmem:[%s8260_s13 + $0xf8] sm:$0xff] }
 0xa08   :  { %v5230_v47 = vpop.f32.mrb[18].mxu1 }
 0xa09   :  { %v1702_v31 = vpop.f32.mrb[19].mxu1 }
 0xa0a   :  { %5239 = vmatprep.mubr.msk.f32.mxu1 %vm660_vm0, %v1702_v31  ;;  %v1877_v31 = vld [vmem:[%s8260_s13 + $0xe0] sm:$0xff] }
 0xa0b   :  { %5240 = vmatmul.mubr.msk.f32.vlgmr.msra.gmra.mrb[14].mxu1 %vm660_vm0, %v5230_v47  ;;  %v1873_v47 = vld [vmem:[%s8260_s13 + $0xc0] sm:$0xff] }
 0xa0c   :  { %2076 = vmatprep.mubr.f32.mxu1 %v6195_v23 }
 0xade   :  { %v5241_v32 = vpop.f32.mrb[14].mxu1 }
 0xadf   :  { %v1799_v34 = vadd.f32 %v5241_v32, %v6626_v44  ;;  %v1787_v35 = vpop.f32.mrb[15].mxu1  ;;  %v5609_v44 = vpack.c.bf16 %v1854_v45, %v1850_v40  ;;  %v5653_v32 = vpack.c.bf16 %v1880_v30, %v1876_v28  ;;  %v1882_v40 = vld [vmem:[%s8260_s13 + $0x108] sm:$0xff]  ;;  %v1907_v28 = vld [vmem:[%s8260_s13 + $0x1d0] sm:$0xff] }
 0xae0   :  { %v1798_v36 = vadd.f32 %v1787_v35, %v6623_v43  ;;  %v1852_v43 = vld [vmem:[%s8260_s13 + $0x18] sm:$0xff]  ;;  %v1879_v35 = vld [vmem:[%s8260_s13 + $0xf0] sm:$0xff]  ;;  %v1886_v45 = vld [vmem:[%s8260_s13 + $0x128] sm:$0xff] }
 0xae1   :  { %v6992_v37 = vadd.f32 %v4458_v33, %v1799_v34  ;;  %v5641_v41 = vpack.c.bf16 %v1856_v49, %v1852_v43  ;;  %5610 = vmatprep.subr.bf16.mxu0 %v5609_v44  ;;  %v1875_v34 = vld [vmem:[%s8260_s13 + $0xd0] sm:$0xff]  ;;  %v1884_v43 = vld [vmem:[%s8260_s13 + $0x118] sm:$0xff]  ;;  %v5625_v44 = vpack.c.bf16 %v1886_v45, %v1882_v40 }
 0xae2   :  { %v6994_v39 = vadd.f32 %v4458_v33, %v1798_v36  ;;  %5612 = vmatpush1.bf16.msra.mxu0 %v5611_v52  ;;  %v5623_v33 = vpack.c.bf16 %v1877_v31, %v1873_v47  ;;  %v5655_v36 = vpack.c.bf16 %v1879_v35, %v1875_v34  ;;  %v1888_v49 = vld [vmem:[%s8260_s13 + $0x138] sm:$0xff]  ;;  %v5627_v52 = vpack.c.bf16 %v1885_v51, %v1881_v50  ;;  %v2177_v31 = vld [vmem:[%s8261_s15 + $0x80] sm:$0xff]  ;;  %v2210_v35 = vld [vmem:[%s8261_s15 + $0x188] sm:$0xff] }
 0xae3   :  { %1813 = vadd.xlane.f32.xlu1 %v6992_v37  ;;  %5642 = vmatprep.subr.bf16.mxu1 %v5641_v41  ;;  %v5657_v41 = vpack.c.bf16 %v1888_v49, %v1884_v43 }
 0xae4   :  { %1811 = vadd.xlane.f32.xlu0 %v6994_v39  ;;  %5644 = vmatpush1.bf16.msra.mxu1 %v5643_v54  ;;  %v1890_v54 = vld [vmem:[%s8260_s13 + $0x148] sm:$0xff] }
 0xae5   :  { %5614 = vmatprep.subr.bf16.mxu0 %v5613_v58  ;;  %5646 = vmatprep.subr.bf16.mxu1 %v5645_v59  ;;  %v5629_v57 = vpack.c.bf16 %v1894_v55, %v1890_v54  ;;  %v1896_v58 = vld [vmem:[%s8260_s13 + $0x178] sm:$0xff]  ;;  %v1889_v59 = vld [vmem:[%s8260_s13 + $0x140] sm:$0xff]  ;;  %v2194_v55 = vld [vmem:[%s8261_s15 + $0x108] sm:$0xff] }
 0xae6   :  { %5616 = vmatpush1.bf16.msra.mxu0 %v5615_v63  ;;  %v5661_v61 = vpack.c.bf16 %v1896_v58, %v1892_v56  ;;  %v5631_v62 = vpack.c.bf16 %v1893_v60, %v1889_v59  ;;  %v1891_v63 = vld [vmem:[%s8260_s13 + $0x150] sm:$0xff]  ;;  %v2193_v54 = vld [vmem:[%s8261_s15 + $0x100] sm:$0xff] }
 0xae7   :  { %5618 = vmatprep.subr.bf16.mxu0 %v5617_v3  ;;  %v5663_v25 = vpack.c.bf16 %v1895_v0, %v1891_v63  ;;  %v1900_v3 = vld [vmem:[%s8260_s13 + $0x198] sm:$0xff]  ;;  %v5707_v60 = vpack.c.bf16 %v2194_v55, %v2193_v54  ;;  %v2179_v63 = vld [vmem:[%s8261_s15 + $0x90] sm:$0xff]  ;;  %v2202_v54 = vld [vmem:[%s8261_s15 + $0x148] sm:$0xff] }
 0xae8   :  { %5648 = vmatpush1.bf16.msra.mxu1 %v5647_v2  ;;  %v1902_v2 = vld [vmem:[%s8260_s13 + $0x1a8] sm:$0xff]  ;;  %v5665_v5 = vpack.c.bf16 %v1904_v4, %v1900_v3  ;;  %v2211_v0 = vld [vmem:[%s8261_s15 + $0x190] sm:$0xff]  ;;  %v2164_v3 = vld [vmem:[%s8261_s15 + $0x18] sm:$0xff] }
 0xae9   :  { %5650 = vmatprep.subr.bf16.mxu1 %v5649_v6  ;;  %v5633_v24 = vpack.c.bf16 %v1902_v2, %v1898_v1  ;;  %v1897_v6 = vld [vmem:[%s8260_s13 + $0x180] sm:$0xff]  ;;  %v2163_v2 = vld [vmem:[%s8261_s15 + $0x10] sm:$0xff] }
 0xaea   :  { %5620 = vmatpush1.bf16.msra.mxu0 %v5619_v12  ;;  %v5635_v10 = vpack.c.bf16 %v1901_v8, %v1897_v6  ;;  %v1903_v12 = vld [vmem:[%s8260_s13 + $0x1b0] sm:$0xff]  ;;  %v2196_v6 = vld [vmem:[%s8261_s15 + $0x118] sm:$0xff] }
 0xaeb   :  { %5622 = vmatprep.subr.bf16.mxu0 %v5621_v48  ;;  %v1911_v48 = vld [vmem:[%s8260_s13 + $0x1f0] sm:$0xff] }
 0xaec   :  { %5652 = vmatpush1.bf16.msra.mxu1 %v5651_v13  ;;  %v1906_v13 = vld [vmem:[%s8260_s13 + $0x1c8] sm:$0xff]  ;;  %v5671_v47 = vpack.c.bf16 %v1911_v48, %v1907_v28  ;;  %v2183_v28 = vld [vmem:[%s8261_s15 + $0xb0] sm:$0xff]  ;;  %v2184_v48 = vld [vmem:[%s8261_s15 + $0xb8] sm:$0xff] }
 0xaed   :  { %5654 = vmatprep.subr.bf16.mxu1 %v5653_v32  ;;  %v2178_v32 = vld [vmem:[%s8261_s15 + $0x88] sm:$0xff]  ;;  %v2187_v55 = vld [vmem:[%s8261_s15 + $0xd0] sm:$0xff] }
 0xaee   :  { %5624 = vmatpush1.bf16.msra.mxu0 %v5623_v33  ;;  %v2209_v33 = vld [vmem:[%s8261_s15 + $0x180] sm:$0xff]  ;;  %v5673_v34 = vpack.c.bf16 %v2178_v32, %v2177_v31  ;;  %v2216_v31 = vld [vmem:[%s8261_s15 + $0x1b8] sm:$0xff]  ;;  %v2167_v32 = vld [vmem:[%s8261_s15 + $0x30] sm:$0xff] }
 0xaef   :  { %5626 = vmatprep.subr.bf16.mxu0 %v5625_v44 }
 0xaf0   :  { %5656 = vmatpush1.bf16.msra.mxu1 %v5655_v36  ;;  %v5705_v36 = vpack.c.bf16 %v2210_v35, %v2209_v33  ;;  %v2168_v33 = vld [vmem:[%s8261_s15 + $0x38] sm:$0xff] }
 0xaf1   :  { %5658 = vmatprep.subr.bf16.mxu1 %v5657_v41  ;;  %v4459_v41 = vld [vmem:[%s8262_s11] ss:$0 sm:$0xff]  ;;  %v5687_v35 = vpack.c.bf16 %v2168_v33, %v2167_v32  ;;  %v1929_v32 = vsub.s32 3, %v6792_v19 }
 0xaf2   :  { %5628 = vmatpush1.bf16.msra.mxu0 %v5627_v52  ;;  %v4460_v52 = vld [vmem:[%s8263_s12] ss:$0 sm:$0xff] }
 0xaf3   :  { %5630 = vmatprep.subr.bf16.mxu0 %v5629_v57 }
 0xaf4   :  { %5660 = vmatpush1.bf16.msra.mxu1 %v5659_v46  ;;  %v2162_v46 = vld [vmem:[%s8261_s15 + $0x8] sm:$0xff] }
 0xaf5   :  { %5662 = vmatprep.subr.bf16.mxu1 %v5661_v61  ;;  %v5675_v59 = vpack.c.bf16 %v2162_v46, %v2161_v53  ;;  %v2201_v46 = vld [vmem:[%s8261_s15 + $0x140] sm:$0xff] }
 0xaf6   :  { %5632 = vmatpush1.bf16.msra.mxu0 %v5631_v62 }
 0xaf7   :  { %5634 = vmatprep.subr.bf16.mxu0 %v5633_v24  ;;  %v5679_v24 = vpack.c.bf16 %v2164_v3, %v2163_v2 }
 0xaf8   :  { %5664 = vmatpush1.bf16.msra.mxu1 %v5663_v25  ;;  %v2212_v25 = vld [vmem:[%s8261_s15 + $0x198] sm:$0xff] }
 0xaf9   :  { %5666 = vmatprep.subr.bf16.mxu1 %v5665_v5  ;;  %v5709_v4 = vpack.c.bf16 %v2212_v25, %v2211_v0  ;;  %v2195_v5 = vld [vmem:[%s8261_s15 + $0x110] sm:$0xff]  ;;  %v2204_v0 = vld [vmem:[%s8261_s15 + $0x158] sm:$0xff]  ;;  %v2190_v25 = vld [vmem:[%s8261_s15 + $0xe8] sm:$0xff] }
 0xafa   :  { %5636 = vmatpush1.bf16.msra.mxu0 %v5635_v10  ;;  %v5711_v8 = vpack.c.bf16 %v2196_v6, %v2195_v5  ;;  %v2182_v10 = vld [vmem:[%s8261_s15 + $0xa8] sm:$0xff]  ;;  %v2173_v5 = vld [vmem:[%s8261_s15 + $0x60] sm:$0xff] }
 0xb70   :  { %v1814_v14 = vpop.xlane.xlu1 %1813 }
 0xb71   :  { %v1812_v42 = vpop.xlane.xlu0 %1811  ;;  %v1816_v15 = vmul.f32 0.0078125, %v1814_v14  ;;  %v1910_v14 = vld [vmem:[%s8260_s13 + $0x1e8] sm:$0xff] }
 0xb72   :  { %v1815_v16 = vmul.f32 0.0078125, %v1812_v42  ;;  %v5667_v42 = vpack.c.bf16 %v1903_v12, %v1899_v9  ;;  %v2181_v9 = vld [vmem:[%s8261_s15 + $0xa0] sm:$0xff] }
 0xb73   :  { %v7074_v18 = vsub.f32 %v6992_v37, %v1816_v15  ;;  %v5637_v15 = vpack.c.bf16 %v1910_v14, %v1906_v13  ;;  %v2213_v12 = vld [vmem:[%s8261_s15 + $0x1a0] sm:$0xff]  ;;  %v5681_v13 = vpack.c.bf16 %v2182_v10, %v2181_v9  ;;  %v2214_v14 = vld [vmem:[%s8261_s15 + $0x1a8] sm:$0xff] }
 0xb74   :  { %v7071_v17 = vsub.f32 %v6994_v39, %v1815_v16  ;;  %v1908_v16 = vld [vmem:[%s8260_s13 + $0x1d8] sm:$0xff]  ;;  %5668 = vmatpush1.bf16.msra.mxu1 %v5667_v42  ;;  %v2165_v42 = vld [vmem:[%s8261_s15 + $0x20] sm:$0xff]  ;;  %v2206_v10 = vld [vmem:[%s8261_s15 + $0x168] sm:$0xff] }
 0xb75   :  { %v1820_v11 = vmul.f32 %v7074_v18, %v7074_v18  ;;  %5638 = vmatprep.subr.bf16.mxu0 %v5637_v15  ;;  %v2166_v15 = vld [vmem:[%s8261_s15 + $0x28] sm:$0xff]  ;;  %v2205_v9 = vld [vmem:[%s8261_s15 + $0x160] sm:$0xff] }
 0xb76   :  { %v1819_v20 = vmul.f32 %v7071_v17, %v7071_v17 }
 0xb78   :  { %1821 = vadd.xlane.f32.xlu0 %v1819_v20  ;;  %v1912_v20 = vld [vmem:[%s8260_s13 + $0x1f8] sm:$0xff] }
 0xb79   :  { %v5669_v26 = vpack.c.bf16 %v1912_v20, %v1908_v16  ;;  %v5713_v16 = vpack.c.bf16 %v2214_v14, %v2213_v12  ;;  %v5683_v20 = vpack.c.bf16 %v2166_v15, %v2165_v42  ;;  %v2192_v14 = vld [vmem:[%s8261_s15 + $0xf8] sm:$0xff]  ;;  %v2223_v42 = vld [vmem:[%s8261_s15 + $0x1f0] sm:$0xff]  ;;  %v5731_v15 = vpack.c.bf16 %v2206_v10, %v2205_v9 }
 0xb7b   :  { %5670 = vmatprep.subr.bf16.mxu1 %v5669_v26  ;;  %v2198_v26 = vld [vmem:[%s8261_s15 + $0x128] sm:$0xff] }
 0xb7c   :  { %1823 = vadd.xlane.f32.xlu0 %v1820_v11  ;;  %v1905_v11 = vld [vmem:[%s8260_s13 + $0x1c0] sm:$0xff]  ;;  %5672 = vmatpush1.bf16.msra.mxu1 %v5671_v47  ;;  %v5685_v47 = vpack.c.bf16 %v2184_v48, %v2183_v28  ;;  %v2207_v28 = vld [vmem:[%s8261_s15 + $0x170] sm:$0xff]  ;;  %v2208_v48 = vld [vmem:[%s8261_s15 + $0x178] sm:$0xff] }
 0xb7d   :  { %v5639_v30 = vpack.c.bf16 %v1909_v27, %v1905_v11  ;;  %5706 = vmatprep.subr.bf16.mxu1 %v5705_v36  ;;  %v2197_v11 = vld [vmem:[%s8261_s15 + $0x120] sm:$0xff]  ;;  %v2199_v36 = vld [vmem:[%s8261_s15 + $0x130] sm:$0xff] }
 0xb7e   :  { %v5715_v27 = vpack.c.bf16 %v2198_v26, %v2197_v11  ;;  %v2175_v11 = vld [vmem:[%s8261_s15 + $0x70] sm:$0xff]  ;;  %v2176_v26 = vld [vmem:[%s8261_s15 + $0x78] sm:$0xff] }
 0xb7f   :  { %5640 = vmatpush1.bf16.msra.mxu0 %v5639_v30  ;;  %v2215_v30 = vld [vmem:[%s8261_s15 + $0x1b0] sm:$0xff] }
 0xb80   :  { %5674 = vmatprep.subr.bf16.mxu0 %v5673_v34  ;;  %v5717_v34 = vpack.c.bf16 %v2216_v31, %v2215_v30  ;;  %v5703_v30 = vpack.c.bf16 %v2176_v26, %v2175_v11  ;;  %v1913_v31 = vld [vmem:[%s8264_s14] sm:$0xf] }
 0xb81   :  { %v1918_v33 = vrot.slane %v1913_v31, %v6795_v7 }
 0xc05   :  { %v1822_v40 = vpop.xlane.xlu0 %1821 }
 0xc06   :  { %v1825_v45 = vmul.f32 0.0078125, %v1822_v40  ;;  %v2200_v40 = vld [vmem:[%s8261_s15 + $0x138] sm:$0xff] }
 0xc08   :  { %v1827_v43 = vadd.f32 1e-06, %v1825_v45  ;;  %v5719_v45 = vpack.c.bf16 %v2200_v40, %v2199_v36  ;;  %v1930_v36 = vrot.slane %v1913_v31, %v1929_v32 }
 0xc09   :  { %v1824_v44 = vpop.xlane.xlu0 %1823 }
 0xc0a   :  { %6113 = vrsqrt.f32 %v1827_v43  ;;  %v1826_v49 = vmul.f32 0.0078125, %v1824_v44  ;;  %v2185_v43 = vld [vmem:[%s8261_s15 + $0xc0] sm:$0xff]  ;;  %v2186_v44 = vld [vmem:[%s8261_s15 + $0xc8] sm:$0xff] }
 0xc0c   :  { %v1828_v50 = vadd.f32 1e-06, %v1826_v49  ;;  %v2217_v49 = vld [vmem:[%s8261_s15 + $0x1c0] sm:$0xff] }
 0xc0e   :  { %6115 = vrsqrt.f32 %v1828_v50  ;;  %v5689_v50 = vpack.c.bf16 %v2186_v44, %v2185_v43 }
 0xc14   :  { %v6114_v51 = vpop.eup %6113 }
 0xc15   :  { %v1831_v29 = vmul.f32 %v6114_v51, %v7071_v17  ;;  %v2218_v51 = vld [vmem:[%s8261_s15 + $0x1c8] sm:$0xff] }
 0xc17   :  { %v1839_v56 = vmul.f32 %v4459_v41, %v1831_v29  ;;  %v5721_v29 = vpack.c.bf16 %v2218_v51, %v2217_v49 }
 0xc18   :  { %v6116_v57 = vpop.eup %6115 }
 0xc19   :  { %v1847_v58 = vadd.f32 %v4460_v52, %v1839_v56  ;;  %v1832_v17 = vmul.f32 %v6116_v57, %v7074_v18  ;;  %v2180_v18 = vld [vmem:[%s8261_s15 + $0x98] sm:$0xff]  ;;  %v5723_v56 = vpack.c.bf16 %v2202_v54, %v2201_v46 }
 0xc1a   :  { %v5677_v1 = vpack.c.bf16 %v2180_v18, %v2179_v63  ;;  %v2188_v57 = vld [vmem:[%s8261_s15 + $0xd8] sm:$0xff]  ;;  %v2203_v63 = vld [vmem:[%s8261_s15 + $0x150] sm:$0xff] }
 0xc1b   :  { %2000 = vmatmul.mubr.f32.vlgmr.msra.gmra.mrb[10].mxu0 %v1847_v58  ;;  %2077 = vmatmul.mubr.f32.vlgmr.msra.gmra.mrb[20].mxu1 %v1847_v58  ;;  %v1840_v61 = vmul.f32 %v4459_v41, %v1832_v17  ;;  %v2169_v41 = vld [vmem:[%s8261_s15 + $0x40] sm:$0xff]  ;;  %v2219_v58 = vld [vmem:[%s8261_s15 + $0x1d0] sm:$0xff]  ;;  %v2220_v17 = vld [vmem:[%s8261_s15 + $0x1d8] sm:$0xff]  ;;  %v5727_v2 = vpack.c.bf16 %v2204_v0, %v2203_v63 }
 0xc1c   :  { %2005 = vmatprep.mubr.f32.mxu0 %v6195_v23  ;;  %2082 = vmatprep.mubr.f32.mxu1 %v6195_v23 }
 0xc1d   :  { %v1848_v62 = vadd.f32 %v4460_v52, %v1840_v61  ;;  %5676 = vmatpush3.bf16.msra.mxu0 %v5675_v59  ;;  %5708 = vmatpush3.bf16.msra.mxu1 %v5707_v60  ;;  %v2170_v52 = vld [vmem:[%s8261_s15 + $0x48] sm:$0xff]  ;;  %v5693_v59 = vpack.c.bf16 %v2188_v57, %v2187_v55  ;;  %v5725_v60 = vpack.c.bf16 %v2220_v17, %v2219_v58  ;;  %v2171_v61 = vld [vmem:[%s8261_s15 + $0x50] sm:$0xff] }
 0xc1e   :  { %5678 = vmatprep.subr.bf16.mxu0 %v5677_v1  ;;  %5710 = vmatprep.subr.bf16.mxu1 %v5709_v4  ;;  %v5691_v53 = vpack.c.bf16 %v2170_v52, %v2169_v41  ;;  %v2189_v1 = vld [vmem:[%s8261_s15 + $0xe0] sm:$0xff] }
 0xc1f   :  { %2006 = vmatmul.mubr.f32.gmra.mrb[12].mxu0 %v1848_v62  ;;  %2083 = vmatmul.mubr.f32.gmra.mrb[22].mxu1 %v1848_v62  ;;  %v2172_v62 = vld [vmem:[%s8261_s15 + $0x58] sm:$0xff]  ;;  %v5697_v3 = vpack.c.bf16 %v2190_v25, %v2189_v1  ;;  %v2221_v4 = vld [vmem:[%s8261_s15 + $0x1e0] sm:$0xff] }
 0xc20   :  { %v5695_v18 = vpack.c.bf16 %v2172_v62, %v2171_v61 }
 0xc21   :  { %5680 = vmatpush3.bf16.msra.mxu0 %v5679_v24  ;;  %5712 = vmatpush3.bf16.msra.mxu1 %v5711_v8  ;;  %v2222_v24 = vld [vmem:[%s8261_s15 + $0x1e8] sm:$0xff] }
 0xc22   :  { %5682 = vmatprep.subr.bf16.mxu0 %v5681_v13  ;;  %5714 = vmatprep.subr.bf16.mxu1 %v5713_v16  ;;  %v5729_v6 = vpack.c.bf16 %v2222_v24, %v2221_v4  ;;  %v2174_v8 = vld [vmem:[%s8261_s15 + $0x68] sm:$0xff]  ;;  %v2191_v13 = vld [vmem:[%s8261_s15 + $0xf0] sm:$0xff] }
 0xc23   :  { %v5699_v12 = vpack.c.bf16 %v2174_v8, %v2173_v5  ;;  %v5701_v16 = vpack.c.bf16 %v2192_v14, %v2191_v13 }
 0xc25   :  { %5684 = vmatpush3.bf16.msra.mxu0 %v5683_v20  ;;  %5716 = vmatpush3.bf16.msra.mxu1 %v5715_v27  ;;  %v2224_v20 = vld [vmem:[%s8261_s15 + $0x1f8] sm:$0xff] }
 0xc26   :  { %5686 = vmatprep.subr.bf16.mxu0 %v5685_v47  ;;  %5718 = vmatprep.subr.bf16.mxu1 %v5717_v34  ;;  %v5733_v27 = vpack.c.bf16 %v2224_v20, %v2223_v42  ;;  %v5735_v47 = vpack.c.bf16 %v2208_v48, %v2207_v28  ;;  %v1926_v34 = vrot.slane %v1913_v31, %v6802_v21 }
 0xc29   :  { %5688 = vmatpush3.bf16.msra.mxu0 %v5687_v35  ;;  %5720 = vmatpush3.bf16.msra.mxu1 %v5719_v45  ;;  %v1922_v35 = vrot.slane %v1913_v31, %v6805_v22 }
 0xc2a   :  { %5690 = vmatprep.subr.bf16.mxu0 %v5689_v50  ;;  %5722 = vmatprep.subr.bf16.mxu1 %v5721_v29 }
 0xc2d   :  { %5692 = vmatpush3.bf16.msra.mxu0 %v5691_v53  ;;  %5724 = vmatpush3.bf16.msra.mxu1 %v5723_v56 }
 0xc2e   :  { %5694 = vmatprep.subr.bf16.mxu0 %v5693_v59  ;;  %5726 = vmatprep.subr.bf16.mxu1 %v5725_v60 }
 0xc31   :  { %5696 = vmatpush3.bf16.msra.mxu0 %v5695_v18  ;;  %5728 = vmatpush3.bf16.msra.mxu1 %v5727_v2 }
 0xc32   :  { %5698 = vmatprep.subr.bf16.mxu0 %v5697_v3  ;;  %5730 = vmatprep.subr.bf16.mxu1 %v5729_v6 }
 0xc35   :  { %5700 = vmatpush3.bf16.msra.mxu0 %v5699_v12  ;;  %5732 = vmatpush3.bf16.msra.mxu1 %v5731_v15 }
 0xc36   :  { %5702 = vmatprep.subr.bf16.mxu0 %v5701_v16  ;;  %5734 = vmatprep.subr.bf16.mxu1 %v5733_v27 }
 0xc39   :  { %5704 = vmatpush3.bf16.msra.mxu0 %v5703_v30  ;;  %5736 = vmatpush3.bf16.msra.mxu1 %v5735_v47 }
 0xcee   :  { %v2001_v40 = vpop.f32.mrb[10].mxu0  ;;  %v2078_v45 = vpop.f32.mrb[20].mxu1 }
 0xcef   :  { %v7411_v43 = vadd.f32 %v2001_v40, %v1918_v33  ;;  %v7413_v44 = vadd.f32 %v2078_v45, %v1926_v34  ;;  %v2003_v49 = vpop.f32.mrb[11].mxu0  ;;  %v2080_v50 = vpop.f32.mrb[21].mxu1 }
 0xcf0   :  { %v2004_v51 = vadd.f32 %v2003_v49, %v1922_v35  ;;  %v7415_v41 = vadd.f32 %v2080_v50, %v1930_v36 }
 0xcf1   :  { %v2097_v52 = vmul.f32 0.044715, %v7411_v43  ;;  %v2099_v29 = vmul.f32 0.044715, %v7413_v44 }
 0xcf2   :  { %v2098_v53 = vmul.f32 0.044715, %v2004_v51  ;;  %v2100_v46 = vmul.f32 0.044715, %v7415_v41  ;;  %v2007_v54 = vpop.f32.mrb[12].mxu0  ;;  %v2084_v55 = vpop.f32.mrb[22].mxu1 }
 0xcf3   :  { %v2105_v56 = vmul.f32 %v2097_v52, %v7411_v43  ;;  %v2107_v57 = vmul.f32 %v2099_v29, %v7413_v44  ;;  %v7422_v58 = vadd.f32 %v2007_v54, %v1918_v33  ;;  %v7424_v17 = vadd.f32 %v2084_v55, %v1926_v34  ;;  %v2009_v59 = vpop.f32.mrb[13].mxu0  ;;  %v2086_v60 = vpop.f32.mrb[23].mxu1 }
 0xcf4   :  { %v2106_v61 = vmul.f32 %v2098_v53, %v2004_v51  ;;  %v2108_v62 = vmul.f32 %v2100_v46, %v7415_v41  ;;  %v2010_v63 = vadd.f32 %v2009_v59, %v1922_v35  ;;  %v2087_v18 = vadd.f32 %v2086_v60, %v1930_v36 }
 0xcf5   :  { %v2113_v0 = vmul.f32 %v2105_v56, %v7411_v43  ;;  %v2115_v1 = vmul.f32 %v2107_v57, %v7413_v44  ;;  %v2101_v25 = vmul.f32 0.044715, %v7422_v58  ;;  %v2103_v2 = vmul.f32 0.044715, %v7424_v17 }
 0xcf6   :  { %v2102_v3 = vmul.f32 0.044715, %v2010_v63  ;;  %v2104_v4 = vmul.f32 0.044715, %v2087_v18  ;;  %v2114_v24 = vmul.f32 %v2106_v61, %v2004_v51  ;;  %v2116_v15 = vmul.f32 %v2108_v62, %v7415_v41 }
 0xcf7   :  { %v2121_v5 = vadd.f32 %v2113_v0, %v7411_v43  ;;  %v2123_v6 = vadd.f32 %v2115_v1, %v7413_v44  ;;  %v2109_v8 = vmul.f32 %v2101_v25, %v7422_v58  ;;  %v2111_v42 = vmul.f32 %v2103_v2, %v7424_v17 }
 0xcf8   :  { %v2110_v9 = vmul.f32 %v2102_v3, %v2010_v63  ;;  %v2112_v10 = vmul.f32 %v2104_v4, %v2087_v18  ;;  %v2122_v12 = vadd.f32 %v2114_v24, %v2004_v51  ;;  %v2124_v26 = vadd.f32 %v2116_v15, %v7415_v41 }
 0xcf9   :  { %v2129_v13 = vmul.f32 0.7978846, %v2121_v5  ;;  %v2131_v14 = vmul.f32 0.7978846, %v2123_v6  ;;  %v2117_v27 = vmul.f32 %v2109_v8, %v7422_v58  ;;  %v2119_v31 = vmul.f32 %v2111_v42, %v7424_v17 }
 0xcfa   :  { %v2130_v16 = vmul.f32 0.7978846, %v2122_v12  ;;  %v2118_v20 = vmul.f32 %v2110_v9, %v2010_v63  ;;  %v2120_v11 = vmul.f32 %v2112_v10, %v2087_v18  ;;  %v2132_v30 = vmul.f32 0.7978846, %v2124_v26 }
 0xcfb   :  { %6117 = vtanh.f32 %v2129_v13  ;;  %v2125_v47 = vadd.f32 %v2117_v27, %v7422_v58  ;;  %v2127_v36 = vadd.f32 %v2119_v31, %v7424_v17  ;;  %v2090_v29 = vmul.f32 0.5, %v2004_v51 }
 0xcfc   :  { %6119 = vtanh.f32 %v2131_v14  ;;  %v2126_v28 = vadd.f32 %v2118_v20, %v2010_v63  ;;  %v2128_v48 = vadd.f32 %v2120_v11, %v2087_v18  ;;  %v2089_v54 = vmul.f32 0.5, %v7411_v43 }
 0xcfd   :  { %6121 = vtanh.f32 %v2130_v16  ;;  %v2133_v35 = vmul.f32 0.7978846, %v2125_v47  ;;  %v2135_v40 = vmul.f32 0.7978846, %v2127_v36  ;;  %v2092_v59 = vmul.f32 0.5, %v7415_v41 }
 0xcfe   :  { %v2134_v33 = vmul.f32 0.7978846, %v2126_v28  ;;  %v2136_v34 = vmul.f32 0.7978846, %v2128_v48  ;;  %6123 = vtanh.f32 %v2132_v30  ;;  %v2091_v62 = vmul.f32 0.5, %v7413_v44 }
 0xcff   :  { %v2094_v1 = vmul.f32 0.5, %v2010_v63  ;;  %v2096_v51 = vmul.f32 0.5, %v2087_v18  ;;  %v2093_v6 = vmul.f32 0.5, %v7422_v58  ;;  %v2095_v63 = vmul.f32 0.5, %v7424_v17  ;;  %v4461_v58 = vld [vmem:[%s8265_s16] ss:$0 sm:$0xff] }
 0xd00   :  { %6125 = vtanh.f32 %v2134_v33 }
 0xd01   :  { %6127 = vtanh.f32 %v2136_v34  ;;  %v4467_v34 = vld [vmem:[%s8253_s7 + $0x188] sm:$0xff] }
 0xd02   :  { %6129 = vtanh.f32 %v2133_v35  ;;  %v4470_v35 = vld [vmem:[%s8253_s7 + $0x1a0] sm:$0xff] }
 0xd03   :  { %6131 = vtanh.f32 %v2135_v40  ;;  %v5737_v36 = vpack.c.bf16 %v4470_v35, %v4467_v34  ;;  %v4473_v40 = vld [vmem:[%s8253_s7 + $0x1b8] sm:$0xff]  ;;  %v4496_v34 = vld [vmem:[%s8253_s7 + $0x270] sm:$0xff]  ;;  %v4499_v35 = vld [vmem:[%s8253_s7 + $0x288] sm:$0xff] }
 0xd05   :  { %v6118_v45 = vpop.eup %6117  ;;  %5738 = vmatprep.subr.bf16.mxu0 %v5737_v36  ;;  %v5759_v36 = vpack.c.bf16 %v4499_v35, %v4496_v34 }
 0xd06   :  { %v6120_v49 = vpop.eup %6119  ;;  %v2145_v52 = vadd.f32 1.0, %v6118_v45  ;;  %v4476_v45 = vld [vmem:[%s8253_s7 + $0x1d0] sm:$0xff] }
 0xd07   :  { %v6122_v50 = vpop.eup %6121  ;;  %v2147_v55 = vadd.f32 1.0, %v6120_v49 }
 0xd08   :  { %v2146_v53 = vadd.f32 1.0, %v6122_v50  ;;  %v6124_v46 = vpop.eup %6123  ;;  %v2153_v0 = vmul.f32 %v2145_v52, %v2089_v54  ;;  %v5741_v50 = vpack.c.bf16 %v4476_v45, %v4473_v40  ;;  %v4468_v52 = vld [vmem:[%s8253_s7 + $0x190] sm:$0xff]  ;;  %v4475_v54 = vld [vmem:[%s8253_s7 + $0x1c8] sm:$0xff]  ;;  %v4506_v40 = vld [vmem:[%s8253_s7 + $0x2c0] sm:$0xff] }
 0xd09   :  { %v2148_v60 = vadd.f32 1.0, %v6124_v46  ;;  %v2155_v43 = vmul.f32 %v2147_v55, %v2091_v62  ;;  %v4479_v55 = vld [vmem:[%s8253_s7 + $0x1e8] sm:$0xff]  ;;  %v4498_v45 = vld [vmem:[%s8253_s7 + $0x280] sm:$0xff] }
 0xd0a   :  { %v6126_v56 = vpop.eup %6125  ;;  %v2154_v57 = vmul.f32 %v2146_v53, %v2090_v29  ;;  %v4471_v29 = vld [vmem:[%s8253_s7 + $0x1a8] sm:$0xff]  ;;  %v4472_v53 = vld [vmem:[%s8253_s7 + $0x1b0] sm:$0xff] }
 0xd0b   :  { %v6128_v61 = vpop.eup %6127  ;;  %v2150_v25 = vadd.f32 1.0, %v6126_v56  ;;  %v2156_v3 = vmul.f32 %v2148_v60, %v2092_v59  ;;  %v5769_v46 = vpack.c.bf16 %v4471_v29, %v4468_v52  ;;  %v4482_v56 = vld [vmem:[%s8253_s7 + $0x200] sm:$0xff]  ;;  %v4477_v60 = vld [vmem:[%s8253_s7 + $0x1d8] sm:$0xff] }
 0xd0c   :  { %v6130_v2 = vpop.eup %6129  ;;  %2296 = vmatprep.mubr.f32.mxu0 %v2154_v57  ;;  %v2152_v4 = vadd.f32 1.0, %v6128_v61  ;;  %v5743_v57 = vpack.c.bf16 %v4475_v54, %v4472_v53  ;;  %v4474_v59 = vld [vmem:[%s8253_s7 + $0x1c0] sm:$0xff]  ;;  %v5745_v61 = vpack.c.bf16 %v4482_v56, %v4479_v55  ;;  %v4505_v29 = vld [vmem:[%s8253_s7 + $0x2b8] sm:$0xff]  ;;  %v4512_v55 = vld [vmem:[%s8253_s7 + $0x2f0] sm:$0xff] }
 0xd0d   :  { %v6132_v24 = vpop.eup %6131  ;;  %2297 = vmatmul.mubr.f32.vlgmr.msra.gmra.mrb[14].mxu0 %v2153_v0  ;;  %v2158_v5 = vmul.f32 %v2150_v25, %v2094_v1  ;;  %v2149_v8 = vadd.f32 1.0, %v6130_v2  ;;  %2371 = vmatprep.mubr.f32.mxu1 %v2156_v3  ;;  %v5773_v62 = vpack.c.bf16 %v4477_v60, %v4474_v59  ;;  %v4478_v0 = vld [vmem:[%s8253_s7 + $0x1e0] sm:$0xff]  ;;  %v4481_v1 = vld [vmem:[%s8253_s7 + $0x1f8] sm:$0xff]  ;;  %v4504_v56 = vld [vmem:[%s8253_s7 + $0x2b0] sm:$0xff] }
 0xd0e   :  { %v2160_v41 = vmul.f32 %v2152_v4, %v2096_v51  ;;  %v2151_v9 = vadd.f32 1.0, %v6132_v24  ;;  %2372 = vmatmul.mubr.f32.vlgmr.msra.gmra.mrb[24].mxu1 %v2155_v43  ;;  %5770 = vmatprep.subr.bf16.mxu1 %v5769_v46  ;;  %v5747_v25 = vpack.c.bf16 %v4481_v1, %v4478_v0  ;;  %v4502_v52 = vld [vmem:[%s8253_s7 + $0x2a0] sm:$0xff]  ;;  %v4509_v54 = vld [vmem:[%s8253_s7 + $0x2d8] sm:$0xff]  ;;  %v4507_v59 = vld [vmem:[%s8253_s7 + $0x2c8] sm:$0xff] }
 0xd0f   :  { %2301 = vmatprep.mubr.f32.mxu0 %v2158_v5  ;;  %v2157_v44 = vmul.f32 %v2149_v8, %v2093_v6  ;;  %5772 = vmatpush3.bf16.msra.mxu1 %v5769_v46  ;;  %v4485_v8 = vld [vmem:[%s8253_s7 + $0x218] sm:$0xff]  ;;  %v5763_v46 = vpack.c.bf16 %v4505_v29, %v4502_v52  ;;  %v4508_v60 = vld [vmem:[%s8253_s7 + $0x2d0] sm:$0xff]  ;;  %v4510_v1 = vld [vmem:[%s8253_s7 + $0x2e0] sm:$0xff] }
 0xd10   :  { %2376 = vmatprep.mubr.f32.mxu1 %v2160_v41  ;;  %v2159_v10 = vmul.f32 %v2151_v9, %v2095_v63  ;;  %5774 = vmatprep.subr.bf16.mxu1 %v5773_v62  ;;  %v4488_v41 = vld [vmem:[%s8253_s7 + $0x230] sm:$0xff]  ;;  %v4483_v63 = vld [vmem:[%s8253_s7 + $0x208] sm:$0xff] }
 0xd11   :  { %2302 = vmatmul.mubr.f32.gmra.mrb[16].mxu0 %v2157_v44  ;;  %v4480_v9 = vld [vmem:[%s8253_s7 + $0x1f0] sm:$0xff]  ;;  %v5749_v44 = vpack.c.bf16 %v4488_v41, %v4485_v8 }
 0xd12   :  { %2557 = vmatprep.mubr.f32.mxu0 %v6195_v23  ;;  %2377 = vmatmul.mubr.f32.gmra.mrb[26].mxu1 %v2159_v10  ;;  %v4484_v10 = vld [vmem:[%s8253_s7 + $0x210] sm:$0xff] }
 0xd13   :  { %5776 = vmatpush3.bf16.msra.mxu1 %v5773_v62  ;;  %v5793_v62 = vpack.c.bf16 %v4507_v59, %v4504_v56 }
 0xde0   :  { %v4913_v18 = vpop.f32.mrb[14].mxu0 }
 0xde1   :  { %v4914_v12 = vpop.f32.mrb[15].mxu0  ;;  %v4951_v13 = vpop.f32.mrb[24].mxu1 }
 0xde2   :  { %v4915_v14 = vadd.f32 %v4914_v12, %v4913_v18  ;;  %v4952_v42 = vpop.f32.mrb[25].mxu1  ;;  %v4487_v18 = vld [vmem:[%s8253_s7 + $0x228] sm:$0xff] }
 0xde3   :  { %v4953_v16 = vadd.f32 %v4952_v42, %v4951_v13  ;;  %v5751_v12 = vpack.c.bf16 %v4487_v18, %v4484_v10  ;;  %v4491_v13 = vld [vmem:[%s8253_s7 + $0x248] sm:$0xff]  ;;  %v4486_v42 = vld [vmem:[%s8253_s7 + $0x220] sm:$0xff] }
 0xde4   :  { %v2299_v15 = vadd.f32 %v4915_v14, %v4461_v58  ;;  %v4916_v20 = vpop.f32.mrb[16].mxu0  ;;  %v4494_v14 = vld [vmem:[%s8253_s7 + $0x260] sm:$0xff] }
 0xde5   :  { %v4917_v11 = vpop.f32.mrb[17].mxu0  ;;  %v4954_v26 = vpop.f32.mrb[26].mxu1 }
 0xde6   :  { %v2374_v17 = vadd.f32 %v4953_v16, %v2299_v15  ;;  %v4918_v27 = vadd.f32 %v4917_v11, %v4916_v20  ;;  %v4955_v28 = vpop.f32.mrb[27].mxu1  ;;  %v5753_v15 = vpack.c.bf16 %v4494_v14, %v4491_v13  ;;  %v4489_v16 = vld [vmem:[%s8253_s7 + $0x238] sm:$0xff]  ;;  %v4490_v20 = vld [vmem:[%s8253_s7 + $0x240] sm:$0xff] }
 0xde7   :  { %v4956_v30 = vadd.f32 %v4955_v28, %v4954_v26  ;;  %v4493_v11 = vld [vmem:[%s8253_s7 + $0x258] sm:$0xff]  ;;  %v4500_v28 = vld [vmem:[%s8253_s7 + $0x290] sm:$0xff] }
 0xde8   :  { %v2304_v48 = vadd.f32 %v4918_v27, %v4461_v58  ;;  %v7451_v47 = vadd.f32 %v2374_v17, %v6994_v39  ;;  %v4466_v39 = vld [vmem:[%s8253_s7 + $0x180] sm:$0xff]  ;;  %v5777_v58 = vpack.c.bf16 %v4483_v63, %v4480_v9  ;;  %v5781_v17 = vpack.c.bf16 %v4489_v16, %v4486_v42  ;;  %v4497_v27 = vld [vmem:[%s8253_s7 + $0x278] sm:$0xff] }
 0xde9   :  { %v5755_v26 = vpack.c.bf16 %v4493_v11, %v4490_v20  ;;  %v4464_v9 = vld [vmem:[%s8254_s5 + $0x1] ss:$0 sm:$0xff] }
 0xdea   :  { %v2379_v31 = vadd.f32 %v4956_v30, %v2304_v48  ;;  %2388 = vadd.xlane.f32.xlu0 %v7451_v47  ;;  %5778 = vmatprep.subr.bf16.mxu1 %v5777_v58  ;;  %v4492_v48 = vld [vmem:[%s8253_s7 + $0x250] sm:$0xff]  ;;  %v5757_v30 = vpack.c.bf16 %v4500_v28, %v4497_v27  ;;  %v4465_v63 = vld [vmem:[%s8255_s6 + $0x1] ss:$0 sm:$0xff] }
 0xdeb   :  { %5780 = vmatpush3.bf16.msra.mxu1 %v5777_v58 }
 0xdec   :  { %v7455_v33 = vadd.f32 %v2379_v31, %v6992_v37  ;;  %v4469_v37 = vld [vmem:[%s8253_s7 + $0x198] sm:$0xff]  ;;  %5782 = vmatprep.subr.bf16.mxu1 %v5781_v17  ;;  %v4495_v31 = vld [vmem:[%s8253_s7 + $0x268] sm:$0xff] }
 0xded   :  { %v5739_v49 = vpack.c.bf16 %v4469_v37, %v4466_v39  ;;  %v5785_v39 = vpack.c.bf16 %v4495_v31, %v4492_v48  ;;  %v4503_v37 = vld [vmem:[%s8253_s7 + $0x2a8] sm:$0xff] }
 0xdee   :  { %2390 = vadd.xlane.f32.xlu0 %v7455_v33 }
 0xdef   :  { %5740 = vmatpush1.bf16.msra.mxu0 %v5739_v49  ;;  %5784 = vmatpush3.bf16.msra.mxu1 %v5781_v17  ;;  %v5761_v49 = vpack.c.bf16 %v4506_v40, %v4503_v37 }
 0xdf0   :  { %5742 = vmatprep.subr.bf16.mxu0 %v5741_v50  ;;  %5786 = vmatprep.subr.bf16.mxu1 %v5785_v39  ;;  %v4501_v50 = vld [vmem:[%s8253_s7 + $0x298] sm:$0xff] }
 0xdf1   :  { %v5789_v53 = vpack.c.bf16 %v4501_v50, %v4498_v45 }
 0xdf3   :  { %5744 = vmatpush1.bf16.msra.mxu0 %v5743_v57  ;;  %5788 = vmatpush3.bf16.msra.mxu1 %v5785_v39  ;;  %v5765_v57 = vpack.c.bf16 %v4512_v55, %v4509_v54 }
 0xdf4   :  { %5746 = vmatprep.subr.bf16.mxu0 %v5745_v61  ;;  %v4511_v61 = vld [vmem:[%s8253_s7 + $0x2e8] sm:$0xff]  ;;  %5790 = vmatprep.subr.bf16.mxu1 %v5789_v53 }
 0xdf5   :  { %v5767_v0 = vpack.c.bf16 %v4511_v61, %v4508_v60 }
 0xdf7   :  { %5748 = vmatpush1.bf16.msra.mxu0 %v5747_v25  ;;  %5792 = vmatpush3.bf16.msra.mxu1 %v5789_v53  ;;  %v4513_v25 = vld [vmem:[%s8253_s7 + $0x2f8] sm:$0xff] }
 0xdf8   :  { %5750 = vmatprep.subr.bf16.mxu0 %v5749_v44  ;;  %5794 = vmatprep.subr.bf16.mxu1 %v5793_v62 }
 0xdfb   :  { %5752 = vmatpush1.bf16.msra.mxu0 %v5751_v12  ;;  %5796 = vmatpush3.bf16.msra.mxu1 %v5793_v62 }
 0xdfc   :  { %5754 = vmatprep.subr.bf16.mxu0 %v5753_v15 }
 0xdff   :  { %5756 = vmatpush1.bf16.msra.mxu0 %v5755_v26 }
 0xe00   :  { %5758 = vmatprep.subr.bf16.mxu0 %v5757_v30 }
 0xe03   :  { %5760 = vmatpush1.bf16.msra.mxu0 %v5759_v36 }
 0xe04   :  { %5762 = vmatprep.subr.bf16.mxu0 %v5761_v49 }
 0xe07   :  { %5764 = vmatpush1.bf16.msra.mxu0 %v5763_v46 }
 0xe08   :  { %5766 = vmatprep.subr.bf16.mxu0 %v5765_v57 }
 0xe0b   :  { %5768 = vmatpush1.bf16.msra.mxu0 %v5767_v0 }
 0xe77   :  { %v2389_v2 = vpop.xlane.xlu0 %2388 }
 0xe78   :  { %v2392_v3 = vmul.f32 0.0078125, %v2389_v2  ;;  %v5797_v2 = vpack.c.bf16 %v4513_v25, %v4510_v1 }
 0xe7a   :  { %v7507_v51 = vsub.f32 %v7451_v47, %v2392_v3  ;;  %5798 = vmatprep.subr.bf16.mxu1 %v5797_v2 }
 0xe7b   :  { %v2391_v4 = vpop.xlane.xlu0 %2390  ;;  %5800 = vmatpush3.bf16.msra.mxu1 %v5797_v2 }
 0xe7c   :  { %v2393_v24 = vmul.f32 0.0078125, %v2391_v4  ;;  %v2396_v43 = vmul.f32 %v7507_v51, %v7507_v51 }
 0xe7e   :  { %v7512_v5 = vsub.f32 %v7455_v33, %v2393_v24  ;;  %2398 = vadd.xlane.f32.xlu0 %v2396_v43 }
 0xe80   :  { %v2397_v6 = vmul.f32 %v7512_v5, %v7512_v5 }
 0xe82   :  { %2400 = vadd.xlane.f32.xlu1 %v2397_v6 }
 0xf0b   :  { %v2399_v3 = vpop.xlane.xlu0 %2398 }
 0xf0c   :  { %v2402_v4 = vmul.f32 0.0078125, %v2399_v3  ;;  %v7656_v3 = vld [vmem:[%s8257_s4 + $0x8] sm:$0xff] }
 0xf0e   :  { %v2404_v24 = vadd.f32 1e-06, %v2402_v4 }
 0xf0f   :  { %v2401_v43 = vpop.xlane.xlu1 %2400 }
 0xf10   :  { %6133 = vrsqrt.f32 %v2404_v24  ;;  %v2403_v6 = vmul.f32 0.0078125, %v2401_v43  ;;  %v7662_v43 = vld [vmem:[%s8257_s4] sm:$0xff] }
 0xf12   :  { %v2405_v8 = vadd.f32 1e-06, %v2403_v6 }
 0xf14   :  { %6135 = vrsqrt.f32 %v2405_v8 }
 0xf1a   :  { %v6134_v41 = vpop.eup %6133 }
 0xf1b   :  { %v2408_v44 = vmul.f32 %v6134_v41, %v7507_v51  ;;  %v4514_v51 = vld [vmem:[%s8256_s8 + $0x3] sm:$0x7] }
 0xf1c   :  { %v2481_v42 = vrot.slane %v4514_v51, %v6795_v7  ;;  %v2489_v11 = vrot.slane %v4514_v51, %v6802_v21 }
 0xf1d   :  { %v2416_v10 = vmul.f32 %v4464_v9, %v2408_v44 }
 0xf1e   :  { %v6136_v18 = vpop.eup %6135 }
 0xf1f   :  { %v2424_v58 = vadd.f32 %v4465_v63, %v2416_v10  ;;  %v2409_v12 = vmul.f32 %v6136_v18, %v7512_v5  ;;  %v2485_v5 = vrot.slane %v4514_v51, %v6805_v22 }
 0xf21   :  { %2558 = vmatmul.mubr.f32.vlgmr.msra.gmra.mrb[18].mxu0 %v2424_v58  ;;  %5274 = vmatprep.mubr.f32.mxu1 %v2424_v58  ;;  %v2417_v13 = vmul.f32 %v4464_v9, %v2409_v12 }
 0xf22   :  { %2563 = vmatprep.mubr.f32.mxu0 %v6195_v23 }
 0xf23   :  { %v2425_v14 = vadd.f32 %v4465_v63, %v2417_v13 }
 0xf25   :  { %2564 = vmatmul.mubr.f32.gmra.mrb[20].mxu0 %v2425_v14  ;;  %5275 = vmatmul.mubr.f32.vlgmr.msra.gmra.mrb[28].mxu1 %v2425_v14 }
 0xff4   :  { %v2559_v15 = vpop.f32.mrb[18].mxu0 }
 0xff5   :  { %v2560_v16 = vadd.f32 %v2559_v15, %v2481_v42  ;;  %v2561_v20 = vpop.f32.mrb[19].mxu0 }
 0xff6   :  { %v2562_v31 = vadd.f32 %v2561_v20, %v2485_v5 }
 0xff7   :  { %v2645_v17 = vmul.f32 0.17677669, %v2560_v16 }
 0xff8   :  { %v2565_v26 = vpop.f32.mrb[20].mxu0  ;;  %v5276_v27 = vpop.f32.mrb[28].mxu1 }
 0xff9   :  { %v2642_v28 = vadd.f32 %v5276_v27, %v2489_v11  ;;  %v2567_v48 = vpop.f32.mrb[21].mxu0  ;;  %v2636_v30 = vpop.f32.mrb[29].mxu1  ;;  %2842 = vrot.lane.b32.xlu1 %v2645_v17, %s6196_s1  ;;  %5281 = vmatprep.mubr.msk.f32.mxu0 %vm660_vm0, %v2645_v17  ;;  %v2566_v39 = vadd.f32 %v2565_v26, %v2481_v42 }
 0xffa   :  { %v2568_v34 = vadd.f32 %v2567_v48, %v2485_v5  ;;  %v2637_v35 = vadd.f32 %v2636_v30, %v2489_v11 }
 0xffb   :  { %v2646_v49 = vmul.f32 0.17677669, %v2566_v39 }
 0xffc   :  { %v6047_v36 = vpack.i.bf16 %v2568_v34, %v2562_v31  ;;  %v5801_v37 = vpack.c.bf16 %v2568_v34, %v2562_v31  ;;  %v5807_v40 = vpack.c.bf16 %v2642_v28, %v2637_v35  ;;  %v7629_v45 = vpack.i.bf16 %v2642_v28, %v2637_v35 }
 0xffe   :  { %6048 = vrot.lane.b32.xlu0 %v6047_v36, %s6196_s1  ;;  %5803 = vmatprep.subr.msk.bf16.mxu0 %vm6815_vm1, %v5801_v37 }
 0xfff   :  { %6053 = vrot.lane.b32.xlu1 %v6047_v36, %s6197_s30  ;;  %5806 = vmatpush3.bf16.xpose.msk.msra.mxu0 %vm6815_vm1, %v5801_v37 }
0x1000   :  { %5808 = vmatprep.subr.bf16.mxu0 %v5807_v40 }
0x1002   :  { %3210 = vrot.lane.b32.xlu0 %v2645_v17, %s6197_s30 }
0x1003   :  { %2844 = vrot.lane.b32.xlu1 %v2646_v49, %s6196_s1 }
0x1006   :  { %5282 = vmatmul.mubr.msk.f32.vlgmr.msra.gmra.mrb[22].mxu0 %vm660_vm0, %v2646_v49 }
0x1007   :  { %3212 = vrot.lane.b32.xlu1 %v2646_v49, %s6197_s30  ;;  %5810 = vmatpush3.bf16.msra.mxu0 %v5807_v40 }
0x106b   :  { %v2843_v50 = vpop.permute.xlu1 %2842 }
0x106c   :  { %5295 = vmatprep.mubr.msk.f32.mxu1 %vm660_vm0, %v2843_v50 }
0x1070   :  { %v6049_v52 = vpop.permute.xlu0 %6048 }
0x1071   :  { %v6051_v29 = vunpack.i.h.bf16 %v6049_v52  ;;  %v6050_v53 = vunpack.i.l.bf16 %v6049_v52  ;;  %v6054_v46 = vpop.permute.xlu1 %6053 }
0x1072   :  { %v6056_v54 = vunpack.i.h.bf16 %v6054_v46  ;;  %v6055_v55 = vunpack.i.l.bf16 %v6054_v46 }
0x1073   :  { %v5811_v56 = vpack.c.bf16 %v6051_v29, %v6050_v53 }
0x1074   :  { %v5837_v57 = vpack.c.bf16 %v6056_v54, %v6055_v55  ;;  %v3211_v60 = vpop.permute.xlu0 %3210 }
0x1075   :  { %5813 = vmatprep.subr.msk.bf16.mxu1 %vm6815_vm1, %v5811_v56  ;;  %v2845_v59 = vpop.permute.xlu1 %2844 }
0x1076   :  { %5816 = vmatpush3.bf16.xpose.msk.msra.mxu1 %vm6815_vm1, %v5811_v56 }
0x1077   :  { %5839 = vmatprep.subr.msk.bf16.mxu1 %vm6815_vm1, %v5837_v57 }
0x1079   :  { %v3213_v61 = vpop.permute.xlu1 %3212 }
0x107d   :  { %5296 = vmatmul.mubr.msk.f32.vlgmr.msra.gmra.mrb[30].mxu1 %vm660_vm0, %v2845_v59 }
0x107e   :  { %5842 = vmatpush3.bf16.xpose.msk.msra.mxu1 %vm6815_vm1, %v5837_v57  ;;  %5331 = vmatprep.mubr.msk.f32.mxu1 %vm660_vm0, %v3211_v60 }
0x1085   :  { %5332 = vmatmul.mubr.msk.f32.vlgmr.msra.gmra.mrb[32].mxu1 %vm660_vm0, %v3213_v61 }
0x10d9   :  { %v5283_v62 = vpop.f32.mrb[22].mxu0 }
0x10da   :  { %v2725_v0 = vpop.f32.mrb[23].mxu0  ;;  %v2731_v9 = vadd.f32 %v7656_v3, %v5283_v62 }
0x10db   :  { %v2726_v16 = vadd.f32 %v7662_v43, %v2725_v0 }
0x10dc   :  { %v2737_v44 = vsel %vm748_vm2, %v2731_v9, -inf }
0x10dd   :  { %v2734_v11 = vsel %vm748_vm2, %v2726_v16, -inf }
0x1150   :  { %v5297_v1 = vpop.f32.mrb[30].mxu1 }
0x1151   :  { %v2924_v25 = vpop.f32.mrb[31].mxu1  ;;  %v2930_v5 = vadd.f32 %v7656_v3, %v5297_v1 }
0x1152   :  { %v2925_v20 = vadd.f32 %v7662_v43, %v2924_v25 }
0x1153   :  { %v2936_v26 = vsel %vm748_vm2, %v2930_v5, -inf }
0x1158   :  { %v5333_v2 = vpop.f32.mrb[32].mxu1 }
0x1159   :  { %v3298_v4 = vadd.f32 %v7656_v3, %v5333_v2  ;;  %v3292_v24 = vpop.f32.mrb[33].mxu1 }
0x115a   :  { %v3293_v6 = vadd.f32 %v7662_v43, %v3292_v24 }
0x115b   :  { %v3304_v8 = vsel %vm748_vm2, %v3298_v4, -inf }
0x115c   :  { %3305 = vmax.xlane.f32.xlu1 %v3304_v8  ;;  %v3301_v41 = vsel %vm748_vm2, %v3293_v6, -inf }
0x115d   :  { %3302 = vmax.xlane.f32.xlu0 %v3301_v41 }
0x116d   :  { %6063 = vrot.lane.b32.xlu1 %v6047_v36, %s6198_s21 }
0x1171   :  { %3497 = vrot.lane.b32.xlu1 %v2645_v17, %s6198_s21  ;;  %v2933_v17 = vsel %vm748_vm2, %v2925_v20, -inf }
0x1175   :  { %3499 = vrot.lane.b32.xlu1 %v2646_v49, %s6198_s21 }
0x1199   :  { %2738 = vmax.xlane.f32.xlu1 %v2737_v44 }
0x11e9   :  { %v3306_v63 = vpop.xlane.xlu1 %3305 }
0x11ea   :  { %v3308_v10 = vsub.f32 %v3298_v4, %v3306_v63  ;;  %v3303_v18 = vpop.xlane.xlu0 %3302 }
0x11eb   :  { %v3307_v58 = vsub.f32 %v3293_v6, %v3303_v18 }
0x11ec   :  { %v3311_v12 = vmul.f32 1.442695, %v3308_v10 }
0x11ed   :  { %v3309_v13 = vmul.f32 1.442695, %v3307_v58  ;;  %v6064_v48 = vpop.permute.xlu1 %6063 }
0x11ee   :  { %6137 = vpow2.f32 %v3311_v12  ;;  %v6066_v31 = vunpack.i.h.bf16 %v6064_v48  ;;  %v6065_v34 = vunpack.i.l.bf16 %v6064_v48 }
0x11ef   :  { %6139 = vpow2.f32 %v3309_v13 }
0x11f0   :  { %v5855_v37 = vpack.c.bf16 %v6066_v31, %v6065_v34 }
0x11f1   :  { %v3498_v29 = vpop.permute.xlu1 %3497 }
0x11f5   :  { %v3500_v53 = vpop.permute.xlu1 %3499 }
0x11f8   :  { %v6138_v14 = vpop.eup %6137 }
0x11f9   :  { %v3316_v51 = vsel %vm748_vm2, %v6138_v14, 0.0  ;;  %v6140_v42 = vpop.eup %6139 }
0x11fa   :  { %3317 = vadd.xlane.f32.xlu0 %v3316_v51  ;;  %v3313_v15 = vsel %vm748_vm2, %v6140_v42, 0.0 }
0x11fe   :  { %3314 = vadd.xlane.f32.xlu0 %v3313_v15 }
0x1214   :  { %6058 = vrot.lane.b32.xlu0 %v7629_v45, %s6197_s30 }
0x1226   :  { %v2739_v55 = vpop.xlane.xlu1 %2738 }
0x1227   :  { %v2741_v56 = vsub.f32 %v2731_v9, %v2739_v55  ;;  %v4533_v55 = vld [vmem:[%s8258_s9 + $0xb0] sm:$0xff] }
0x1229   :  { %v2744_v61 = vmul.f32 1.442695, %v2741_v56  ;;  %v4534_v56 = vld [vmem:[%s8258_s9 + $0xb8] sm:$0xff] }
0x1233   :  { %2735 = vmax.xlane.f32.xlu0 %v2734_v11 }
0x1237   :  { %2934 = vmax.xlane.f32.xlu0 %v2933_v17 }
0x123b   :  { %2937 = vmax.xlane.f32.xlu0 %v2936_v26 }
0x1287   :  { %v3318_v27 = vpop.xlane.xlu0 %3317 }
0x1288   :  { %6141 = vrcp.f32 %v3318_v27 }
0x128b   :  { %v3315_v28 = vpop.xlane.xlu0 %3314 }
0x128c   :  { %6143 = vrcp.f32 %v3315_v28 }
0x128d   :  { %6145 = vpow2.f32 %v2744_v61 }
0x128f   :  { %v6059_v30 = vpop.permute.xlu0 %6058 }
0x1290   :  { %v6061_v35 = vunpack.i.h.bf16 %v6059_v30  ;;  %v6060_v39 = vunpack.i.l.bf16 %v6059_v30 }
0x1292   :  { %v5843_v36 = vpack.c.bf16 %v6061_v35, %v6060_v39  ;;  %v6142_v40 = vpop.eup %6141 }
0x1293   :  { %v3322_v52 = vmul.f32 %v6142_v40, %v6138_v14 }
0x1294   :  { %5844 = vmatprep.subr.bf16.mxu1 %v5843_v36 }
0x1295   :  { %5846 = vmatpush3.bf16.msra.mxu1 %v5843_v36 }
0x1296   :  { %v6144_v49 = vpop.eup %6143  ;;  %5857 = vmatprep.subr.msk.bf16.mxu1 %vm6815_vm1, %v5855_v37 }
0x1297   :  { %v3321_v50 = vmul.f32 %v6144_v49, %v6140_v42  ;;  %v6146_v9 = vpop.eup %6145 }
0x1298   :  { %v2749_v10 = vsel %vm748_vm2, %v6146_v9, 0.0 }
0x1299   :  { %5338 = vmatprep.mubr.msk.f32.mxu1 %vm748_vm2, %v3321_v50 }
0x129a   :  { %5339 = vmatmul.mubr.msk.f32.vlgmr.msra.gmra.mrb[34].mxu1 %vm748_vm2, %v3322_v52 }
0x129b   :  { %5356 = vmatprep.mubr.msk.f32.mxu1 %vm660_vm0, %v3498_v29 }
0x129e   :  { %5860 = vmatpush3.bf16.xpose.msk.msra.mxu1 %vm6815_vm1, %v5855_v37 }
0x12a5   :  { %5357 = vmatmul.mubr.msk.f32.vlgmr.msra.gmra.mrb[36].mxu1 %vm660_vm0, %v3500_v53  ;;  %v4531_v53 = vld [vmem:[%s8258_s9 + $0xa0] sm:$0xff] }
0x12c0   :  { %v2736_v46 = vpop.xlane.xlu0 %2735 }
0x12c1   :  { %v2740_v57 = vsub.f32 %v2726_v16, %v2736_v46  ;;  %v4532_v46 = vld [vmem:[%s8258_s9 + $0xa8] sm:$0xff] }
0x12c3   :  { %v2742_v1 = vmul.f32 1.442695, %v2740_v57  ;;  %v4521_v57 = vld [vmem:[%s8258_s9 + $0x80] sm:$0xff] }
0x12c4   :  { %v2935_v54 = vpop.xlane.xlu0 %2934 }
0x12c5   :  { %v2939_v25 = vsub.f32 %v2925_v20, %v2935_v54  ;;  %6147 = vpow2.f32 %v2742_v1  ;;  %v5821_v54 = vpack.c.bf16 %v4532_v46, %v4531_v53  ;;  %v4578_v53 = vld [vmem:[%s8260_s13 + $0x248] sm:$0xff] }
0x12c7   :  { %v2941_v2 = vmul.f32 1.442695, %v2939_v25 }
0x12c8   :  { %v2938_v59 = vpop.xlane.xlu0 %2937 }
0x12c9   :  { %v2940_v62 = vsub.f32 %v2930_v5, %v2938_v59  ;;  %v4522_v59 = vld [vmem:[%s8258_s9 + $0x88] sm:$0xff] }
0x12ca   :  { %v5829_v61 = vpack.c.bf16 %v4522_v59, %v4521_v57  ;;  %v4577_v59 = vld [vmem:[%s8260_s13 + $0x240] sm:$0xff] }
0x12cb   :  { %v2943_v38 = vmul.f32 1.442695, %v2940_v62 }
0x12cd   :  { %6149 = vpow2.f32 %v2943_v38 }
0x12ce   :  { %6151 = vpow2.f32 %v2941_v2 }
0x12cf   :  { %v6148_v63 = vpop.eup %6147 }
0x12d0   :  { %v2746_v58 = vsel %vm748_vm2, %v6148_v63, 0.0 }
0x12d7   :  { %v6150_v18 = vpop.eup %6149 }
0x12d8   :  { %v6152_v12 = vpop.eup %6151 }
0x136d   :  { %v7690_v60 = vpop.f32.mrb[34].mxu1 }
0x136e   :  { %v7692_v0 = vpop.f32.mrb[35].mxu1 }
0x1378   :  { %v5358_v4 = vpop.f32.mrb[36].mxu1 }
0x1379   :  { %v3585_v24 = vadd.f32 %v7656_v3, %v5358_v4  ;;  %v3579_v6 = vpop.f32.mrb[37].mxu1  ;;  %v2948_v3 = vsel %vm748_vm2, %v6150_v18, 0.0 }
0x137a   :  { %v3580_v8 = vadd.f32 %v7662_v43, %v3579_v6  ;;  %v2945_v43 = vsel %vm748_vm2, %v6152_v12, 0.0 }
0x137b   :  { %v3591_v41 = vsel %vm748_vm2, %v3585_v24, -inf }
0x137c   :  { %3592 = vmax.xlane.f32.xlu1 %v3591_v41  ;;  %v3588_v44 = vsel %vm748_vm2, %v3580_v8, -inf }
0x137d   :  { %3589 = vmax.xlane.f32.xlu0 %v3588_v44 }
0x1380   :  { %2750 = vadd.xlane.f32.xlu1 %v2749_v10  ;;  %v4524_v10 = vld [vmem:[%s8258_s9 + $0x98] sm:$0xff] }
0x1381   :  { %2747 = vadd.xlane.f32.xlu0 %v2746_v58 }
0x1384   :  { %2949 = vadd.xlane.f32.xlu1 %v2948_v3  ;;  %v4545_v3 = vld [vmem:[%s8258_s9 + $0xc0] sm:$0xff] }
0x1385   :  { %2946 = vadd.xlane.f32.xlu0 %v2945_v43  ;;  %v4546_v43 = vld [vmem:[%s8258_s9 + $0xc8] sm:$0xff] }
0x139b   :  { %6068 = vrot.lane.b32.xlu0 %v7629_v45, %s6196_s1 }
0x1409   :  { %v3593_v13 = vpop.xlane.xlu1 %3592 }
0x140a   :  { %v3595_v14 = vsub.f32 %v3585_v24, %v3593_v13  ;;  %v3590_v51 = vpop.xlane.xlu0 %3589  ;;  %v5847_v13 = vpack.c.bf16 %v4546_v43, %v4545_v3 }
0x140b   :  { %v3594_v42 = vsub.f32 %v3580_v8, %v3590_v51  ;;  %v4548_v51 = vld [vmem:[%s8258_s9 + $0xd8] sm:$0xff] }
0x140c   :  { %v3598_v15 = vmul.f32 1.442695, %v3595_v14  ;;  %v4547_v14 = vld [vmem:[%s8258_s9 + $0xd0] sm:$0xff] }
0x140d   :  { %v3596_v16 = vmul.f32 1.442695, %v3594_v42  ;;  %v2751_v20 = vpop.xlane.xlu1 %2750  ;;  %v5851_v42 = vpack.c.bf16 %v4548_v51, %v4547_v14 }
0x140e   :  { %6153 = vpow2.f32 %v3598_v15  ;;  %v2748_v11 = vpop.xlane.xlu0 %2747  ;;  %v4557_v15 = vld [vmem:[%s8258_s9 + $0xe0] sm:$0xff] }
0x140f   :  { %6155 = vpow2.f32 %v3596_v16  ;;  %v4558_v16 = vld [vmem:[%s8258_s9 + $0xe8] sm:$0xff] }
0x1410   :  { %6157 = vrcp.f32 %v2751_v20  ;;  %v5865_v20 = vpack.c.bf16 %v4558_v16, %v4557_v15  ;;  %v4594_v16 = vld [vmem:[%s8260_s13 + $0x2c8] sm:$0xff] }
0x1411   :  { %6159 = vrcp.f32 %v2748_v11  ;;  %v2950_v5 = vpop.xlane.xlu1 %2949  ;;  %v4559_v11 = vld [vmem:[%s8258_s9 + $0xf0] sm:$0xff] }
0x1412   :  { %v2947_v17 = vpop.xlane.xlu0 %2946 }
0x1413   :  { %6161 = vrcp.f32 %v2947_v17 }
0x1414   :  { %6163 = vrcp.f32 %v2950_v5  ;;  %v4560_v5 = vld [vmem:[%s8258_s9 + $0xf8] sm:$0xff] }
0x1415   :  { %v5869_v17 = vpack.c.bf16 %v4560_v5, %v4559_v11  ;;  %v4596_v11 = vld [vmem:[%s8260_s13 + $0x2d8] sm:$0xff] }
0x1416   :  { %v6069_v26 = vpop.permute.xlu0 %6068 }
0x1417   :  { %v6071_v27 = vunpack.i.h.bf16 %v6069_v26  ;;  %v6070_v28 = vunpack.i.l.bf16 %v6069_v26 }
0x1418   :  { %v6154_v48 = vpop.eup %6153 }
0x1419   :  { %v6156_v30 = vpop.eup %6155  ;;  %v5817_v31 = vpack.c.bf16 %v6071_v27, %v6070_v28  ;;  %v3603_v34 = vsel %vm748_vm2, %v6154_v48, 0.0  ;;  %v4564_v28 = vld [vmem:[%s8259_s10 + $0x1] ss:$0 sm:$0xff] }
0x141a   :  { %v6158_v35 = vpop.eup %6157  ;;  %3604 = vadd.xlane.f32.xlu1 %v3603_v34  ;;  %v3600_v49 = vsel %vm748_vm2, %v6156_v30, 0.0 }
0x141b   :  { %v6160_v39 = vpop.eup %6159  ;;  %5818 = vmatprep.subr.bf16.mxu0 %v5817_v31  ;;  %v2755_v40 = vmul.f32 %v6158_v35, %v6146_v9  ;;  %v4570_v35 = vld [vmem:[%s8260_s13 + $0x208] sm:$0xff] }
0x141c   :  { %v2754_v36 = vmul.f32 %v6160_v39, %v6148_v63  ;;  %v4523_v63 = vld [vmem:[%s8258_s9 + $0x90] sm:$0xff]  ;;  %v4574_v39 = vld [vmem:[%s8260_s13 + $0x228] sm:$0xff] }
0x141d   :  { %v6162_v37 = vpop.eup %6161 }
0x141e   :  { %v6164_v50 = vpop.eup %6163  ;;  %5288 = vmatprep.mubr.msk.f32.mxu0 %vm748_vm2, %v2754_v36  ;;  %3601 = vadd.xlane.f32.xlu1 %v3600_v49  ;;  %v2953_v52 = vmul.f32 %v6162_v37, %v6152_v12  ;;  %v5833_v12 = vpack.c.bf16 %v4524_v10, %v4523_v63  ;;  %v4576_v36 = vld [vmem:[%s8260_s13 + $0x238] sm:$0xff]  ;;  %v4569_v37 = vld [vmem:[%s8260_s13 + $0x200] sm:$0xff]  ;;  %v4587_v63 = vld [vmem:[%s8260_s13 + $0x290] sm:$0xff] }
0x141f   :  { %5289 = vmatmul.mubr.msk.f32.vlgmr.msra.gmra.mrb[24].mxu0 %vm748_vm2, %v2755_v40  ;;  %v2954_v29 = vmul.f32 %v6164_v50, %v6150_v18  ;;  %v4573_v40 = vld [vmem:[%s8260_s13 + $0x220] sm:$0xff]  ;;  %v4591_v10 = vld [vmem:[%s8260_s13 + $0x2b0] sm:$0xff] }
0x1420   :  { %5820 = vmatpush3.bf16.msra.mxu0 %v5817_v31  ;;  %5302 = vmatprep.mubr.msk.f32.mxu0 %vm748_vm2, %v2953_v52  ;;  %v5875_v50 = vpack.c.bf16 %v4573_v40, %v4569_v37  ;;  %v4571_v52 = vld [vmem:[%s8260_s13 + $0x210] sm:$0xff]  ;;  %v4601_v37 = vld [vmem:[%s8260_s13 + $0x300] sm:$0xff] }
0x1421   :  { %5822 = vmatprep.subr.bf16.mxu0 %v5821_v54  ;;  %v4605_v40 = vld [vmem:[%s8260_s13 + $0x320] sm:$0xff] }
0x1423   :  { %5303 = vmatmul.mubr.msk.f32.vlgmr.msra.gmra.mrb[26].mxu0 %vm748_vm2, %v2954_v29  ;;  %v4575_v29 = vld [vmem:[%s8260_s13 + $0x230] sm:$0xff] }
0x1424   :  { %5824 = vmatpush3.bf16.msra.mxu0 %v5821_v54  ;;  %v5907_v46 = vpack.c.bf16 %v4575_v29, %v4571_v52  ;;  %v4582_v54 = vld [vmem:[%s8260_s13 + $0x268] sm:$0xff]  ;;  %v4603_v52 = vld [vmem:[%s8260_s13 + $0x310] sm:$0xff] }
0x1425   :  { %v4607_v29 = vld [vmem:[%s8260_s13 + $0x330] sm:$0xff] }
0x142f   :  { %6073 = vrot.lane.b32.xlu1 %v7629_v45, %s6198_s21  ;;  %v5825_v45 = vpack.c.bf16 %v4534_v56, %v4533_v55  ;;  %v4580_v55 = vld [vmem:[%s8260_s13 + $0x258] sm:$0xff] }
0x1430   :  { %v4584_v56 = vld [vmem:[%s8260_s13 + $0x278] sm:$0xff] }
0x1431   :  { %5826 = vmatprep.subr.bf16.mxu0 %v5825_v45  ;;  %v5909_v57 = vpack.c.bf16 %v4584_v56, %v4580_v55  ;;  %v4612_v55 = vld [vmem:[%s8260_s13 + $0x358] sm:$0xff] }
0x1432   :  { %5828 = vmatpush3.bf16.msra.mxu0 %v5825_v45  ;;  %v5877_v45 = vpack.c.bf16 %v4582_v54, %v4578_v53  ;;  %v4610_v53 = vld [vmem:[%s8260_s13 + $0x348] sm:$0xff]  ;;  %v4616_v56 = vld [vmem:[%s8260_s13 + $0x378] sm:$0xff] }
0x1433   :  { %5830 = vmatprep.subr.bf16.mxu0 %v5829_v61  ;;  %v4614_v54 = vld [vmem:[%s8260_s13 + $0x368] sm:$0xff] }
0x14a7   :  { %v3605_v62 = vpop.xlane.xlu1 %3604 }
0x14a8   :  { %6165 = vrcp.f32 %v3605_v62  ;;  %v4579_v62 = vld [vmem:[%s8260_s13 + $0x250] sm:$0xff] }
0x14ab   :  { %v3602_v1 = vpop.xlane.xlu1 %3601 }
0x14ac   :  { %6167 = vrcp.f32 %v3602_v1 }
0x14af   :  { %v6074_v25 = vpop.permute.xlu1 %6073 }
0x14b0   :  { %v6076_v38 = vunpack.i.h.bf16 %v6074_v25  ;;  %v6075_v2 = vunpack.i.l.bf16 %v6074_v25  ;;  %v4583_v25 = vld [vmem:[%s8260_s13 + $0x270] sm:$0xff] }
0x14b2   :  { %v5861_v4 = vpack.c.bf16 %v6076_v38, %v6075_v2  ;;  %v6166_v24 = vpop.eup %6165  ;;  %v4586_v38 = vld [vmem:[%s8260_s13 + $0x288] sm:$0xff] }
0x14b3   :  { %v3609_v41 = vmul.f32 %v6166_v24, %v6154_v48  ;;  %v4590_v2 = vld [vmem:[%s8260_s13 + $0x2a8] sm:$0xff] }
0x14b4   :  { %5862 = vmatprep.subr.bf16.mxu1 %v5861_v4  ;;  %v5881_v24 = vpack.c.bf16 %v4590_v2, %v4586_v38  ;;  %v4618_v38 = vld [vmem:[%s8260_s13 + $0x388] sm:$0xff] }
0x14b5   :  { %5864 = vmatpush3.bf16.msra.mxu1 %v5861_v4  ;;  %v5911_v4 = vpack.c.bf16 %v4583_v25, %v4579_v62  ;;  %v4611_v62 = vld [vmem:[%s8260_s13 + $0x350] sm:$0xff]  ;;  %v4622_v2 = vld [vmem:[%s8260_s13 + $0x3a8] sm:$0xff] }
0x14b6   :  { %v6168_v6 = vpop.eup %6167  ;;  %v4615_v25 = vld [vmem:[%s8260_s13 + $0x370] sm:$0xff] }
0x14b7   :  { %v3608_v8 = vmul.f32 %v6168_v6, %v6156_v30  ;;  %v4588_v6 = vld [vmem:[%s8260_s13 + $0x298] sm:$0xff] }
0x14b9   :  { %5363 = vmatprep.mubr.msk.f32.mxu1 %vm748_vm2, %v3608_v8  ;;  %v4592_v8 = vld [vmem:[%s8260_s13 + $0x2b8] sm:$0xff] }
0x14ba   :  { %5364 = vmatmul.mubr.msk.f32.vlgmr.msra.gmra.mrb[38].mxu1 %vm748_vm2, %v3609_v41  ;;  %v4585_v41 = vld [vmem:[%s8260_s13 + $0x280] sm:$0xff] }
0x14bb   :  { %3990 = vmatprep.mubr.f32.mxu1 %v6195_v23 }
0x14f2   :  { %v5290_v9 = vpop.f32.mrb[24].mxu0 }
0x14f3   :  { %v2828_v44 = vpop.f32.mrb[25].mxu0 }
0x14f6   :  { %v5304_v18 = vpop.f32.mrb[26].mxu0 }
0x14f7   :  { %v3035_v58 = vpop.f32.mrb[27].mxu0 }
0x14f8   :  { %5313 = vmatprep.mubr.msk.f32.mxu0 %vm660_vm0, %v3035_v58  ;;  %v5915_v58 = vpack.c.bf16 %v4591_v10, %v4587_v63  ;;  %v4619_v63 = vld [vmem:[%s8260_s13 + $0x390] sm:$0xff] }
0x14f9   :  { %5314 = vmatmul.mubr.msk.f32.vlgmr.msra.gmra.mrb[28].mxu0 %vm660_vm0, %v5304_v18  ;;  %v4623_v10 = vld [vmem:[%s8260_s13 + $0x3b0] sm:$0xff] }
0x14fa   :  { %5832 = vmatpush3.bf16.msra.mxu0 %v5829_v61  ;;  %5324 = vmatprep.mubr.msk.f32.mxu0 %vm660_vm0, %v2828_v44  ;;  %v4581_v61 = vld [vmem:[%s8260_s13 + $0x260] sm:$0xff] }
0x14fb   :  { %5834 = vmatprep.subr.bf16.mxu0 %v5833_v12  ;;  %v5879_v1 = vpack.c.bf16 %v4581_v61, %v4577_v59  ;;  %v4589_v44 = vld [vmem:[%s8260_s13 + $0x2a0] sm:$0xff] }
0x14fc   :  { %v5883_v18 = vpack.c.bf16 %v4589_v44, %v4585_v41  ;;  %v4609_v59 = vld [vmem:[%s8260_s13 + $0x340] sm:$0xff] }
0x14fd   :  { %v4613_v61 = vld [vmem:[%s8260_s13 + $0x360] sm:$0xff] }
0x14fe   :  { %5836 = vmatpush3.bf16.msra.mxu0 %v5833_v12  ;;  %v4617_v41 = vld [vmem:[%s8260_s13 + $0x380] sm:$0xff] }
0x14ff   :  { %5848 = vmatprep.subr.bf16.mxu0 %v5847_v13  ;;  %v4621_v44 = vld [vmem:[%s8260_s13 + $0x3a0] sm:$0xff] }
0x1501   :  { %5325 = vmatmul.mubr.msk.f32.vlgmr.msra.gmra.mrb[28].mxu0 %vm660_vm0, %v5290_v9  ;;  %v5913_v9 = vpack.c.bf16 %v4592_v8, %v4588_v6  ;;  %v4620_v6 = vld [vmem:[%s8260_s13 + $0x398] sm:$0xff] }
0x1502   :  { %5850 = vmatpush3.bf16.msra.mxu0 %v5847_v13  ;;  %5349 = vmatprep.mubr.msk.f32.mxu0 %vm660_vm0, %v7692_v0  ;;  %v4624_v8 = vld [vmem:[%s8260_s13 + $0x3b8] sm:$0xff] }
0x1503   :  { %5852 = vmatprep.subr.bf16.mxu0 %v5851_v42 }
0x1506   :  { %5854 = vmatpush3.bf16.msra.mxu0 %v5851_v42 }
0x1507   :  { %5866 = vmatprep.subr.bf16.mxu0 %v5865_v20 }
0x1509   :  { %5350 = vmatmul.mubr.msk.f32.vlgmr.msra.gmra.mrb[28].mxu0 %vm660_vm0, %v7690_v60 }
0x150a   :  { %5868 = vmatpush3.bf16.msra.mxu0 %v5865_v20  ;;  %v4598_v20 = vld [vmem:[%s8260_s13 + $0x2e8] sm:$0xff] }
0x150b   :  { %5870 = vmatprep.subr.bf16.mxu0 %v5869_v17  ;;  %v5885_v5 = vpack.c.bf16 %v4598_v20, %v4594_v16  ;;  %v4629_v16 = vld [vmem:[%s8260_s13 + $0x3e0] sm:$0xff] }
0x150e   :  { %5872 = vmatpush3.bf16.msra.mxu0 %v5869_v17  ;;  %v4600_v17 = vld [vmem:[%s8260_s13 + $0x2f8] sm:$0xff] }
0x158d   :  { %v5365_v0 = vpop.f32.mrb[38].mxu1 }
0x158e   :  { %v3688_v26 = vpop.f32.mrb[39].mxu1 }
0x158f   :  { %5374 = vmatprep.mubr.msk.f32.mxu0 %vm660_vm0, %v3688_v26  ;;  %v4597_v26 = vld [vmem:[%s8260_s13 + $0x2e0] sm:$0xff] }
0x1590   :  { %5375 = vmatmul.mubr.msk.f32.vlgmr.msra.gmra.mrb[28].mxu0 %vm660_vm0, %v5365_v0  ;;  %v4593_v0 = vld [vmem:[%s8260_s13 + $0x2c0] sm:$0xff] }
0x1591   :  { %4067 = vmatprep.mubr.f32.mxu0 %v6195_v23 }
0x1663   :  { %v5376_v27 = vpop.f32.mrb[28].mxu0 }
0x1664   :  { %v3785_v48 = vadd.f32 %v5376_v27, %v7455_v33  ;;  %v3773_v30 = vpop.f32.mrb[29].mxu0  ;;  %v5873_v33 = vpack.c.bf16 %v4574_v39, %v4570_v35  ;;  %v5917_v27 = vpack.c.bf16 %v4600_v17, %v4596_v11  ;;  %v4602_v35 = vld [vmem:[%s8260_s13 + $0x308] sm:$0xff]  ;;  %v4627_v11 = vld [vmem:[%s8260_s13 + $0x3d0] sm:$0xff] }
0x1665   :  { %v3784_v60 = vadd.f32 %v3773_v30, %v7451_v47  ;;  %v4572_v47 = vld [vmem:[%s8260_s13 + $0x218] sm:$0xff]  ;;  %v4599_v30 = vld [vmem:[%s8260_s13 + $0x2f0] sm:$0xff]  ;;  %v4606_v39 = vld [vmem:[%s8260_s13 + $0x328] sm:$0xff] }
0x1666   :  { %v7779_v31 = vadd.f32 %v4564_v28, %v3785_v48  ;;  %v5905_v49 = vpack.c.bf16 %v4576_v36, %v4572_v47  ;;  %5874 = vmatprep.subr.bf16.mxu1 %v5873_v33  ;;  %v4595_v48 = vld [vmem:[%s8260_s13 + $0x2d0] sm:$0xff]  ;;  %v4604_v47 = vld [vmem:[%s8260_s13 + $0x318] sm:$0xff]  ;;  %v5889_v33 = vpack.c.bf16 %v4606_v39, %v4602_v35 }
0x1667   :  { %v7781_v34 = vadd.f32 %v4564_v28, %v3784_v60  ;;  %5876 = vmatpush1.bf16.msra.mxu1 %v5875_v50  ;;  %v5887_v28 = vpack.c.bf16 %v4597_v26, %v4593_v0  ;;  %v5919_v60 = vpack.c.bf16 %v4599_v30, %v4595_v48  ;;  %v4608_v36 = vld [vmem:[%s8260_s13 + $0x338] sm:$0xff]  ;;  %v5891_v50 = vpack.c.bf16 %v4605_v40, %v4601_v37  ;;  %v4650_v26 = vld [vmem:[%s8261_s15 + $0x280] sm:$0xff]  ;;  %v4683_v30 = vld [vmem:[%s8261_s15 + $0x388] sm:$0xff] }
0x1668   :  { %3802 = vadd.xlane.f32.xlu1 %v7779_v31  ;;  %5906 = vmatprep.subr.bf16.mxu0 %v5905_v49  ;;  %v5921_v49 = vpack.c.bf16 %v4608_v36, %v4604_v47 }
0x1669   :  { %3800 = vadd.xlane.f32.xlu0 %v7781_v34  ;;  %5908 = vmatpush1.bf16.msra.mxu0 %v5907_v46  ;;  %v5923_v46 = vpack.c.bf16 %v4607_v29, %v4603_v52  ;;  %v4634_v29 = vld [vmem:[%s8261_s15 + $0x200] sm:$0xff] }
0x166a   :  { %5878 = vmatprep.subr.bf16.mxu1 %v5877_v45  ;;  %5910 = vmatprep.subr.bf16.mxu0 %v5909_v57  ;;  %v5893_v45 = vpack.c.bf16 %v4614_v54, %v4610_v53  ;;  %v5925_v57 = vpack.c.bf16 %v4616_v56, %v4612_v55  ;;  %v4635_v53 = vld [vmem:[%s8261_s15 + $0x208] sm:$0xff] }
0x166b   :  { %5880 = vmatpush1.bf16.msra.mxu1 %v5879_v1  ;;  %v5895_v1 = vpack.c.bf16 %v4613_v61, %v4609_v59  ;;  %v4667_v54 = vld [vmem:[%s8261_s15 + $0x308] sm:$0xff] }
0x166c   :  { %5882 = vmatprep.subr.bf16.mxu1 %v5881_v24  ;;  %v5897_v24 = vpack.c.bf16 %v4622_v2, %v4618_v38  ;;  %v4636_v2 = vld [vmem:[%s8261_s15 + $0x210] sm:$0xff] }
0x166d   :  { %5912 = vmatpush1.bf16.msra.mxu0 %v5911_v4  ;;  %v5927_v4 = vpack.c.bf16 %v4615_v25, %v4611_v62  ;;  %v4684_v25 = vld [vmem:[%s8261_s15 + $0x390] sm:$0xff] }
0x166e   :  { %5914 = vmatprep.subr.bf16.mxu0 %v5913_v9  ;;  %v5929_v9 = vpack.c.bf16 %v4624_v8, %v4620_v6  ;;  %v4668_v8 = vld [vmem:[%s8261_s15 + $0x310] sm:$0xff] }
0x166f   :  { %5884 = vmatpush1.bf16.msra.mxu1 %v5883_v18  ;;  %v5899_v18 = vpack.c.bf16 %v4621_v44, %v4617_v41  ;;  %v4669_v41 = vld [vmem:[%s8261_s15 + $0x318] sm:$0xff]  ;;  %v4654_v44 = vld [vmem:[%s8261_s15 + $0x2a0] sm:$0xff] }
0x1670   :  { %5886 = vmatprep.subr.bf16.mxu1 %v5885_v5  ;;  %v4631_v5 = vld [vmem:[%s8260_s13 + $0x3f0] sm:$0xff] }
0x1671   :  { %5916 = vmatpush1.bf16.msra.mxu0 %v5915_v58  ;;  %v4626_v58 = vld [vmem:[%s8260_s13 + $0x3c8] sm:$0xff]  ;;  %v5935_v0 = vpack.c.bf16 %v4631_v5, %v4627_v11  ;;  %v4657_v11 = vld [vmem:[%s8261_s15 + $0x2b8] sm:$0xff]  ;;  %v4688_v5 = vld [vmem:[%s8261_s15 + $0x3b0] sm:$0xff] }
0x1672   :  { %5918 = vmatprep.subr.bf16.mxu0 %v5917_v27  ;;  %v4651_v27 = vld [vmem:[%s8261_s15 + $0x288] sm:$0xff] }
0x1673   :  { %5888 = vmatpush1.bf16.msra.mxu1 %v5887_v28  ;;  %v4682_v28 = vld [vmem:[%s8261_s15 + $0x380] sm:$0xff]  ;;  %v5937_v48 = vpack.c.bf16 %v4651_v27, %v4650_v26  ;;  %v4640_v26 = vld [vmem:[%s8261_s15 + $0x230] sm:$0xff]  ;;  %v4641_v27 = vld [vmem:[%s8261_s15 + $0x238] sm:$0xff] }
0x1674   :  { %5890 = vmatprep.subr.bf16.mxu1 %v5889_v33 }
0x1675   :  { %5920 = vmatpush1.bf16.msra.mxu0 %v5919_v60  ;;  %v5969_v60 = vpack.c.bf16 %v4683_v30, %v4682_v28  ;;  %v4672_v30 = vld [vmem:[%s8261_s15 + $0x330] sm:$0xff] }
0x1676   :  { %5922 = vmatprep.subr.bf16.mxu0 %v5921_v49  ;;  %v4567_v49 = vld [vmem:[%s8262_s11 + $0x1] ss:$0 sm:$0xff] }
0x1677   :  { %5892 = vmatpush1.bf16.msra.mxu1 %v5891_v50  ;;  %v4568_v50 = vld [vmem:[%s8263_s12 + $0x1] ss:$0 sm:$0xff] }
0x1678   :  { %5894 = vmatprep.subr.bf16.mxu1 %v5893_v45 }
0x1679   :  { %5924 = vmatpush1.bf16.msra.mxu0 %v5923_v46  ;;  %v4666_v46 = vld [vmem:[%s8261_s15 + $0x300] sm:$0xff] }
0x167a   :  { %5926 = vmatprep.subr.bf16.mxu0 %v5925_v57  ;;  %v5939_v57 = vpack.c.bf16 %v4635_v53, %v4634_v29  ;;  %v5971_v59 = vpack.c.bf16 %v4667_v54, %v4666_v46  ;;  %v4675_v53 = vld [vmem:[%s8261_s15 + $0x348] sm:$0xff]  ;;  %v4660_v46 = vld [vmem:[%s8261_s15 + $0x2d0] sm:$0xff]  ;;  %v4661_v54 = vld [vmem:[%s8261_s15 + $0x2d8] sm:$0xff] }
0x167b   :  { %5896 = vmatpush1.bf16.msra.mxu1 %v5895_v1  ;;  %v4652_v1 = vld [vmem:[%s8261_s15 + $0x290] sm:$0xff] }
0x167c   :  { %5898 = vmatprep.subr.bf16.mxu1 %v5897_v24 }
0x167d   :  { %5928 = vmatpush1.bf16.msra.mxu0 %v5927_v4  ;;  %v4637_v4 = vld [vmem:[%s8261_s15 + $0x218] sm:$0xff] }
0x167e   :  { %5930 = vmatprep.subr.bf16.mxu0 %v5929_v9  ;;  %v5943_v6 = vpack.c.bf16 %v4637_v4, %v4636_v2  ;;  %v5975_v9 = vpack.c.bf16 %v4669_v41, %v4668_v8  ;;  %v4647_v8 = vld [vmem:[%s8261_s15 + $0x268] sm:$0xff] }
0x167f   :  { %5900 = vmatpush1.bf16.msra.mxu1 %v5899_v18 }
0x16f5   :  { %v3803_v12 = vpop.xlane.xlu1 %3802 }
0x16f6   :  { %v3801_v3 = vpop.xlane.xlu0 %3800  ;;  %v3805_v43 = vmul.f32 0.0078125, %v3803_v12  ;;  %v4630_v12 = vld [vmem:[%s8260_s13 + $0x3e8] sm:$0xff] }
0x16f7   :  { %v3804_v13 = vmul.f32 0.0078125, %v3801_v3  ;;  %v4628_v3 = vld [vmem:[%s8260_s13 + $0x3d8] sm:$0xff] }
0x16f8   :  { %v7861_v51 = vsub.f32 %v7779_v31, %v3805_v43  ;;  %v5931_v43 = vpack.c.bf16 %v4623_v10, %v4619_v63  ;;  %v4655_v63 = vld [vmem:[%s8261_s15 + $0x2a8] sm:$0xff]  ;;  %v4686_v10 = vld [vmem:[%s8261_s15 + $0x3a0] sm:$0xff] }
0x16f9   :  { %v7858_v14 = vsub.f32 %v7781_v34, %v3804_v13  ;;  %v5901_v13 = vpack.c.bf16 %v4630_v12, %v4626_v58  ;;  %v5945_v18 = vpack.c.bf16 %v4655_v63, %v4654_v44  ;;  %v4687_v58 = vld [vmem:[%s8261_s15 + $0x3a8] sm:$0xff]  ;;  %v4638_v12 = vld [vmem:[%s8261_s15 + $0x220] sm:$0xff]  ;;  %v4664_v63 = vld [vmem:[%s8261_s15 + $0x2f0] sm:$0xff] }
0x16fa   :  { %v3809_v15 = vmul.f32 %v7861_v51, %v7861_v51  ;;  %5932 = vmatpush1.bf16.msra.mxu0 %v5931_v43  ;;  %v5977_v43 = vpack.c.bf16 %v4687_v58, %v4686_v10  ;;  %v4679_v44 = vld [vmem:[%s8261_s15 + $0x368] sm:$0xff]  ;;  %v4665_v10 = vld [vmem:[%s8261_s15 + $0x2f8] sm:$0xff] }
0x16fb   :  { %v3808_v42 = vmul.f32 %v7858_v14, %v7858_v14  ;;  %5902 = vmatprep.subr.bf16.mxu1 %v5901_v13  ;;  %v4697_v58 = vld [vmem:[%s8261_s15 + $0x3f8] sm:$0xff] }
0x16fd   :  { %3810 = vadd.xlane.f32.xlu0 %v3808_v42  ;;  %v4632_v42 = vld [vmem:[%s8260_s13 + $0x3f8] sm:$0xff] }
0x16fe   :  { %v5933_v20 = vpack.c.bf16 %v4632_v42, %v4628_v3  ;;  %v4639_v3 = vld [vmem:[%s8261_s15 + $0x228] sm:$0xff]  ;;  %v4670_v42 = vld [vmem:[%s8261_s15 + $0x320] sm:$0xff] }
0x16ff   :  { %v5947_v13 = vpack.c.bf16 %v4639_v3, %v4638_v12 }
0x1700   :  { %5934 = vmatprep.subr.bf16.mxu0 %v5933_v20  ;;  %v4656_v20 = vld [vmem:[%s8261_s15 + $0x2b0] sm:$0xff] }
0x1701   :  { %3812 = vadd.xlane.f32.xlu0 %v3809_v15  ;;  %v4625_v15 = vld [vmem:[%s8260_s13 + $0x3c0] sm:$0xff]  ;;  %5936 = vmatpush1.bf16.msra.mxu0 %v5935_v0  ;;  %v4689_v0 = vld [vmem:[%s8261_s15 + $0x3b8] sm:$0xff] }
0x1702   :  { %v5903_v17 = vpack.c.bf16 %v4629_v16, %v4625_v15  ;;  %5970 = vmatprep.subr.bf16.mxu0 %v5969_v60  ;;  %v4671_v15 = vld [vmem:[%s8261_s15 + $0x328] sm:$0xff]  ;;  %v5981_v28 = vpack.c.bf16 %v4689_v0, %v4688_v5  ;;  %v4673_v60 = vld [vmem:[%s8261_s15 + $0x338] sm:$0xff] }
0x1703   :  { %v5979_v16 = vpack.c.bf16 %v4671_v15, %v4670_v42  ;;  %v4649_v42 = vld [vmem:[%s8261_s15 + $0x278] sm:$0xff] }
0x1704   :  { %5904 = vmatpush1.bf16.msra.mxu1 %v5903_v17  ;;  %v5949_v17 = vpack.c.bf16 %v4657_v11, %v4656_v20  ;;  %v4681_v20 = vld [vmem:[%s8261_s15 + $0x378] sm:$0xff] }
0x1705   :  { %5938 = vmatprep.subr.bf16.mxu1 %v5937_v48  ;;  %v5951_v48 = vpack.c.bf16 %v4641_v27, %v4640_v26 }
0x178a   :  { %v3811_v35 = vpop.xlane.xlu0 %3810 }
0x178b   :  { %v3814_v39 = vmul.f32 0.0078125, %v3811_v35  ;;  %v4658_v35 = vld [vmem:[%s8261_s15 + $0x2c0] sm:$0xff] }
0x178d   :  { %v3816_v47 = vadd.f32 1e-06, %v3814_v39  ;;  %v5983_v39 = vpack.c.bf16 %v4673_v60, %v4672_v30 }
0x178e   :  { %v3813_v33 = vpop.xlane.xlu0 %3812 }
0x178f   :  { %6169 = vrsqrt.f32 %v3816_v47  ;;  %v3815_v36 = vmul.f32 0.0078125, %v3813_v33  ;;  %v4659_v47 = vld [vmem:[%s8261_s15 + $0x2c8] sm:$0xff]  ;;  %v4690_v33 = vld [vmem:[%s8261_s15 + $0x3c0] sm:$0xff] }
0x1791   :  { %v3817_v37 = vadd.f32 1e-06, %v3815_v36  ;;  %v4691_v36 = vld [vmem:[%s8261_s15 + $0x3c8] sm:$0xff] }
0x1793   :  { %6171 = vrsqrt.f32 %v3817_v37  ;;  %v5953_v37 = vpack.c.bf16 %v4659_v47, %v4658_v35 }
0x1799   :  { %v6170_v40 = vpop.eup %6169 }
0x179a   :  { %v3820_v52 = vmul.f32 %v6170_v40, %v7858_v14  ;;  %v5985_v40 = vpack.c.bf16 %v4691_v36, %v4690_v33 }
0x179c   :  { %v3828_v55 = vmul.f32 %v4567_v49, %v3820_v52  ;;  %v4674_v52 = vld [vmem:[%s8261_s15 + $0x340] sm:$0xff] }
0x179d   :  { %v6172_v56 = vpop.eup %6171 }
0x179e   :  { %v3836_v45 = vadd.f32 %v4568_v50, %v3828_v55  ;;  %v3821_v14 = vmul.f32 %v6172_v56, %v7861_v51  ;;  %v4653_v51 = vld [vmem:[%s8261_s15 + $0x298] sm:$0xff]  ;;  %v5987_v55 = vpack.c.bf16 %v4675_v53, %v4674_v52  ;;  %v5957_v56 = vpack.c.bf16 %v4661_v54, %v4660_v46 }
0x179f   :  { %v5941_v38 = vpack.c.bf16 %v4653_v51, %v4652_v1  ;;  %v4677_v1 = vld [vmem:[%s8261_s15 + $0x358] sm:$0xff] }
0x17a0   :  { %3991 = vmatmul.mubr.f32.vlgmr.msra.gmra.mrb[40].mxu1 %v3836_v45  ;;  %4068 = vmatmul.mubr.f32.vlgmr.msra.gmra.mrb[30].mxu0 %v3836_v45  ;;  %v3829_v61 = vmul.f32 %v4567_v49, %v3821_v14  ;;  %v4642_v49 = vld [vmem:[%s8261_s15 + $0x240] sm:$0xff]  ;;  %v4692_v45 = vld [vmem:[%s8261_s15 + $0x3d0] sm:$0xff]  ;;  %v4693_v14 = vld [vmem:[%s8261_s15 + $0x3d8] sm:$0xff] }
0x17a1   :  { %3996 = vmatprep.mubr.f32.mxu1 %v6195_v23  ;;  %4073 = vmatprep.mubr.f32.mxu0 %v6195_v23  ;;  %v4685_v23 = vld [vmem:[%s8261_s15 + $0x398] sm:$0xff] }
0x17a2   :  { %v3837_v62 = vadd.f32 %v4568_v50, %v3829_v61  ;;  %5940 = vmatpush3.bf16.msra.mxu1 %v5939_v57  ;;  %5972 = vmatpush3.bf16.msra.mxu0 %v5971_v59  ;;  %v5973_v24 = vpack.c.bf16 %v4685_v23, %v4684_v25  ;;  %v4643_v50 = vld [vmem:[%s8261_s15 + $0x248] sm:$0xff]  ;;  %v4644_v57 = vld [vmem:[%s8261_s15 + $0x250] sm:$0xff]  ;;  %v5989_v59 = vpack.c.bf16 %v4693_v14, %v4692_v45  ;;  %v4645_v61 = vld [vmem:[%s8261_s15 + $0x258] sm:$0xff] }
0x17a3   :  { %5942 = vmatprep.subr.bf16.mxu1 %v5941_v38  ;;  %v5955_v29 = vpack.c.bf16 %v4643_v50, %v4642_v49  ;;  %v5959_v51 = vpack.c.bf16 %v4645_v61, %v4644_v57  ;;  %v4662_v25 = vld [vmem:[%s8261_s15 + $0x2e0] sm:$0xff]  ;;  %v4663_v38 = vld [vmem:[%s8261_s15 + $0x2e8] sm:$0xff] }
0x17a4   :  { %3997 = vmatmul.mubr.f32.gmra.mrb[42].mxu1 %v3837_v62  ;;  %4074 = vmatmul.mubr.f32.gmra.mrb[32].mxu0 %v3837_v62  ;;  %v4676_v62 = vld [vmem:[%s8261_s15 + $0x350] sm:$0xff]  ;;  %v4694_v23 = vld [vmem:[%s8261_s15 + $0x3e0] sm:$0xff]  ;;  %v5961_v4 = vpack.c.bf16 %v4663_v38, %v4662_v25 }
0x17a5   :  { %5974 = vmatprep.subr.bf16.mxu0 %v5973_v24  ;;  %v5991_v2 = vpack.c.bf16 %v4677_v1, %v4676_v62  ;;  %v4695_v24 = vld [vmem:[%s8261_s15 + $0x3e8] sm:$0xff] }
0x17a6   :  { %5944 = vmatpush3.bf16.msra.mxu1 %v5943_v6  ;;  %5976 = vmatpush3.bf16.msra.mxu0 %v5975_v9  ;;  %v4646_v6 = vld [vmem:[%s8261_s15 + $0x260] sm:$0xff]  ;;  %v5993_v41 = vpack.c.bf16 %v4695_v24, %v4694_v23 }
0x17a7   :  { %5946 = vmatprep.subr.bf16.mxu1 %v5945_v18  ;;  %5978 = vmatprep.subr.bf16.mxu0 %v5977_v43  ;;  %v4678_v9 = vld [vmem:[%s8261_s15 + $0x360] sm:$0xff]  ;;  %v4696_v18 = vld [vmem:[%s8261_s15 + $0x3f0] sm:$0xff]  ;;  %v5963_v12 = vpack.c.bf16 %v4647_v8, %v4646_v6  ;;  %v5965_v43 = vpack.c.bf16 %v4665_v10, %v4664_v63 }
0x17a8   :  { %v5995_v3 = vpack.c.bf16 %v4679_v44, %v4678_v9  ;;  %v5997_v15 = vpack.c.bf16 %v4697_v58, %v4696_v18 }
0x17aa   :  { %5948 = vmatpush3.bf16.msra.mxu1 %v5947_v13  ;;  %5980 = vmatpush3.bf16.msra.mxu0 %v5979_v16  ;;  %v4648_v13 = vld [vmem:[%s8261_s15 + $0x270] sm:$0xff] }
0x17ab   :  { %5950 = vmatprep.subr.bf16.mxu1 %v5949_v17  ;;  %5982 = vmatprep.subr.bf16.mxu0 %v5981_v28  ;;  %v4680_v16 = vld [vmem:[%s8261_s15 + $0x370] sm:$0xff]  ;;  %v5967_v11 = vpack.c.bf16 %v4649_v42, %v4648_v13  ;;  %v4633_v17 = vld [vmem:[%s8264_s14 + $0x4] sm:$0xf] }
0x17ac   :  { %v5999_v5 = vpack.c.bf16 %v4681_v20, %v4680_v16  ;;  %v3909_v0 = vrot.slane %v4633_v17, %v6795_v7  ;;  %v3917_v26 = vrot.slane %v4633_v17, %v6802_v21  ;;  %v3913_v27 = vrot.slane %v4633_v17, %v6805_v22 }
0x17ad   :  { %v3921_v28 = vrot.slane %v4633_v17, %v1929_v32 }
0x17ae   :  { %5952 = vmatpush3.bf16.msra.mxu1 %v5951_v48  ;;  %5984 = vmatpush3.bf16.msra.mxu0 %v5983_v39 }
0x17af   :  { %5954 = vmatprep.subr.bf16.mxu1 %v5953_v37  ;;  %5986 = vmatprep.subr.bf16.mxu0 %v5985_v40 }
0x17b2   :  { %5956 = vmatpush3.bf16.msra.mxu1 %v5955_v29  ;;  %5988 = vmatpush3.bf16.msra.mxu0 %v5987_v55 }
0x17b3   :  { %5958 = vmatprep.subr.bf16.mxu1 %v5957_v56  ;;  %5990 = vmatprep.subr.bf16.mxu0 %v5989_v59 }
0x17b6   :  { %5960 = vmatpush3.bf16.msra.mxu1 %v5959_v51  ;;  %5992 = vmatpush3.bf16.msra.mxu0 %v5991_v2 }
0x17b7   :  { %5962 = vmatprep.subr.bf16.mxu1 %v5961_v4  ;;  %5994 = vmatprep.subr.bf16.mxu0 %v5993_v41 }
0x17ba   :  { %5964 = vmatpush3.bf16.msra.mxu1 %v5963_v12  ;;  %5996 = vmatpush3.bf16.msra.mxu0 %v5995_v3 }
0x17bb   :  { %5966 = vmatprep.subr.bf16.mxu1 %v5965_v43  ;;  %5998 = vmatprep.subr.bf16.mxu0 %v5997_v15 }
0x17be   :  { %5968 = vmatpush3.bf16.msra.mxu1 %v5967_v11  ;;  %6000 = vmatpush3.bf16.msra.mxu0 %v5999_v5 }
0x1873   :  { %v3992_v48 = vpop.f32.mrb[40].mxu1  ;;  %v4069_v30 = vpop.f32.mrb[30].mxu0 }
0x1874   :  { %v8197_v60 = vadd.f32 %v3992_v48, %v3909_v0  ;;  %v8199_v35 = vadd.f32 %v4069_v30, %v3917_v26  ;;  %v3994_v39 = vpop.f32.mrb[41].mxu1  ;;  %v4071_v47 = vpop.f32.mrb[31].mxu0 }
0x1875   :  { %v3995_v33 = vadd.f32 %v3994_v39, %v3913_v27  ;;  %v8201_v36 = vadd.f32 %v4071_v47, %v3921_v28 }
0x1876   :  { %v4088_v7 = vmul.f32 0.044715, %v8197_v60  ;;  %v4090_v21 = vmul.f32 0.044715, %v8199_v35  ;;  %v4080_v30 = vmul.f32 0.5, %v8197_v60 }
0x1877   :  { %v4089_v37 = vmul.f32 0.044715, %v3995_v33  ;;  %v4091_v22 = vmul.f32 0.044715, %v8201_v36  ;;  %v3998_v19 = vpop.f32.mrb[42].mxu1  ;;  %v4075_v32 = vpop.f32.mrb[32].mxu0 }
0x1878   :  { %v4096_v40 = vmul.f32 %v4088_v7, %v8197_v60  ;;  %v4098_v49 = vmul.f32 %v4090_v21, %v8199_v35  ;;  %v8208_v50 = vadd.f32 %v3998_v19, %v3909_v0  ;;  %v8210_v52 = vadd.f32 %v4075_v32, %v3917_v26  ;;  %v4000_v29 = vpop.f32.mrb[43].mxu1  ;;  %v4077_v53 = vpop.f32.mrb[33].mxu0 }
0x1879   :  { %v4097_v46 = vmul.f32 %v4089_v37, %v3995_v33  ;;  %v4099_v54 = vmul.f32 %v4091_v22, %v8201_v36  ;;  %v4001_v55 = vadd.f32 %v4000_v29, %v3913_v27  ;;  %v4078_v56 = vadd.f32 %v4077_v53, %v3921_v28 }
0x187a   :  { %v4104_v45 = vmul.f32 %v4096_v40, %v8197_v60  ;;  %v4106_v14 = vmul.f32 %v4098_v49, %v8199_v35  ;;  %v4092_v57 = vmul.f32 0.044715, %v8208_v50  ;;  %v4094_v59 = vmul.f32 0.044715, %v8210_v52 }
0x187b   :  { %v4093_v61 = vmul.f32 0.044715, %v4001_v55  ;;  %v4095_v62 = vmul.f32 0.044715, %v4078_v56  ;;  %v4105_v1 = vmul.f32 %v4097_v46, %v3995_v33  ;;  %v4107_v41 = vmul.f32 %v4099_v54, %v8201_v36 }
0x187c   :  { %v4112_v51 = vadd.f32 %v4104_v45, %v8197_v60  ;;  %v4114_v25 = vadd.f32 %v4106_v14, %v8199_v35  ;;  %v4100_v38 = vmul.f32 %v4092_v57, %v8208_v50  ;;  %v4102_v8 = vmul.f32 %v4094_v59, %v8210_v52 }
0x187d   :  { %v4101_v23 = vmul.f32 %v4093_v61, %v4001_v55  ;;  %v4103_v2 = vmul.f32 %v4095_v62, %v4078_v56  ;;  %v4113_v4 = vadd.f32 %v4105_v1, %v3995_v33  ;;  %v4115_v10 = vadd.f32 %v4107_v41, %v8201_v36  ;;  %v4699_v62 = vld [vmem:[%s8265_s16 + $0x1] ss:$0 sm:$0xff] }
0x187e   :  { %v4120_v24 = vmul.f32 0.7978846, %v4112_v51  ;;  %v4122_v6 = vmul.f32 0.7978846, %v4114_v25  ;;  %v4108_v18 = vmul.f32 %v4100_v38, %v8208_v50  ;;  %v4110_v13 = vmul.f32 %v4102_v8, %v8210_v52 }
0x187f   :  { %v4121_v9 = vmul.f32 0.7978846, %v4113_v4  ;;  %v4109_v44 = vmul.f32 %v4101_v23, %v4001_v55  ;;  %v4111_v63 = vmul.f32 %v4103_v2, %v4078_v56  ;;  %v4123_v3 = vmul.f32 0.7978846, %v4115_v10 }
0x1880   :  { %6173 = vtanh.f32 %v4120_v24  ;;  %v4116_v43 = vadd.f32 %v4108_v18, %v8208_v50  ;;  %v4118_v20 = vadd.f32 %v4110_v13, %v8210_v52  ;;  %v4081_v27 = vmul.f32 0.5, %v3995_v33 }
0x1881   :  { %6175 = vtanh.f32 %v4122_v6  ;;  %v4117_v58 = vadd.f32 %v4109_v44, %v4001_v55  ;;  %v4119_v12 = vadd.f32 %v4111_v63, %v4078_v56  ;;  %v4083_v21 = vmul.f32 0.5, %v8201_v36 }
0x1882   :  { %6177 = vtanh.f32 %v4121_v9  ;;  %v4124_v16 = vmul.f32 0.7978846, %v4116_v43  ;;  %v4126_v11 = vmul.f32 0.7978846, %v4118_v20  ;;  %v4082_v19 = vmul.f32 0.5, %v8199_v35 }
0x1883   :  { %v4125_v42 = vmul.f32 0.7978846, %v4117_v58  ;;  %v4127_v15 = vmul.f32 0.7978846, %v4119_v12  ;;  %6179 = vtanh.f32 %v4123_v3  ;;  %v4085_v40 = vmul.f32 0.5, %v4001_v55 }
0x1884   :  { %v4087_v33 = vmul.f32 0.5, %v4078_v56  ;;  %v4084_v14 = vmul.f32 0.5, %v8208_v50  ;;  %v4086_v55 = vmul.f32 0.5, %v8210_v52 }
0x1885   :  { %6181 = vtanh.f32 %v4125_v42 }
0x1886   :  { %6183 = vtanh.f32 %v4127_v15 }
0x1887   :  { %6185 = vtanh.f32 %v4124_v16 }
0x1888   :  { %6187 = vtanh.f32 %v4126_v11 }
0x188a   :  { %v6174_v5 = vpop.eup %6173 }
0x188b   :  { %v6176_v17 = vpop.eup %6175  ;;  %v4136_v26 = vadd.f32 1.0, %v6174_v5 }
0x188c   :  { %v6178_v0 = vpop.eup %6177  ;;  %v4138_v39 = vadd.f32 1.0, %v6176_v17 }
0x188d   :  { %v4137_v28 = vadd.f32 1.0, %v6178_v0  ;;  %v6180_v48 = vpop.eup %6179  ;;  %v4144_v32 = vmul.f32 %v4136_v26, %v4080_v30  ;;  %v4700_v0 = vld [vmem:[%s8266_s17] ss:$0 sm:$0xff] }
0x188e   :  { %v4139_v37 = vadd.f32 1.0, %v6180_v48  ;;  %v4146_v60 = vmul.f32 %v4138_v39, %v4082_v19 }
0x188f   :  { %v6182_v47 = vpop.eup %6181  ;;  %v4145_v7 = vmul.f32 %v4137_v28, %v4081_v27  ;;  %v4701_v27 = vld [vmem:[%s8267_s18] ss:$0 sm:$0xff] }
0x1890   :  { %v6184_v22 = vpop.eup %6183  ;;  %v4141_v49 = vadd.f32 1.0, %v6182_v47  ;;  %v4147_v53 = vmul.f32 %v4139_v37, %v4083_v21 }
0x1891   :  { %v6186_v29 = vpop.eup %6185  ;;  %4289 = vmatprep.mubr.f32.mxu1 %v4145_v7  ;;  %v4143_v46 = vadd.f32 1.0, %v6184_v22 }
0x1892   :  { %v6188_v54 = vpop.eup %6187  ;;  %4290 = vmatmul.mubr.f32.vlgmr.msra.gmra.mrb[44].mxu1 %v4144_v32  ;;  %v4149_v45 = vmul.f32 %v4141_v49, %v4085_v40  ;;  %v4140_v57 = vadd.f32 1.0, %v6186_v29  ;;  %4364 = vmatprep.mubr.f32.mxu0 %v4147_v53 }
0x1893   :  { %v4151_v36 = vmul.f32 %v4143_v46, %v4087_v33  ;;  %v4142_v59 = vadd.f32 1.0, %v6188_v54  ;;  %4365 = vmatmul.mubr.f32.vlgmr.msra.gmra.mrb[34].mxu0 %v4146_v60 }
0x1894   :  { %4294 = vmatprep.mubr.f32.mxu1 %v4149_v45  ;;  %v4148_v35 = vmul.f32 %v4140_v57, %v4084_v14 }
0x1895   :  { %4369 = vmatprep.mubr.f32.mxu0 %v4151_v36  ;;  %v4150_v61 = vmul.f32 %v4142_v59, %v4086_v55 }
0x1896   :  { %4295 = vmatmul.mubr.f32.gmra.mrb[46].mxu1 %v4148_v35 }
0x1897   :  { %4370 = vmatmul.mubr.f32.gmra.mrb[36].mxu0 %v4150_v61 }
0x1965   :  { %v5063_v56 = vpop.f32.mrb[44].mxu1 }
0x1966   :  { %v5064_v1 = vpop.f32.mrb[45].mxu1  ;;  %v5101_v50 = vpop.f32.mrb[34].mxu0 }
0x1967   :  { %v5065_v51 = vadd.f32 %v5064_v1, %v5063_v56  ;;  %v5102_v25 = vpop.f32.mrb[35].mxu0 }
0x1968   :  { %v5103_v23 = vadd.f32 %v5102_v25, %v5101_v50 }
0x1969   :  { %v4292_v38 = vadd.f32 %v5065_v51, %v4699_v62  ;;  %v5066_v2 = vpop.f32.mrb[46].mxu1 }
0x196a   :  { %v5067_v4 = vpop.f32.mrb[47].mxu1  ;;  %v5104_v6 = vpop.f32.mrb[36].mxu0 }
0x196b   :  { %v4367_v24 = vadd.f32 %v5103_v23, %v4292_v38  ;;  %v5068_v52 = vadd.f32 %v5067_v4, %v5066_v2  ;;  %v5105_v8 = vpop.f32.mrb[37].mxu0 }
0x196c   :  { %v5106_v9 = vadd.f32 %v5105_v8, %v5104_v6 }
0x196d   :  { %v4297_v41 = vadd.f32 %v5068_v52, %v4699_v62  ;;  %v4375_v44 = vadd.f32 %v4367_v24, %v7781_v34 }
0x196f   :  { %v4372_v63 = vadd.f32 %v5106_v9, %v4297_v41  ;;  %4379 = vadd.xlane.f32.xlu0 %v4375_v44 }
0x1971   :  { %v4376_v10 = vadd.f32 %v4372_v63, %v7779_v31 }
0x1973   :  { %4381 = vadd.xlane.f32.xlu1 %v4376_v10 }
0x19fc   :  { %v4380_v18 = vpop.xlane.xlu0 %4379 }
0x19fd   :  { %v4383_v58 = vmul.f32 0.0078125, %v4380_v18 }
0x19ff   :  { %v4385_v12 = vsub.f32 %v4375_v44, %v4383_v58 }
0x1a00   :  { %v4382_v3 = vpop.xlane.xlu1 %4381 }
0x1a01   :  { %v4384_v43 = vmul.f32 0.0078125, %v4382_v3  ;;  %v4387_v13 = vmul.f32 %v4385_v12, %v4385_v12 }
0x1a03   :  { %v4386_v42 = vsub.f32 %v4376_v10, %v4384_v43  ;;  %4389 = vadd.xlane.f32.xlu0 %v4387_v13 }
0x1a05   :  { %v4388_v15 = vmul.f32 %v4386_v42, %v4386_v42 }
0x1a07   :  { %4391 = vadd.xlane.f32.xlu1 %v4388_v15 }
0x1a90   :  { %v4390_v16 = vpop.xlane.xlu0 %4389 }
0x1a91   :  { %v4393_v20 = vmul.f32 0.0078125, %v4390_v16 }
0x1a93   :  { %v4395_v11 = vadd.f32 1e-06, %v4393_v20 }
0x1a94   :  { %v4392_v5 = vpop.xlane.xlu1 %4391 }
0x1a95   :  { %6189 = vrsqrt.f32 %v4395_v11  ;;  %v4394_v34 = vmul.f32 0.0078125, %v4392_v5 }
0x1a97   :  { %v4396_v17 = vadd.f32 1e-06, %v4394_v34 }
0x1a99   :  { %6191 = vrsqrt.f32 %v4396_v17 }
0x1a9f   :  { %v6190_v31 = vpop.eup %6189 }
0x1aa0   :  { %v4399_v26 = vmul.f32 %v6190_v31, %v4385_v12 }
0x1aa2   :  { %v4407_v28 = vmul.f32 %v4700_v0, %v4399_v26 }
0x1aa3   :  { %v6192_v48 = vpop.eup %6191 }
0x1aa4   :  { %v4415_v30 = vadd.f32 %v4701_v27, %v4407_v28  ;;  %v4400_v39 = vmul.f32 %v6192_v48, %v4386_v42 }
0x1aa6   :  { %4417 = vst [vmem:[%s8268_s19] sm:$0xff] %v4415_v30  ;;  %v4408_v47 = vmul.f32 %v4700_v0, %v4400_v39 }
0x1aa8   :  { %v4416_v7 = vadd.f32 %v4701_v27, %v4408_v47 }
0x1aaa   :  { %4418 = vst [vmem:[%s8268_s19 + $0x8] sm:$0xff] %v4416_v7 }

</bundles_post_ra>
